<compile_context>
chip_gen: v5e
topology: v5e:2x2
jax: 0.10.0
libtpu: 0.0.40
codegen_flags: <defaults>
</compile_context>

<pallas_src>
import math
import functools

import jax
import jax.numpy as jnp
from jax.experimental import pallas as pl
from jax.experimental.pallas import tpu as pltpu


# ------------------------------- Pallas kernel -------------------------------

def conv_attention_kernel(x_ref, wf_ref, bf_ref, d2_ref, o_ref, *,
                          embed_dim, n_heads, elem_dtype, project_on_vpu):
    # x_ref:  (1, C_in, tp)      pixel tile of one batch element (pixels on lanes), f32
    # wf_ref: (3*Hd*E, C_in)     fused head-major [q|k|v] 1x1-conv weights, bf16 (resident)
    # bf_ref: (3*Hd*E, 1)        fused biases, f32 (query bias pre-scaled by 1/sqrt(E))
    # d2_ref: (2*Hd, 2*Hd*E)     block-diag 0/1 matrix -> [denom; num] in one MXU pass, bf16
    # o_ref:  (1, Hd, tp)        f32 output
    HE = embed_dim * n_heads
    Hd = n_heads
    cdt = elem_dtype

    x = x_ref[0]                                     # (C_in, tp) f32
    c_in = x.shape[0]

    if project_on_vpu:
        # Tiny contraction depth (C_in ~ 4): outer-product multiply-adds on the VPU,
        # keeping the MXU vext slot free for the reduction matmul below.
        w = wf_ref[...].astype(cdt)                  # (3*HE, C_in), tiny convert
        y = w[:, 0:1] * x[0:1, :].astype(cdt)        # (3*HE, tp)
        for c in range(1, c_in):
            y = y + w[:, c:c + 1] * x[c:c + 1, :].astype(cdt)
        y = y + bf_ref[...].astype(cdt)
    else:
        # bf16 operands, f32 accumulation on the MXU.
        y32 = jnp.dot(wf_ref[...], x.astype(jnp.bfloat16),
                      preferred_element_type=jnp.float32) + bf_ref[...]
        y = y32.astype(cdt)

    q = y[0 * HE:1 * HE, :]                          # (HE, tp)
    k = y[1 * HE:2 * HE, :]
    v = y[2 * HE:3 * HE, :]

    # 1/sqrt(E) is already folded into the query weights/bias (prepare_conv_attention_params).
    s = q * k                                        # (HE, tp) scores

    # Softmax over each head's E-row block. A single per-pixel max shared by all heads is
    # valid (softmax is shift-invariant); denom is clamped below so an underflowed head
    # cannot produce inf/NaN.
    m = jnp.max(s, axis=0, keepdims=True)            # (1, tp)
    p = jnp.exp(s - m)                               # (HE, tp)
    vp = v * p

    # Fused per-head sums: one (2*Hd, 2*HE) @ (2*HE, tp) bf16 matmul -> [denom; num].
    stacked = jnp.concatenate([p, vp], axis=0)       # (2*HE, tp)
    r2 = jnp.dot(d2_ref[...], stacked.astype(jnp.bfloat16),
                 preferred_element_type=jnp.float32)  # (2*Hd, tp) f32

    denom = jnp.maximum(r2[0:Hd, :], 1e-30)          # guard against all-underflow heads
    num = r2[Hd:2 * Hd, :]

    # EUP reciprocal + one Newton step (full f32 accuracy, stays off the VALU divide).
    r = pl.reciprocal(denom, approx=True)
    r = r * (2.0 - denom * r)

    o_ref[0] = (num * r).astype(o_ref.dtype)


# --------------------------- one-time parameter prep ---------------------------

def prepare_conv_attention_params(wq, bq, wk, bk, wv, bv, *, embed_dim, n_heads):
    """Hoisted out of the per-call path: fuse the three (E*Hd, C_in) PyTorch 1x1-conv weights
    (channel c = e*n_heads + h) into a head-major (3*Hd*E, C_in) bf16 matrix, biases into
    (3*Hd*E, 1) f32, fold 1/sqrt(E) into the query weights/bias, and build the bf16
    block-diagonal sum matrix D2 of shape (2*Hd, 2*Hd*E)."""
    E, Hd = embed_dim, n_heads
    C_in = wq.shape[1]
    # Head-major row slices (q/k/v at offsets 0, HE, 2*HE) stay sublane-aligned only if
    # E*Hd is a multiple of 8.
    assert (E * Hd) % 8 == 0, "embed_dim * n_heads must be a multiple of 8"

    def head_major(w, b):
        w3 = w.reshape(E, Hd, C_in)                               # [e, h, c_in]
        w3 = jnp.transpose(w3, (1, 0, 2)).reshape(Hd * E, C_in)   # row h*E + e
        b3 = b.reshape(E, Hd).T.reshape(Hd * E, 1)
        return w3, b3

    wq2, bq2 = head_major(wq, bq)
    wk2, bk2 = head_major(wk, bk)
    wv2, bv2 = head_major(wv, bv)

    inv_sqrt_e = 1.0 / math.sqrt(E)
    wq2 = wq2 * inv_sqrt_e                                        # fold softmax scale into Q
    bq2 = bq2 * inv_sqrt_e

    wf = jnp.concatenate([wq2, wk2, wv2], axis=0).astype(jnp.bfloat16)   # (3*Hd*E, C_in)
    bf = jnp.concatenate([bq2, bk2, bv2], axis=0).astype(jnp.float32)    # (3*Hd*E, 1)

    dmat = jnp.repeat(jnp.eye(Hd, dtype=jnp.float32), E, axis=1)         # (Hd, Hd*E)
    d2 = jnp.kron(jnp.eye(2, dtype=jnp.float32), dmat).astype(jnp.bfloat16)  # (2*Hd, 2*Hd*E)
    return wf, bf, d2


# --------------------------------- wrapper -----------------------------------

def _elem_dtype_for_device():
    """bf16 elementwise chain only where the VPU/EUP have a bf16 path (v6e / v7x)."""
    try:
        kind = jax.devices()[0].device_kind.lower()
    except Exception:
        return jnp.float32
    if ("v6" in kind) or ("v7" in kind) or ("7x" in kind):
        return jnp.bfloat16
    return jnp.float32


def conv_attention(x_nchw, wf, bf, d2, *, embed_dim, n_heads,
                   tile_pixels=1024, elem_dtype=None, vpu_cin_threshold=32):
    """x_nchw: (B, C_in, H, W) f32; (wf, bf, d2) from prepare_conv_attention_params().
    Returns (B, n_heads, H, W) f32."""
    B, C_in, H, W = x_nchw.shape
    E, Hd = embed_dim, n_heads
    HE = E * Hd
    HW = H * W

    if elem_dtype is None:
        elem_dtype = _elem_dtype_for_device()

    # Pad pixels only up to the next multiple of 128 (lanes), then pick a pixel tile that
    # divides the padded extent -> no ragged tile, and for typical shapes (H*W already a
    # multiple of 128) no wrapper-side pad or output-slice copy at all.  Keep >= 2 grid
    # steps where possible so both v7x TensorCores get work.
    HWp = pl.cdiv(HW, 128) * 128
    n128 = HWp // 128
    cap128 = max(1, min(tile_pixels, HWp) // 128)
    min_tiles = 1 if B >= 2 else min(2, n128)
    tdiv = 1
    for d in range(1, min(cap128, n128) + 1):
        if n128 % d == 0 and n128 // d >= min_tiles:
            tdiv = d
    tp = tdiv * 128
    n_tiles = HWp // tp

    x3 = x_nchw.reshape(B, C_in, HW)                 # free reshape of NCHW
    if HWp != HW:
        x3 = jnp.pad(x3, ((0, 0), (0, 0), (0, HWp - HW)))   # at most 127 zero pixels

    kernel = functools.partial(
        conv_attention_kernel,
        embed_dim=E, n_heads=Hd, elem_dtype=elem_dtype,
        project_on_vpu=(C_in < vpu_cin_threshold))

    out = pl.pallas_call(
        kernel,
        out_shape=jax.ShapeDtypeStruct((B, Hd, HWp), jnp.float32),
        grid_spec=pltpu.PrefetchScalarGridSpec(
            num_scalar_prefetch=0,
            grid=(B, n_tiles),
            in_specs=[
                pl.BlockSpec((1, C_in, tp), lambda b, j: (b, 0, j)),   # x tile (pixels on lanes)
                pl.BlockSpec((3 * HE, C_in), lambda b, j: (0, 0)),     # fused bf16 weights
                pl.BlockSpec((3 * HE, 1), lambda b, j: (0, 0)),        # fused f32 biases
                pl.BlockSpec((2 * Hd, 2 * HE), lambda b, j: (0, 0)),   # block-diag D2 (bf16)
            ],
            out_specs=pl.BlockSpec((1, Hd, tp), lambda b, j: (b, 0, j)),
        ),
        compiler_params=pltpu.CompilerParams(
            dimension_semantics=("parallel", "parallel")),
    )(x3, wf, bf, d2)

    if HWp != HW:
        out = out[:, :, :HW]
    return out.reshape(B, Hd, H, W)


# ------------------------------ pure-JAX reference ----------------------------

def conv_attention_ref(x, wq, bq, wk, bk, wv, bv, *, embed_dim, n_heads):
    B, C, H, W = x.shape
    E, Hd = embed_dim, n_heads

    def conv1x1(w, b):
        return jnp.einsum("oc,bchw->bohw", w, x) + b[None, :, None, None]

    scores_wide = conv1x1(wq, bq) * conv1x1(wk, bk) / math.sqrt(E)
    values_wide = conv1x1(wv, bv)

    def stack(t):  # mirrors _stack_channels
        t = jnp.transpose(t, (0, 2, 3, 1)).reshape(B, H, W, E, Hd)
        return jnp.transpose(t, (0, 3, 4, 1, 2))   # (B, E, Hd, H, W)

    scores = stack(scores_wide)
    values = stack(values_wide)
    p = jax.nn.softmax(scores, axis=1)
    return jnp.sum(values * p, axis=1)             # (B, Hd, H, W)


# ----------------------------------- main -------------------------------------

if __name__ == "__main__":
    B, C_in, H, W = 2, 4, 16, 16
    embed_dim, n_heads = 32, 4
    CH = embed_dim * n_heads

    key = jax.random.PRNGKey(0)
    kq, kk, kv, kx = jax.random.split(key, 4)

    # Deterministic synthetic init matching the module's __init__ distributions
    wq = 0.02 * jax.random.normal(kq, (CH, C_in), jnp.float32)                    # normal(0, 0.02)
    wk = 0.02 * jax.random.normal(kk, (CH, C_in), jnp.float32)                    # normal(0, 0.02)
    wv = math.sqrt(2.0 / C_in) * jax.random.normal(kv, (CH, C_in), jnp.float32)   # kaiming_normal
    bq = jnp.zeros((CH,), jnp.float32)
    bk = jnp.zeros((CH,), jnp.float32)
    bv = jnp.zeros((CH,), jnp.float32)

    x = jax.random.normal(kx, (B, C_in, H, W), jnp.float32)

    # One-time parameter preparation (hoisted out of the per-call path).
    wf, bf, d2 = prepare_conv_attention_params(
        wq, bq, wk, bk, wv, bv, embed_dim=embed_dim, n_heads=n_heads)

    out = conv_attention(x, wf, bf, d2, embed_dim=embed_dim, n_heads=n_heads)
    out = jax.block_until_ready(out)

    ref = conv_attention_ref(x, wq, bq, wk, bk, wv, bv,
                             embed_dim=embed_dim, n_heads=n_heads)

    assert out.shape == (B, n_heads, H, W), out.shape
    assert bool(jnp.all(jnp.isfinite(out)))
    # bf16 MXU operands / (on v6e+/v7x) bf16 elementwise chain -> loosened tolerance vs f32 ref.
    err = float(jnp.max(jnp.abs(out - ref)))
    assert jnp.allclose(out, ref, rtol=5e-2, atol=5e-2), err

    print("KERNEL_OK")
</pallas_src>

<mosaic_0001>
module attributes {stable_mosaic.version = 11 : i64} {
  func.func @conv_attention_kernel(%arg0: i32, %arg1: i32, %arg2: memref<1x4x256xf32, #tpu.memory_space<vmem>>, %arg3: memref<384x4xbf16, #tpu.memory_space<vmem>>, %arg4: memref<384x1xf32, #tpu.memory_space<vmem>>, %arg5: memref<8x256xbf16, #tpu.memory_space<vmem>>, %arg6: memref<1x4x256xf32, #tpu.memory_space<vmem>>) attributes {dimension_semantics = [#tpu.dimension_semantics<parallel>, #tpu.dimension_semantics<parallel>], iteration_bounds = array<i64: 2, 1>, scalar_prefetch = 0 : i64, scratch_operands = 0 : i64, tpu.core_type = #tpu.core_type<tc>, window_params = [{transform_indices = @transform_0, window_bounds = array<i64: 1, 4, 256>}, {pipeline_mode = #tpu.pipeline_mode<synchronous>, transform_indices = @transform_1, window_bounds = array<i64: 384, 4>}, {pipeline_mode = #tpu.pipeline_mode<synchronous>, transform_indices = @transform_2, window_bounds = array<i64: 384, 1>}, {pipeline_mode = #tpu.pipeline_mode<synchronous>, transform_indices = @transform_3, window_bounds = array<i64: 8, 256>}, {transform_indices = @transform_4, window_bounds = array<i64: 1, 4, 256>}]} {
    %c0 = arith.constant 0 : index
    %c0_0 = arith.constant 0 : index
    %c0_1 = arith.constant 0 : index
    %0 = vector.load %arg2[%c0, %c0_0, %c0_1] : memref<1x4x256xf32, #tpu.memory_space<vmem>>, vector<1x4x256xf32>
    %1 = vector.shape_cast %0 : vector<1x4x256xf32> to vector<4x256xf32>
    %c0_2 = arith.constant 0 : index
    %c0_3 = arith.constant 0 : index
    %2 = vector.load %arg3[%c0_2, %c0_3] : memref<384x4xbf16, #tpu.memory_space<vmem>>, vector<384x4xbf16>
    %3 = arith.extf %2 : vector<384x4xbf16> to vector<384x4xf32>
    %4 = vector.extract_strided_slice %3 {offsets = [0, 0], sizes = [384, 1], strides = [1, 1]} : vector<384x4xf32> to vector<384x1xf32>
    %5 = vector.extract_strided_slice %1 {offsets = [0, 0], sizes = [1, 256], strides = [1, 1]} : vector<4x256xf32> to vector<1x256xf32>
    %6 = vector.broadcast %4 : vector<384x1xf32> to vector<384x256xf32>
    %7 = vector.broadcast %5 : vector<1x256xf32> to vector<384x256xf32>
    %8 = arith.mulf %6, %7 : vector<384x256xf32>
    %9 = vector.extract_strided_slice %3 {offsets = [0, 1], sizes = [384, 1], strides = [1, 1]} : vector<384x4xf32> to vector<384x1xf32>
    %10 = vector.extract_strided_slice %1 {offsets = [1, 0], sizes = [1, 256], strides = [1, 1]} : vector<4x256xf32> to vector<1x256xf32>
    %11 = vector.broadcast %9 : vector<384x1xf32> to vector<384x256xf32>
    %12 = vector.broadcast %10 : vector<1x256xf32> to vector<384x256xf32>
    %13 = arith.mulf %11, %12 : vector<384x256xf32>
    %14 = arith.addf %8, %13 : vector<384x256xf32>
    %15 = vector.extract_strided_slice %3 {offsets = [0, 2], sizes = [384, 1], strides = [1, 1]} : vector<384x4xf32> to vector<384x1xf32>
    %16 = vector.extract_strided_slice %1 {offsets = [2, 0], sizes = [1, 256], strides = [1, 1]} : vector<4x256xf32> to vector<1x256xf32>
    %17 = vector.broadcast %15 : vector<384x1xf32> to vector<384x256xf32>
    %18 = vector.broadcast %16 : vector<1x256xf32> to vector<384x256xf32>
    %19 = arith.mulf %17, %18 : vector<384x256xf32>
    %20 = arith.addf %14, %19 : vector<384x256xf32>
    %21 = vector.extract_strided_slice %3 {offsets = [0, 3], sizes = [384, 1], strides = [1, 1]} : vector<384x4xf32> to vector<384x1xf32>
    %22 = vector.extract_strided_slice %1 {offsets = [3, 0], sizes = [1, 256], strides = [1, 1]} : vector<4x256xf32> to vector<1x256xf32>
    %23 = vector.broadcast %21 : vector<384x1xf32> to vector<384x256xf32>
    %24 = vector.broadcast %22 : vector<1x256xf32> to vector<384x256xf32>
    %25 = arith.mulf %23, %24 : vector<384x256xf32>
    %26 = arith.addf %20, %25 : vector<384x256xf32>
    %c0_4 = arith.constant 0 : index
    %c0_5 = arith.constant 0 : index
    %27 = vector.load %arg4[%c0_4, %c0_5] : memref<384x1xf32, #tpu.memory_space<vmem>>, vector<384x1xf32>
    %28 = vector.broadcast %27 : vector<384x1xf32> to vector<384x256xf32>
    %29 = arith.addf %26, %28 : vector<384x256xf32>
    %30 = vector.extract_strided_slice %29 {offsets = [0, 0], sizes = [128, 256], strides = [1, 1]} : vector<384x256xf32> to vector<128x256xf32>
    %31 = vector.extract_strided_slice %29 {offsets = [128, 0], sizes = [128, 256], strides = [1, 1]} : vector<384x256xf32> to vector<128x256xf32>
    %32 = vector.extract_strided_slice %29 {offsets = [256, 0], sizes = [128, 256], strides = [1, 1]} : vector<384x256xf32> to vector<128x256xf32>
    %33 = arith.mulf %30, %31 : vector<128x256xf32>
    %cst = arith.constant dense<0xFF800000> : vector<256xf32>
    %34 = vector.multi_reduction <maximumf>, %33, %cst [0] : vector<128x256xf32> to vector<256xf32>
    %35 = vector.shape_cast %34 : vector<256xf32> to vector<1x256xf32>
    %36 = vector.broadcast %35 : vector<1x256xf32> to vector<128x256xf32>
    %37 = arith.subf %33, %36 : vector<128x256xf32>
    %38 = math.exp %37 : vector<128x256xf32>
    %39 = arith.mulf %32, %38 : vector<128x256xf32>
    %40 = tpu.concatenate %38, %39 in 0 : vector<128x256xf32>, vector<128x256xf32> -> vector<256x256xf32>
    %c0_6 = arith.constant 0 : index
    %c0_7 = arith.constant 0 : index
    %41 = vector.load %arg5[%c0_6, %c0_7] : memref<8x256xbf16, #tpu.memory_space<vmem>>, vector<8x256xbf16>
    %42 = arith.truncf %40 : vector<256x256xf32> to vector<256x256xbf16>
    %cst_8 = arith.constant dense<0.000000e+00> : vector<8x256xf32>
    %43 = tpu.matmul %41, %42, %cst_8 {dimension_numbers = #tpu.dot_dimension_numbers<[1], [0], [0], [1], [0, 0, 1, 1], [], []>} : vector<8x256xbf16>, vector<256x256xbf16>, vector<8x256xf32> -> vector<8x256xf32>
    %44 = vector.extract_strided_slice %43 {offsets = [0, 0], sizes = [4, 256], strides = [1, 1]} : vector<8x256xf32> to vector<4x256xf32>
    %cst_9 = arith.constant 1.000000e-30 : f32
    %45 = vector.broadcast %cst_9 : f32 to vector<4x256xf32>
    %46 = arith.maximumf %44, %45 : vector<4x256xf32>
    %47 = vector.extract_strided_slice %43 {offsets = [4, 0], sizes = [4, 256], strides = [1, 1]} : vector<8x256xf32> to vector<4x256xf32>
    %48 = tpu.reciprocal %46 {approx = true} : vector<4x256xf32> -> vector<4x256xf32>
    %49 = arith.mulf %46, %48 : vector<4x256xf32>
    %cst_10 = arith.constant 2.000000e+00 : f32
    %50 = vector.broadcast %cst_10 : f32 to vector<4x256xf32>
    %51 = arith.subf %50, %49 : vector<4x256xf32>
    %52 = arith.mulf %48, %51 : vector<4x256xf32>
    %53 = arith.mulf %47, %52 : vector<4x256xf32>
    %c0_11 = arith.constant 0 : index
    %c0_12 = arith.constant 0 : index
    %c0_13 = arith.constant 0 : index
    %54 = vector.load %arg6[%c0_11, %c0_12, %c0_13] : memref<1x4x256xf32, #tpu.memory_space<vmem>>, vector<1x4x256xf32>
    %55 = vector.shape_cast %54 : vector<1x4x256xf32> to vector<4x256xf32>
    %56 = vector.shape_cast %53 : vector<4x256xf32> to vector<1x4x256xf32>
    tpu.vector_store %arg6[%c0_11, %c0_12, %c0_13], %56 {strides = array<i32>} : memref<1x4x256xf32, #tpu.memory_space<vmem>>, vector<1x4x256xf32>,
    return
  }
  func.func @transform_0(%arg0: i32, %arg1: i32) -> (i32, i32, i32) {
    %c0_i32 = arith.constant 0 : i32
    %c0_i32_0 = arith.constant 0 : i32
    return %arg0, %c0_i32, %arg1 : i32, i32, i32
  }
  func.func @transform_1(%arg0: i32, %arg1: i32) -> (i32, i32) {
    %c0_i32 = arith.constant 0 : i32
    %c0_i32_0 = arith.constant 0 : i32
    %c0_i32_1 = arith.constant 0 : i32
    return %c0_i32, %c0_i32_0 : i32, i32
  }
  func.func @transform_2(%arg0: i32, %arg1: i32) -> (i32, i32) {
    %c0_i32 = arith.constant 0 : i32
    %c0_i32_0 = arith.constant 0 : i32
    %c0_i32_1 = arith.constant 0 : i32
    return %c0_i32, %c0_i32_0 : i32, i32
  }
  func.func @transform_3(%arg0: i32, %arg1: i32) -> (i32, i32) {
    %c0_i32 = arith.constant 0 : i32
    %c0_i32_0 = arith.constant 0 : i32
    %c0_i32_1 = arith.constant 0 : i32
    return %c0_i32, %c0_i32_0 : i32, i32
  }
  func.func @transform_4(%arg0: i32, %arg1: i32) -> (i32, i32, i32) {
    %c0_i32 = arith.constant 0 : i32
    %c0_i32_0 = arith.constant 0 : i32
    return %arg0, %c0_i32, %arg1 : i32, i32, i32
  }
}

</mosaic_0001>

<bundles_post_ra>
// kernel: tpu_custom_call.1
= control target key start
LH: loop header
LB: loop body
LE: loop exit
PB: predicated region body
PF: predicated region fallthrough
CT: control target
= control target key end

     0   :  { %9 = vsyncpa [#allocation3], 0  ;;  %s5947_s0 = inlined_call_operand.vmem [shape: f32[2,4,256], index: 0, kind: input, shape index: {}]   ;;  %s5948_s1 = inlined_call_operand.vmem [shape: bf16[384,4], index: 1, kind: input, shape index: {}]   ;;  %s5949_s2 = inlined_call_operand.vmem [shape: f32[384,1], index: 2, kind: input, shape index: {}]   ;;  %s5950_s3 = inlined_call_operand.vmem [shape: bf16[8,256], index: 3, kind: input, shape index: {}]   ;;  %s5951_s4 = inlined_call_operand.hbm [shape: f32[2,4,256], index: 4, kind: output, shape index: {}]  }
   0x1   :  { %11 = vsyncpa [#allocation3 + $0x1], 0  ;;  %s3501_s15 = smov 0   ;;  %s3503_s16 = smov 0  }
   0x2   :  { %s3505_s17 = smov 0   ;;  %s3507_s18 = smov 0  }
   0x3   :  { %s3509_s19 = smov 0   ;;  %s3511_s20 = smov 0  }
   0x4 LB: > { %s2636_s21 = sadd.s32 4294967295, %s3470_s20   ;;  %s2637_s22 = sadd.s32 4294967294, %s3470_s20   ;;  %s3470_s20 = sphi %s3511_s20, %s17_s20   ;;  %s3466_s19 = sphi %s3509_s19, %s6472_s19   ;;  %s3462_s18 = sphi %s3507_s18, %s6471_s18   ;;  %s3458_s17 = sphi %s3505_s17, %s6470_s17   ;;  %s3454_s16 = sphi %s3503_s16, %s6469_s16   ;;  %s3450_s15 = sphi %s3501_s15, %s6468_s15  }
   0x5   : > { %s29_s23 = sadd.s32 1, %s3466_s19  ;;  %s129_s24 = sadd.s32 1, %s3458_s17 }
   0x6   : > { %p31_p0 = scmp.ge.s32.totalorder %s29_s23, 2  ;;  %p139_p1 = scmp.ne.s32.totalorder %s3458_s17, %s3454_s16 }
   0x7   : > { %p140_p2 = scmp.eq.s32.totalorder %s2636_s21, 1  ;;  %p145_p3 = scmp.ne.s32.totalorder %s3454_s16, %s3450_s15 }
   0x8   : > { %s6474_s23 = smov (%p31_p0, %s29_s23), 0  ;;  %p146_p5 = scmp.eq.s32.totalorder %s2637_s22, 1 }
   0x9   : > { %p3541_p4 = por %p140_p2, %p139_p1  ;;  %s124_s26 = ssub.s32 %s3466_s19, %s6474_s23 }
   0xa   : > { %p2640_p6 = scmp.ge.s32.totalorder %s3470_s20, 1  ;;  %p127_p7 = scmp.eq.s32.totalorder %s124_s26, 0 }
   0xb   : > { %p3548_p8 = por %p146_p5, %p145_p3  ;;  %p186_p9 = scmp.lt.s32.totalorder %s3470_s20, 3 }
   0xc   : > { %s3554_s28 = scalar_select %p127_p7, %s3458_s17, %s129_s24  }
   0xd   : > { %p187_p10 = pnand %p2640_p6, %p186_p9 }
   0xf   : > { %190 = sbr.rel (%p187_p10) target bundleno = 750 (0x2ee), region = 36 }
  0x14   : > { %v2750_v0 = vld [vmem:[%s5948_s1 + $0x20] sm:$0xff]   ;;  %v2748_v1 = vld [vmem:[%s5948_s1 + $0x10] sm:$0xff]   ;;  %v3472_v3 = vmov 1   ;;  %v5954_v4 = vmov 0   ;;  %v2751_v11 = vld [vmem:[%s5948_s1 + $0x28] sm:$0xff]   ;;  %p217_p11 = scmp.lt.s32.totalorder %s3462_s18, 1 }
  0x15   : > { %v2652_v2 = vld [vmem:[%s5948_s1] sm:$0xff]   ;;  %2911 = vset.pattern.permute.xlu0 %v3472_v3  ;;  %2840 = vset.pattern.permute.xlu2 %v5954_v4  ;;  %v2669_v5 = vunpack.c.l.bf16 %v2750_v0  ;;  %v2670_v6 = vunpack.c.h.bf16 %v2750_v0  ;;  %v2661_v7 = vunpack.c.l.bf16 %v2748_v1  ;;  %v2662_v8 = vunpack.c.h.bf16 %v2748_v1  ;;  %v2749_v12 = vld [vmem:[%s5948_s1 + $0x18] sm:$0xff]   ;;  %v2756_v31 = vld [vmem:[%s5948_s1 + $0x50] sm:$0xff]   ;;  %s213_s10 = sand.u32 1, %s3454_s16   ;;  %s2650_s12 = sshll.u32 %s3462_s18, 3 }
  0x16   : > { %2829 = vset.pattern.permute.xlu1 %v5954_v4  ;;  %v2653_v9 = vunpack.c.l.bf16 %v2652_v2  ;;  %v2654_v10 = vunpack.c.h.bf16 %v2652_v2  ;;  %v2673_v16 = vunpack.c.l.bf16 %v2751_v11  ;;  %v2674_v17 = vunpack.c.h.bf16 %v2751_v11  ;;  %v2754_v22 = vld [vmem:[%s5948_s1 + $0x40] sm:$0xff]   ;;  %v2753_v23 = vld [vmem:[%s5948_s1 + $0x38] sm:$0xff]   ;;  %v2760_v38 = vld [vmem:[%s5948_s1 + $0x70] sm:$0xff]   ;;  %s218_s24 = scalar_select %p217_p11, %s3462_s18, 1 }
  0x17   : > { %v3574_v13 = vpack.i.bf16 %v2670_v6, %v2669_v5  ;;  %v3576_v14 = vpack.i.bf16 %v2662_v8, %v2661_v7  ;;  %v2665_v18 = vunpack.c.l.bf16 %v2749_v12  ;;  %v2666_v19 = vunpack.c.h.bf16 %v2749_v12  ;;  %v2757_v30 = vld [vmem:[%s5948_s1 + $0x58] sm:$0xff]   ;;  %v2759_v39 = vld [vmem:[%s5948_s1 + $0x68] sm:$0xff]   ;;  %v2762_v47 = vld [vmem:[%s5948_s1 + $0x80] sm:$0xff]   ;;  %s2641_s11 = sshll.u32 %s213_s10, 3  ;;  %s2555_s21 = scalar_lea.hbm %s5951_s4, %s2650_s12 }
  0x18   : > { %v3578_v15 = vpack.i.bf16 %v2654_v10, %v2653_v9  ;;  %v3583_v20 = vpack.i.bf16 %v2674_v17, %v2673_v16  ;;  %v2685_v24 = vunpack.c.l.bf16 %v2754_v22  ;;  %v2686_v25 = vunpack.c.h.bf16 %v2754_v22  ;;  %v2763_v46 = vld [vmem:[%s5948_s1 + $0x88] sm:$0xff]   ;;  %v2766_v54 = vld [vmem:[%s5948_s1 + $0xa0] sm:$0xff]   ;;  %v2765_v55 = vld [vmem:[%s5948_s1 + $0x98] sm:$0xff]   ;;  %s2649_s26 = sshll.u32 %s218_s24, 3  ;;  %s215_s22 = scalar_lea.vmem [#allocation2], %s2641_s11 }
  0x19   : > { %2842 = vperm.xlu2 %2840, %v3574_v13   ;;  %2831 = vperm.xlu1 %2829, %v3576_v14   ;;  %v3585_v21 = vpack.i.bf16 %v2666_v19, %v2665_v18  ;;  %v2681_v26 = vunpack.c.l.bf16 %v2753_v23  ;;  %v2682_v27 = vunpack.c.h.bf16 %v2753_v23  ;;  %v2697_v32 = vunpack.c.l.bf16 %v2757_v30  ;;  %v2769_v62 = vld [vmem:[%s5948_s1 + $0xb8] sm:$0xff]   ;;  %v2768_v63 = vld [vmem:[%s5948_s1 + $0xb0] sm:$0xff]   ;;  %v2747_v8 = vld [vmem:[%s5948_s1 + $0x8] sm:$0xff]   ;;  %s3731_s7 = scalar_lea.vmem %s5947_s0, %s2649_s26  ;;  %s2557_s24 = sshll.u32 %s215_s22, 4  ;;  %s2558_s24 = int_to_ptr.vmem [resolvable:$true] %s2557_s24 }
  0x1a   : > { %2913 = vperm.xlu0 %2911, %v3578_v15   ;;  %v3596_v28 = vpack.i.bf16 %v2686_v25, %v2685_v24  ;;  %v2698_v33 = vunpack.c.h.bf16 %v2757_v30  ;;  %v2693_v34 = vunpack.c.l.bf16 %v2756_v31  ;;  %v2694_v35 = vunpack.c.h.bf16 %v2756_v31  ;;  %v2752_v16 = vld [vmem:[%s5948_s1 + $0x30] sm:$0xff]   ;;  %v2755_v19 = vld [vmem:[%s5948_s1 + $0x48] sm:$0xff]   ;;  %v2758_v25 = vld [vmem:[%s5948_s1 + $0x60] sm:$0xff]   ;;  %s2559_s26 = sshll.u32 %s2555_s21, 4  ;;  %s2542_s29 = scalar_lea.sflag [#allocation3], %s213_s10  ;;  %s2560_s26 = int_to_ptr.hbm [resolvable:$true] %s2559_s26 }
  0x1b   : > { %v3598_v29 = vpack.i.bf16 %v2682_v27, %v2681_v26  ;;  %v2709_v40 = vunpack.c.l.bf16 %v2760_v38  ;;  %v2710_v41 = vunpack.c.h.bf16 %v2760_v38  ;;  %v2705_v42 = vunpack.c.l.bf16 %v2759_v39  ;;  %s3406_s30 = sshra.s32 %s2560_s26, 4  ;;  %s3407_s30 = int_to_ptr.hbm [resolvable:$true] %s3406_s30 }
  0x1c   : > { %v3609_v36 = vpack.i.bf16 %v2698_v33, %v2697_v32  ;;  %v3611_v37 = vpack.i.bf16 %v2694_v35, %v2693_v34  ;;  %v2706_v43 = vunpack.c.h.bf16 %v2759_v39  ;;  %v2721_v48 = vunpack.c.l.bf16 %v2763_v46  ;;  %v2761_v32 = vld [vmem:[%s5948_s1 + $0x78] sm:$0xff]   ;;  %v2764_v39 = vld [vmem:[%s5948_s1 + $0x90] sm:$0xff]   ;;  %s3408_s5 = scalar_lea.hbm %s3407_s30, 8  ;;  %p3413_p1 = scmp.lt.s32.totalorder %s3407_s30, %s5951_s4 }
  0x1d   : > { %6000 = vst [vmem:[#allocation5_spill] sm:$0xff] %v3598_v29  ;;  %v3622_v44 = vpack.i.bf16 %v2710_v41, %v2709_v40  ;;  %v2722_v49 = vunpack.c.h.bf16 %v2763_v46  ;;  %v2717_v50 = vunpack.c.l.bf16 %v2762_v47  ;;  %v2718_v51 = vunpack.c.h.bf16 %v2762_v47  ;;  %v2767_v46 = vld [vmem:[%s5948_s1 + $0xa8] sm:$0xff]   ;;  %p3409_p12 = scmp.ne.s32.totalorder %s3407_s30, %s3408_s5 }
  0x1e   : > { %6001 = vst [vmem:[#allocation6_spill] sm:$0xff] %v3611_v37  ;;  %v3624_v45 = vpack.i.bf16 %v2706_v43, %v2705_v42  ;;  %v2733_v56 = vunpack.c.l.bf16 %v2766_v54  ;;  %v2734_v57 = vunpack.c.h.bf16 %v2766_v54  ;;  %v2729_v58 = vunpack.c.l.bf16 %v2765_v55 }
  0x1f   : > { %v3635_v52 = vpack.i.bf16 %v2722_v49, %v2721_v48  ;;  %v3637_v53 = vpack.i.bf16 %v2718_v51, %v2717_v50  ;;  %v2730_v59 = vunpack.c.h.bf16 %v2765_v55  ;;  %v2745_v0 = vunpack.c.l.bf16 %v2769_v62  ;;  %v3741_v51 = vld [vmem:[%s3731_s7] sm:$0xff]  ;;  %p3410_p13 = pnand %p3409_p12, %p3541_p4 }
  0x20   : > { %6002 = vst [vmem:[#allocation7_spill] sm:$0xff] %v3624_v45  ;;  %v3648_v60 = vpack.i.bf16 %v2734_v57, %v2733_v56  ;;  %v2746_v1 = vunpack.c.h.bf16 %v2769_v62  ;;  %v2741_v2 = vunpack.c.l.bf16 %v2768_v63  ;;  %v2742_v5 = vunpack.c.h.bf16 %v2768_v63 }
  0x21   : > { %2847 = vperm.xlu2 %2840, %v3583_v20   ;;  %2836 = vperm.xlu1 %2829, %v3585_v21   ;;  %6003 = vst [vmem:[#allocation8_spill] sm:$0xff] %v3635_v52  ;;  %v3650_v61 = vpack.i.bf16 %v2730_v59, %v2729_v58  ;;  %v2657_v9 = vunpack.c.l.bf16 %v2747_v8  ;;  %v2658_v10 = vunpack.c.h.bf16 %v2747_v8  ;;  %v3474_v12 = vmov 2   ;;  %p3411_p0 = pneg %p3410_p13 }
  0x22   : > { %2940 = vperm.xlu0 %2911, %v3583_v20   ;;  %6004 = vst [vmem:[#allocation9_spill] sm:$0xff] %v3637_v53  ;;  %v3661_v6 = vpack.i.bf16 %v2746_v1, %v2745_v0  ;;  %v3663_v7 = vpack.i.bf16 %v2742_v5, %v2741_v2  ;;  %v2678_v17 = vunpack.c.h.bf16 %v2752_v16  ;;  %v2689_v22 = vunpack.c.l.bf16 %v2755_v19 }
  0x23   : > { %6005 = vst [vmem:[#allocation10_spill] sm:$0xff] %v3648_v60  ;;  %v3671_v11 = vpack.i.bf16 %v2658_v10, %v2657_v9  ;;  %v2690_v23 = vunpack.c.h.bf16 %v2755_v19  ;;  %v2701_v27 = vunpack.c.l.bf16 %v2758_v25  ;;  %v2702_v30 = vunpack.c.h.bf16 %v2758_v25 }
  0x24   : > { %6006 = vst [vmem:[#allocation11_spill] sm:$0xff] %v3650_v61  ;;  %v2713_v34 = vunpack.c.l.bf16 %v2761_v32  ;;  %v2714_v35 = vunpack.c.h.bf16 %v2761_v32  ;;  %v2725_v41 = vunpack.c.l.bf16 %v2764_v39  ;;  %v2726_v42 = vunpack.c.h.bf16 %v2764_v39 }
  0x25   : > { %6007 = vst [vmem:[#allocation12_spill] sm:$0xff] %v3663_v7  ;;  %v3693_v24 = vpack.i.bf16 %v2690_v23, %v2689_v22  ;;  %v3703_v31 = vpack.i.bf16 %v2702_v30, %v2701_v27  ;;  %v2737_v49 = vunpack.c.l.bf16 %v2767_v46  ;;  %v2738_v50 = vunpack.c.h.bf16 %v2767_v46 }
  0x26   : > { %v3712_v38 = vpack.i.bf16 %v2714_v35, %v2713_v34  ;;  %v3723_v43 = vpack.i.bf16 %v2726_v42, %v2725_v41  ;;  %v565_v55 = vperm.slane %v3741_v51, 0  ;;  %v566_v56 = vperm.slane %v3741_v51, 4 }
  0x27   : > { %v3747_v57 = vpack.i.bf16 %v2738_v50, %v2737_v49  ;;  %v859_v58 = vperm.slane %v3741_v51, 1  ;;  %v860_v59 = vperm.slane %v3741_v51, 5  ;;  %v5952_v2 = vmov 3  }
  0x28   : > { %v3752_v62 = vperm.slane %v565_v55, 0  ;;  %v3754_v63 = vperm.slane %v566_v56, 0 }
  0x29   : > { %2857 = vperm.xlu2 %2840, %v3596_v28   ;;  %2852 = vperm.xlu1 %2829, %v3598_v29   ;;  %v3762_v9 = vperm.slane %v859_v58, 1  ;;  %v3764_v10 = vperm.slane %v860_v59, 1 }
  0x2a   : > { %2955 = vperm.xlu0 %2911, %v3596_v28  }
  0x31   : > { %2867 = vperm.xlu2 %2840, %v3609_v36   ;;  %2862 = vperm.xlu1 %2829, %v3611_v37  }
  0x32   : > { %2970 = vperm.xlu0 %2911, %v3609_v36  }
  0x39   : > { %2877 = vperm.xlu2 %2840, %v3622_v44   ;;  %2872 = vperm.xlu1 %2829, %v3624_v45  }
  0x3a   : > { %2985 = vperm.xlu0 %2911, %v3622_v44  }
  0x41   : > { %2887 = vperm.xlu2 %2840, %v3635_v52   ;;  %2882 = vperm.xlu1 %2829, %v3637_v53  }
  0x42   : > { %3000 = vperm.xlu0 %2911, %v3635_v52  }
  0x49   : > { %2897 = vperm.xlu2 %2840, %v3648_v60   ;;  %2892 = vperm.xlu1 %2829, %v3650_v61  }
  0x4a   : > { %3015 = vperm.xlu0 %2911, %v3648_v60  }
  0x51   : > { %2907 = vperm.xlu2 %2840, %v3661_v6   ;;  %2902 = vperm.xlu1 %2829, %v3663_v7  }
  0x52   : > { %3030 = vperm.xlu0 %2911, %v3661_v6  }
  0x59   : > { %2923 = vset.pattern.permute.xlu2 %v3472_v3  ;;  %2917 = vset.pattern.permute.xlu1 %v3472_v3  ;;  %v2677_v3 = vunpack.c.l.bf16 %v2752_v16 }
  0x5a   : > { %3046 = vset.pattern.permute.xlu0 %v3474_v12  ;;  %2925 = vperm.xlu2 %2923, %v3576_v14  }
  0x5b   : > { %2919 = vperm.xlu1 %2917, %v3671_v11   ;;  %3048 = vperm.xlu0 %3046, %v3576_v14   ;;  %v3685_v18 = vpack.i.bf16 %v2678_v17, %v2677_v3 }
  0x62   : > { %2935 = vperm.xlu2 %2923, %v3574_v13  }
  0x63   : > { %2930 = vperm.xlu1 %2917, %v3585_v21   ;;  %3073 = vperm.xlu0 %3046, %v3598_v29  }
  0x6a   : > { %2950 = vperm.xlu2 %2923, %v3598_v29  }
  0x6b   : > { %2945 = vperm.xlu1 %2917, %v3685_v18   ;;  %3088 = vperm.xlu0 %3046, %v3611_v37  }
  0x72   : > { %2965 = vperm.xlu2 %2923, %v3611_v37  }
  0x73   : > { %2960 = vperm.xlu1 %2917, %v3693_v24   ;;  %3103 = vperm.xlu0 %3046, %v3624_v45   ;;  %v3701_v26 = vpop.permute.xlu2 %2842 }
  0x7a   : > { %2980 = vperm.xlu2 %2923, %v3624_v45  }
  0x7b   : > { %2975 = vperm.xlu1 %2917, %v3703_v31   ;;  %3118 = vperm.xlu0 %3046, %v3637_v53   ;;  %v2848_v33 = vpop.permute.xlu2 %2847 }
  0x7c   : > { %v2850_v0 = vunpack.i.h.bf16 %v2848_v33  ;;  %v2849_v1 = vunpack.i.l.bf16 %v2848_v33 }
  0x7e   : > { %v591_v19 = vmul.f32 %v2849_v1, %v3752_v62  ;;  %v592_v22 = vmul.f32 %v2849_v1, %v3754_v63  ;;  %v593_v23 = vmul.f32 %v2850_v0, %v3752_v62  ;;  %v594_v25 = vmul.f32 %v2850_v0, %v3754_v63 }
  0x82   : > { %2995 = vperm.xlu2 %2923, %v3637_v53  }
  0x83   : > { %2990 = vperm.xlu1 %2917, %v3712_v38   ;;  %3133 = vperm.xlu0 %3046, %v3650_v61   ;;  %v3721_v40 = vpop.permute.xlu2 %2857 }
  0x84   : > { %v2860_v42 = vunpack.i.h.bf16 %v3721_v40  ;;  %v2859_v46 = vunpack.i.l.bf16 %v3721_v40 }
  0x86   : > { %v603_v59 = vmul.f32 %v2859_v46, %v3752_v62  ;;  %v604_v0 = vmul.f32 %v2859_v46, %v3754_v63  ;;  %v605_v40 = vmul.f32 %v2860_v42, %v3752_v62  ;;  %v2845_v46 = vunpack.i.h.bf16 %v3701_v26 }
  0x8a   : > { %3010 = vperm.xlu2 %2923, %v3650_v61  }
  0x8b   : > { %3005 = vperm.xlu1 %2917, %v3723_v43   ;;  %3148 = vperm.xlu0 %3046, %v3663_v7   ;;  %v3736_v47 = vpop.permute.xlu2 %2867  ;;  %v3738_v48 = vpop.permute.xlu1 %2831 }
  0x8c   : > { %v3743_v54 = vpop.permute.xlu0 %2913 }
  0x8d   : > { %6008 = vst [vmem:[#allocation13_spill] sm:$0xff] %v3743_v54 }
  0x92   : > { %3025 = vperm.xlu2 %2923, %v3663_v7  }
  0x93   : > { %3020 = vperm.xlu1 %2917, %v3747_v57   ;;  %3163 = vset.pattern.permute.xlu0 %v5952_v2  ;;  %v3758_v5 = vpop.permute.xlu2 %2877  ;;  %v3760_v8 = vpop.permute.xlu1 %2836 }
  0x94   : > { %3165 = vperm.xlu0 %3163, %v3671_v11   ;;  %v2941_v16 = vpop.permute.xlu0 %2940 }
  0x95   : > { %v2943_v3 = vunpack.i.h.bf16 %v2941_v16  ;;  %v2942_v17 = vunpack.i.l.bf16 %v2941_v16 }
  0x97   : > { %v885_v27 = vmul.f32 %v2942_v17, %v3762_v9  ;;  %v886_v30 = vmul.f32 %v2942_v17, %v3764_v10  ;;  %v887_v32 = vmul.f32 %v2943_v3, %v3762_v9  ;;  %v888_v33 = vmul.f32 %v2943_v3, %v3764_v10 }
  0x99   : > { %v3775_v34 = vadd.f32 %v885_v27, %v591_v19  ;;  %v3777_v35 = vadd.f32 %v886_v30, %v592_v22  ;;  %v3779_v39 = vadd.f32 %v887_v32, %v593_v23  ;;  %v3781_v41 = vadd.f32 %v888_v33, %v594_v25 }
  0x9a   : > { %3040 = vset.pattern.permute.xlu2 %v3474_v12  ;;  %v2870_v27 = vunpack.i.h.bf16 %v3736_v47  ;;  %v2869_v30 = vunpack.i.l.bf16 %v3736_v47 }
  0x9b   : > { %6009 = vst [vmem:[#allocation14_spill] sm:$0xff] %v3775_v34  ;;  %3034 = vset.pattern.permute.xlu1 %v3474_v12  ;;  %v3787_v49 = vpop.permute.xlu2 %2887  ;;  %v3789_v50 = vpop.permute.xlu1 %2852  ;;  %3042 = vperm.xlu2 %3040, %v3671_v11   ;;  %v606_v12 = vmul.f32 %v2860_v42, %v3754_v63 }
  0x9c   : > { %6010 = vst [vmem:[#allocation15_spill] sm:$0xff] %v3777_v35  ;;  %3036 = vperm.xlu1 %3034, %v3578_v15   ;;  %3191 = vperm.xlu0 %3163, %v3685_v18   ;;  %v2956_v55 = vpop.permute.xlu0 %2955  ;;  %v615_v47 = vmul.f32 %v2869_v30, %v3752_v62 }
  0x9d   : > { %6011 = vst [vmem:[#allocation16_spill] sm:$0xff] %v3779_v39  ;;  %v2958_v56 = vunpack.i.h.bf16 %v2956_v55  ;;  %v2957_v58 = vunpack.i.l.bf16 %v2956_v55  ;;  %v2844_v55 = vunpack.i.l.bf16 %v3701_v26 }
  0x9e   : > { %6012 = vst [vmem:[#allocation17_spill] sm:$0xff] %v3781_v41 }
  0x9f   : > { %v897_v1 = vmul.f32 %v2957_v58, %v3762_v9  ;;  %v898_v16 = vmul.f32 %v2957_v58, %v3764_v10  ;;  %v899_v3 = vmul.f32 %v2958_v56, %v3762_v9  ;;  %v900_v17 = vmul.f32 %v2958_v56, %v3764_v10 }
  0xa0   : > { %v3843_v41 = vmul.f32 %v2844_v55, %v3754_v63 }
  0xa1   : > { %v3802_v19 = vadd.f32 %v897_v1, %v603_v59  ;;  %v3804_v22 = vadd.f32 %v898_v16, %v604_v0  ;;  %v3806_v23 = vadd.f32 %v899_v3, %v605_v40  ;;  %v3808_v25 = vadd.f32 %v900_v17, %v606_v12 }
  0xa2   : > { %v2833_v59 = vunpack.i.l.bf16 %v3738_v48  ;;  %v616_v0 = vmul.f32 %v2869_v30, %v3754_v63  ;;  %v617_v40 = vmul.f32 %v2870_v27, %v3752_v62  ;;  %v618_v12 = vmul.f32 %v2870_v27, %v3754_v63 }
  0xa3   : > { %6013 = vst [vmem:[#allocation18_spill] sm:$0xff] %v3802_v19  ;;  %v3812_v32 = vpop.permute.xlu2 %2897  ;;  %v3814_v33 = vpop.permute.xlu1 %2862  ;;  %3058 = vperm.xlu2 %3040, %v3574_v13   ;;  %v2879_v17 = vunpack.i.l.bf16 %v3758_v5  ;;  %v3840_v27 = vmul.f32 %v2844_v55, %v3752_v62 }
  0xa4   : > { %6014 = vst [vmem:[#allocation19_spill] sm:$0xff] %v3804_v22  ;;  %3053 = vperm.xlu1 %3034, %v3585_v21   ;;  %3206 = vperm.xlu0 %3163, %v3693_v24   ;;  %v2971_v42 = vpop.permute.xlu0 %2970 }
  0xa5   : > { %6015 = vst [vmem:[#allocation20_spill] sm:$0xff] %v3806_v23  ;;  %v2973_v56 = vunpack.i.h.bf16 %v2971_v42  ;;  %v2972_v58 = vunpack.i.l.bf16 %v2971_v42 }
  0xa6   : > { %6016 = vst [vmem:[#allocation21_spill] sm:$0xff] %v3808_v25 }
  0xa7   : > { %v909_v1 = vmul.f32 %v2972_v58, %v3762_v9  ;;  %v910_v16 = vmul.f32 %v2972_v58, %v3764_v10  ;;  %v911_v3 = vmul.f32 %v2973_v56, %v3762_v9  ;;  %v912_v26 = vmul.f32 %v2973_v56, %v3764_v10 }
  0xa8   : > { %v2880_v58 = vunpack.i.h.bf16 %v3758_v5 }
  0xa9   : > { %v3831_v42 = vadd.f32 %v909_v1, %v615_v47  ;;  %v3833_v2 = vadd.f32 %v910_v16, %v616_v0  ;;  %v3835_v4 = vadd.f32 %v911_v3, %v617_v40  ;;  %v3837_v30 = vadd.f32 %v912_v26, %v618_v12 }
  0xaa   : > { %v3852_v47 = vmul.f32 %v2845_v46, %v3752_v62  ;;  %v3855_v0 = vmul.f32 %v2845_v46, %v3754_v63  ;;  %v2834_v40 = vunpack.i.h.bf16 %v3738_v48  ;;  %v579_v12 = vmul.f32 %v2833_v59, %v3752_v62 }
  0xab   : > { %6017 = vst [vmem:[#allocation22_spill] sm:$0xff] %v3831_v42  ;;  %v3846_v39 = vpop.permute.xlu2 %2907  ;;  %v3848_v56 = vpop.permute.xlu1 %2872  ;;  %3068 = vperm.xlu2 %3040, %v3685_v18   ;;  %v627_v16 = vmul.f32 %v2879_v17, %v3752_v62  ;;  %v628_v3 = vmul.f32 %v2879_v17, %v3754_v63  ;;  %v629_v46 = vmul.f32 %v2880_v58, %v3752_v62  ;;  %v2890_v48 = vunpack.i.h.bf16 %v3787_v49 }
  0xac   : > { %6018 = vst [vmem:[#allocation23_spill] sm:$0xff] %v3833_v2  ;;  %3063 = vperm.xlu1 %3034, %v3583_v20   ;;  %3221 = vperm.xlu0 %3163, %v3703_v31   ;;  %v2986_v5 = vpop.permute.xlu0 %2985  ;;  %v580_v17 = vmul.f32 %v2833_v59, %v3754_v63  ;;  %v581_v26 = vmul.f32 %v2834_v40, %v3752_v62 }
  0xad   : > { %6019 = vst [vmem:[#allocation24_spill] sm:$0xff] %v3835_v4  ;;  %v2988_v55 = vunpack.i.h.bf16 %v2986_v5  ;;  %v2987_v1 = vunpack.i.l.bf16 %v2986_v5  ;;  %v2889_v4 = vunpack.i.l.bf16 %v3787_v49  ;;  %v582_v19 = vmul.f32 %v2834_v40, %v3754_v63 }
  0xae   : > { %6020 = vst [vmem:[#allocation25_spill] sm:$0xff] %v3837_v30  ;;  %v630_v30 = vmul.f32 %v2880_v58, %v3754_v63  ;;  %v2854_v58 = vunpack.i.l.bf16 %v3789_v50 }
  0xaf   : > { %v921_v2 = vmul.f32 %v2987_v1, %v3762_v9  ;;  %v922_v42 = vmul.f32 %v2987_v1, %v3764_v10  ;;  %v923_v5 = vmul.f32 %v2988_v55, %v3762_v9  ;;  %v924_v22 = vmul.f32 %v2988_v55, %v3764_v10 }
  0xb0   : > { %v6025_v1 = vunpack.i.l.bf16 %v3760_v8  ;;  %v639_v40 = vmul.f32 %v2889_v4, %v3752_v62 }
  0xb1   : > { %v3876_v25 = vadd.f32 %v921_v2, %v627_v16  ;;  %v3878_v23 = vadd.f32 %v922_v42, %v628_v3  ;;  %v3880_v49 = vadd.f32 %v923_v5, %v629_v46  ;;  %v3882_v35 = vadd.f32 %v924_v22, %v630_v30 }
  0xb2   : > { %v3887_v55 = vmul.f32 %v6025_v1, %v3752_v62  ;;  %v640_v2 = vmul.f32 %v2889_v4, %v3754_v63  ;;  %v641_v42 = vmul.f32 %v2890_v48, %v3752_v62  ;;  %v2900_v4 = vunpack.i.h.bf16 %v3812_v32 }
  0xb3   : > { %6021 = vst [vmem:[#allocation26_spill] sm:$0xff] %v3876_v25  ;;  %v3889_v59 = vpop.permute.xlu1 %2882  ;;  %3083 = vperm.xlu2 %3040, %v3693_v24  }
  0xb4   : > { %6022 = vst [vmem:[#allocation27_spill] sm:$0xff] %v3878_v23  ;;  %3078 = vperm.xlu1 %3034, %v3596_v28   ;;  %3236 = vperm.xlu0 %3163, %v3712_v38   ;;  %v3001_v22 = vpop.permute.xlu0 %3000  ;;  %v2926_v30 = vpop.permute.xlu2 %2925  ;;  %v2899_v23 = vunpack.i.l.bf16 %v3812_v32 }
  0xb5   : > { %6023 = vst [vmem:[#allocation28_spill] sm:$0xff] %v3880_v49  ;;  %v3003_v3 = vunpack.i.h.bf16 %v3001_v22  ;;  %v3002_v46 = vunpack.i.l.bf16 %v3001_v22  ;;  %v2928_v5 = vunpack.i.h.bf16 %v2926_v30  ;;  %v2927_v1 = vunpack.i.l.bf16 %v2926_v30 }
  0xb6   : > { %6024 = vst [vmem:[#allocation29_spill] sm:$0xff] %v3882_v35  ;;  %v642_v35 = vmul.f32 %v2890_v48, %v3754_v63  ;;  %v3900_v49 = vmul.f32 %v2854_v58, %v3752_v62 }
  0xb7   : > { %v933_v16 = vmul.f32 %v3002_v46, %v3762_v9  ;;  %v934_v25 = vmul.f32 %v3002_v46, %v3764_v10  ;;  %v935_v34 = vmul.f32 %v3003_v3, %v3762_v9  ;;  %v936_v7 = vmul.f32 %v3003_v3, %v3764_v10 }
  0xb8   : > { %v873_v22 = vmul.f32 %v2927_v1, %v3762_v9  ;;  %v874_v30 = vmul.f32 %v2927_v1, %v3764_v10  ;;  %v875_v48 = vmul.f32 %v2928_v5, %v3762_v9  ;;  %v876_v54 = vmul.f32 %v2928_v5, %v3764_v10 }
  0xb9   : > { %v3912_v61 = vadd.f32 %v933_v16, %v639_v40  ;;  %v3914_v53 = vadd.f32 %v934_v25, %v640_v2  ;;  %v3916_v32 = vadd.f32 %v935_v34, %v641_v42  ;;  %v3918_v45 = vadd.f32 %v936_v7, %v642_v35 }
  0xba   : > { %v3920_v46 = vadd.f32 %v873_v22, %v579_v12  ;;  %v3922_v37 = vadd.f32 %v874_v30, %v580_v17  ;;  %v3924_v3 = vadd.f32 %v875_v48, %v581_v26  ;;  %v3926_v29 = vadd.f32 %v876_v54, %v582_v19 }
  0xbb   : > { %6026 = vst [vmem:[#allocation30_spill] sm:$0xff] %v3912_v61  ;;  %v3929_v1 = vmul.f32 %v2854_v58, %v3754_v63  ;;  %v6030_v40 = vunpack.i.h.bf16 %v3789_v50  ;;  %v3936_v34 = vpop.permute.xlu1 %2892  ;;  %3098 = vperm.xlu2 %3040, %v3703_v31   ;;  %v651_v35 = vmul.f32 %v2899_v23, %v3752_v62  ;;  %v652_v12 = vmul.f32 %v2899_v23, %v3754_v63 }
  0xbc   : > { %6027 = vst [vmem:[#allocation31_spill] sm:$0xff] %v3914_v53  ;;  %3093 = vperm.xlu1 %3034, %v3609_v36   ;;  %3251 = vperm.xlu0 %3163, %v3723_v43   ;;  %v3016_v54 = vpop.permute.xlu0 %3015  ;;  %v2936_v19 = vpop.permute.xlu2 %2935  ;;  %v653_v42 = vmul.f32 %v2900_v4, %v3752_v62  ;;  %v654_v16 = vmul.f32 %v2900_v4, %v3754_v63  ;;  %v2910_v5 = vunpack.i.h.bf16 %v3846_v39  ;;  %v2909_v22 = vunpack.i.l.bf16 %v3846_v39 }
  0xbd   : > { %6028 = vst [vmem:[#allocation32_spill] sm:$0xff] %v3916_v32  ;;  %v3934_v25 = vmul.f32 %v6030_v40, %v3752_v62  ;;  %v3018_v26 = vunpack.i.h.bf16 %v3016_v54  ;;  %v3017_v17 = vunpack.i.l.bf16 %v3016_v54  ;;  %v2938_v58 = vunpack.i.h.bf16 %v2936_v19 }
  0xbe   : > { %6029 = vst [vmem:[#allocation33_spill] sm:$0xff] %v3918_v45  ;;  %v2937_v2 = vunpack.i.l.bf16 %v2936_v19 }
  0xbf   : > { %v945_v23 = vmul.f32 %v3017_v17, %v3762_v9  ;;  %v946_v30 = vmul.f32 %v3017_v17, %v3764_v10  ;;  %v947_v48 = vmul.f32 %v3018_v26, %v3762_v9  ;;  %v948_v40 = vmul.f32 %v3018_v26, %v3764_v10 }
  0xc0   : > { %v881_v54 = vmul.f32 %v2937_v2, %v3762_v9  ;;  %v882_v19 = vmul.f32 %v2937_v2, %v3764_v10  ;;  %v883_v7 = vmul.f32 %v2938_v58, %v3762_v9  ;;  %v884_v4 = vmul.f32 %v2938_v58, %v3764_v10 }
  0xc1   : > { %v3956_v45 = vadd.f32 %v945_v23, %v651_v35  ;;  %v3958_v32 = vadd.f32 %v946_v30, %v652_v12  ;;  %v3960_v39 = vadd.f32 %v947_v48, %v653_v42  ;;  %v3962_v53 = vadd.f32 %v948_v40, %v654_v16 }
  0xc2   : > { %v3965_v17 = vadd.f32 %v881_v54, %v3840_v27  ;;  %v3968_v26 = vadd.f32 %v882_v19, %v3843_v41  ;;  %v3971_v2 = vadd.f32 %v883_v7, %v3852_v47  ;;  %v3974_v61 = vadd.f32 %v884_v4, %v3855_v0 }
  0xc3   : > { %6031 = vst [vmem:[#allocation34_spill] sm:$0xff] %v3956_v45  ;;  %v6036_v35 = vunpack.i.h.bf16 %v3789_v50  ;;  %v2865_v58 = vunpack.i.h.bf16 %v3814_v33  ;;  %v2864_v42 = vunpack.i.l.bf16 %v3814_v33  ;;  %v3981_v16 = vpop.permute.xlu1 %2902  ;;  %3113 = vperm.xlu2 %3040, %v3712_v38   ;;  %v663_v41 = vmul.f32 %v2909_v22, %v3752_v62 }
  0xc4   : > { %6032 = vst [vmem:[#allocation35_spill] sm:$0xff] %v3958_v32  ;;  %3108 = vperm.xlu1 %3034, %v3622_v44   ;;  %3266 = vperm.xlu0 %3163, %v3747_v57   ;;  %v3031_v27 = vpop.permute.xlu0 %3030  ;;  %v2951_v47 = vpop.permute.xlu2 %2950  ;;  %v1249_v0 = vperm.slane %v3741_v51, 2  ;;  %v664_v33 = vmul.f32 %v2909_v22, %v3754_v63  ;;  %v665_v48 = vmul.f32 %v2910_v5, %v3752_v62  ;;  %v1250_v54 = vperm.slane %v3741_v51, 6 }
  0xc5   : > { %6033 = vst [vmem:[#allocation36_spill] sm:$0xff] %v3960_v39  ;;  %v602_v12 = vmul.f32 %v6036_v35, %v3754_v63  ;;  %v3033_v50 = vunpack.i.h.bf16 %v3031_v27  ;;  %v3032_v7 = vunpack.i.l.bf16 %v3031_v27  ;;  %v2953_v23 = vunpack.i.h.bf16 %v2951_v47 }
  0xc6   : > { %6034 = vst [vmem:[#allocation37_spill] sm:$0xff] %v3962_v53  ;;  %v2952_v30 = vunpack.i.l.bf16 %v2951_v47  ;;  %v666_v40 = vmul.f32 %v2910_v5, %v3754_v63 }
  0xc7   : > { %6035 = vst [vmem:[#allocation38_spill] sm:$0xff] %v3968_v26  ;;  %v957_v19 = vmul.f32 %v3032_v7, %v3762_v9  ;;  %v958_v4 = vmul.f32 %v3032_v7, %v3764_v10  ;;  %v959_v35 = vmul.f32 %v3033_v50, %v3762_v9  ;;  %v960_v53 = vmul.f32 %v3033_v50, %v3764_v10 }
  0xc8   : > { %v893_v27 = vmul.f32 %v2952_v30, %v3762_v9  ;;  %v894_v47 = vmul.f32 %v2952_v30, %v3764_v10  ;;  %v895_v22 = vmul.f32 %v2953_v23, %v3762_v9  ;;  %v896_v39 = vmul.f32 %v2953_v23, %v3764_v10 }
  0xc9   : > { %v4000_v32 = vadd.f32 %v957_v19, %v663_v41  ;;  %v4002_v5 = vadd.f32 %v958_v4, %v664_v33  ;;  %v4004_v51 = vadd.f32 %v959_v35, %v665_v48  ;;  %v4006_v45 = vadd.f32 %v960_v53, %v666_v40 }
  0xca   : > { %v4009_v7 = vadd.f32 %v893_v27, %v3900_v49  ;;  %v4012_v50 = vadd.f32 %v894_v47, %v3929_v1  ;;  %v4015_v30 = vadd.f32 %v895_v22, %v3934_v25  ;;  %v4017_v26 = vadd.f32 %v896_v39, %v602_v12 }
  0xcb   : > { %6037 = vst [vmem:[#allocation39_spill] sm:$0xff] %v4000_v32  ;;  %v6041_v41 = vunpack.i.l.bf16 %v3760_v8  ;;  %v6042_v53 = vunpack.i.h.bf16 %v3760_v8  ;;  %v611_v25 = vmul.f32 %v2864_v42, %v3752_v62  ;;  %3128 = vperm.xlu2 %3040, %v3723_v43   ;;  %v612_v39 = vmul.f32 %v2864_v42, %v3754_v63 }
  0xcc   : > { %6038 = vst [vmem:[#allocation40_spill] sm:$0xff] %v4002_v5  ;;  %v613_v12 = vmul.f32 %v2865_v58, %v3752_v62  ;;  %v614_v48 = vmul.f32 %v2865_v58, %v3754_v63  ;;  %v2874_v40 = vunpack.i.l.bf16 %v3848_v56  ;;  %3123 = vperm.xlu1 %3034, %v3635_v52   ;;  %v6044_v19 = vmov 0   ;;  %v2966_v4 = vpop.permute.xlu2 %2965 }
  0xcd   : > { %6039 = vst [vmem:[#allocation41_spill] sm:$0xff] %v4004_v51  ;;  %v4022_v23 = vmul.f32 %v6041_v41, %v3754_v63  ;;  %v4027_v33 = vmul.f32 %v6042_v53, %v3752_v62  ;;  %v6043_v49 = vmov %v6042_v53  ;;  %3270 = vset.pattern.permute.xlu0 %v6044_v19  ;;  %v2875_v8 = vunpack.i.h.bf16 %v3848_v56  ;;  %v4043_v47 = vpop.permute.xlu1 %2919  ;;  %v3049_v42 = vpop.permute.xlu0 %3048 }
  0xce   : > { %6040 = vst [vmem:[#allocation42_spill] sm:$0xff] %v4006_v45  ;;  %v4032_v1 = vmul.f32 %v6043_v49, %v3754_v63  ;;  %v2968_v35 = vunpack.i.h.bf16 %v2966_v4  ;;  %v2967_v27 = vunpack.i.l.bf16 %v2966_v4  ;;  %3272 = vperm.xlu0 %3270, %v3578_v15   ;;  %v4046_v22 = vperm.slane %v1249_v0, 2 }
  0xcf   : > { %6045 = vst [vmem:[#allocation43_spill] sm:$0xff] %v4043_v47  ;;  %v3051_v41 = vunpack.i.h.bf16 %v3049_v42  ;;  %v3050_v58 = vunpack.i.l.bf16 %v3049_v42  ;;  %v4048_v53 = vperm.slane %v1250_v54, 2  ;;  %v623_v4 = vmul.f32 %v2874_v40, %v3752_v62 }
  0xd0   : > { %v905_v49 = vmul.f32 %v2967_v27, %v3762_v9  ;;  %v906_v45 = vmul.f32 %v2967_v27, %v3764_v10  ;;  %v907_v51 = vmul.f32 %v2968_v35, %v3762_v9  ;;  %v908_v56 = vmul.f32 %v2968_v35, %v3764_v10 }
  0xd1   : > { %v624_v5 = vmul.f32 %v2874_v40, %v3754_v63  ;;  %v1263_v42 = vmul.f32 %v3050_v58, %v4046_v22  ;;  %v1264_v27 = vmul.f32 %v3050_v58, %v4048_v53  ;;  %v1265_v47 = vmul.f32 %v3051_v41, %v4046_v22 }
  0xd2   : > { %v4056_v32 = vadd.f32 %v905_v49, %v611_v25  ;;  %v4058_v0 = vadd.f32 %v906_v45, %v612_v39  ;;  %v4060_v19 = vadd.f32 %v907_v51, %v613_v12  ;;  %v4062_v54 = vadd.f32 %v908_v56, %v614_v48 }
  0xd3   : > { %v1266_v35 = vmul.f32 %v3051_v41, %v4048_v53  ;;  %v625_v52 = vmul.f32 %v2875_v8, %v3752_v62  ;;  %v626_v40 = vmul.f32 %v2875_v8, %v3754_v63  ;;  %v2885_v25 = vunpack.i.h.bf16 %v3889_v59  ;;  %3143 = vperm.xlu2 %3040, %v3747_v57  }
  0xd4   : > { %v2884_v45 = vunpack.i.l.bf16 %v3889_v59  ;;  %3138 = vperm.xlu1 %3034, %v3648_v60   ;;  %v2981_v51 = vpop.permute.xlu2 %2980  ;;  %v4075_v39 = vadd.f32 %v1263_v42, %v3920_v46  ;;  %v4078_v12 = vadd.f32 %v1264_v27, %v3922_v37  ;;  %v4081_v48 = vadd.f32 %v1265_v47, %v3924_v3 }
  0xd5   : > { %v4084_v8 = vadd.f32 %v1266_v35, %v3926_v29  ;;  %v2983_v41 = vunpack.i.h.bf16 %v2981_v51  ;;  %v2982_v58 = vunpack.i.l.bf16 %v2981_v51  ;;  %v2931_v59 = vpop.permute.xlu1 %2930  ;;  %v4087_v49 = vpop.permute.xlu0 %3073 }
  0xd6   : > { %6046 = vst [vmem:[#allocation44_spill] sm:$0xff] %v4075_v39  ;;  %3277 = vperm.xlu0 %3270, %v3671_v11   ;;  %v2933_v56 = vunpack.i.h.bf16 %v2931_v59  ;;  %v2932_v60 = vunpack.i.l.bf16 %v2931_v59  ;;  %v3076_v46 = vunpack.i.h.bf16 %v4087_v49 }
  0xd7   : > { %6047 = vst [vmem:[#allocation45_spill] sm:$0xff] %v4078_v12  ;;  %v917_v37 = vmul.f32 %v2982_v58, %v3762_v9  ;;  %v918_v42 = vmul.f32 %v2982_v58, %v3764_v10  ;;  %v919_v3 = vmul.f32 %v2983_v41, %v3762_v9  ;;  %v920_v29 = vmul.f32 %v2983_v41, %v3764_v10 }
  0xd8   : > { %6048 = vst [vmem:[#allocation46_spill] sm:$0xff] %v4081_v48  ;;  %v877_v47 = vmul.f32 %v2932_v60, %v3762_v9  ;;  %v878_v27 = vmul.f32 %v2932_v60, %v3764_v10  ;;  %v879_v11 = vmul.f32 %v2933_v56, %v3762_v9  ;;  %v880_v35 = vmul.f32 %v2933_v56, %v3764_v10 }
  0xd9   : > { %6049 = vst [vmem:[#allocation47_spill] sm:$0xff] %v4084_v8  ;;  %v4098_v51 = vadd.f32 %v917_v37, %v623_v4  ;;  %v4100_v59 = vadd.f32 %v918_v42, %v624_v5  ;;  %v4102_v8 = vadd.f32 %v919_v3, %v625_v52  ;;  %v4104_v48 = vadd.f32 %v920_v29, %v626_v40 }
  0xda   : > { %v4107_v58 = vadd.f32 %v877_v47, %v3887_v55  ;;  %v4110_v41 = vadd.f32 %v878_v27, %v4022_v23  ;;  %v4113_v60 = vadd.f32 %v879_v11, %v4027_v33  ;;  %v4116_v12 = vadd.f32 %v880_v35, %v4032_v1 }
  0xdb   : > { %v6051_v4 = vmov 3   ;;  %v635_v5 = vmul.f32 %v2884_v45, %v3752_v62  ;;  %v636_v52 = vmul.f32 %v2884_v45, %v3754_v63  ;;  %v637_v40 = vmul.f32 %v2885_v25, %v3752_v62 }
  0xdc   : > { %6050 = vst [vmem:[#allocation48_spill] sm:$0xff] %v4110_v41  ;;  %3157 = vset.pattern.permute.xlu2 %v6051_v4  ;;  %3153 = vperm.xlu1 %3034, %v3661_v6   ;;  %v2996_v55 = vpop.permute.xlu2 %2995  ;;  %v638_v23 = vmul.f32 %v2885_v25, %v3754_v63  ;;  %v2895_v33 = vunpack.i.h.bf16 %v3936_v34  ;;  %v2894_v45 = vunpack.i.l.bf16 %v3936_v34  ;;  %v1285_v3 = vmul.f32 %v3076_v46, %v4046_v22 }
  0xdd   : > { %3159 = vperm.xlu2 %3157, %v3578_v15   ;;  %v2998_v56 = vunpack.i.h.bf16 %v2996_v55  ;;  %v2997_v1 = vunpack.i.l.bf16 %v2996_v55  ;;  %v4126_v37 = vpop.permute.xlu1 %2945  ;;  %v3089_v42 = vpop.permute.xlu0 %3088  ;;  %v1286_v35 = vmul.f32 %v3076_v46, %v4048_v53 }
  0xde   : > { %6052 = vst [vmem:[#allocation49_spill] sm:$0xff] %v4126_v37  ;;  %3282 = vperm.xlu0 %3270, %v3685_v18   ;;  %v3091_v29 = vunpack.i.h.bf16 %v3089_v42  ;;  %v3090_v47 = vunpack.i.l.bf16 %v3089_v42  ;;  %v648_v46 = vmul.f32 %v2894_v45, %v3754_v63 }
  0xdf   : > { %v929_v27 = vmul.f32 %v2997_v1, %v3762_v9  ;;  %v930_v15 = vmul.f32 %v2997_v1, %v3764_v10  ;;  %v931_v25 = vmul.f32 %v2998_v56, %v3762_v9  ;;  %v932_v11 = vmul.f32 %v2998_v56, %v3764_v10 }
  0xe0   : > { %v1295_v42 = vmul.f32 %v3090_v47, %v4046_v22  ;;  %v1296_v37 = vmul.f32 %v3090_v47, %v4048_v53  ;;  %v1297_v1 = vmul.f32 %v3091_v29, %v4046_v22  ;;  %v1298_v41 = vmul.f32 %v3091_v29, %v4048_v53 }
  0xe1   : > { %v4136_v55 = vadd.f32 %v929_v27, %v635_v5  ;;  %v4138_v18 = vadd.f32 %v930_v15, %v636_v52  ;;  %v4140_v39 = vadd.f32 %v931_v25, %v637_v40  ;;  %v4142_v34 = vadd.f32 %v932_v11, %v638_v23 }
  0xe2   : > { %v647_v56 = vmul.f32 %v2894_v45, %v3752_v62  ;;  %v4151_v5 = vadd.f32 %v1285_v3, %v4015_v30  ;;  %v4156_v40 = vadd.f32 %v1297_v1, %v4060_v19  ;;  %v4159_v23 = vadd.f32 %v1298_v41, %v4062_v54 }
  0xe3   : > { %v4162_v29 = vadd.f32 %v1295_v42, %v4056_v32  ;;  %v4172_v19 = vadd.f32 %v1286_v35, %v4017_v26  ;;  %v649_v54 = vmul.f32 %v2895_v33, %v3752_v62  ;;  %v650_v32 = vmul.f32 %v2895_v33, %v3754_v63 }
  0xe4   : > { %6053 = vst [vmem:[#allocation50_spill] sm:$0xff] %v4151_v5  ;;  %3169 = vset.pattern.permute.xlu1 %v6051_v4  ;;  %v3011_v52 = vpop.permute.xlu2 %3010  ;;  %v2905_v41 = vunpack.i.h.bf16 %v3981_v16  ;;  %v3075_v11 = vunpack.i.l.bf16 %v4087_v49 }
  0xe5   : > { %3176 = vperm.xlu2 %3157, %v3585_v21   ;;  %6054 = vst [vmem:[#allocation51_spill] sm:$0xff] %v4156_v40  ;;  %v3013_v47 = vunpack.i.h.bf16 %v3011_v52  ;;  %v3012_v27 = vunpack.i.l.bf16 %v3011_v52  ;;  %v4164_v45 = vpop.permute.xlu1 %2960  ;;  %3171 = vperm.xlu1 %3169, %v3576_v14   ;;  %v3104_v30 = vpop.permute.xlu0 %3103  ;;  %v4169_v21 = vadd.f32 %v1296_v37, %v4058_v0  ;;  %v2904_v0 = vunpack.i.l.bf16 %v3981_v16  ;;  %v6079_v40 = vld [vmem:[#allocation48_spill] sm:$0xff] }
  0xe6   : > { %6055 = vst [vmem:[#allocation52_spill] sm:$0xff] %v4159_v23  ;;  %3287 = vperm.xlu0 %3270, %v3693_v24   ;;  %v3106_v4 = vunpack.i.h.bf16 %v3104_v30  ;;  %v3105_v35 = vunpack.i.l.bf16 %v3104_v30 }
  0xe7   : > { %6056 = vst [vmem:[#allocation53_spill] sm:$0xff] %v4162_v29  ;;  %v941_v3 = vmul.f32 %v3012_v27, %v3762_v9  ;;  %v942_v14 = vmul.f32 %v3012_v27, %v3764_v10  ;;  %v943_v24 = vmul.f32 %v3013_v47, %v3762_v9  ;;  %v944_v15 = vmul.f32 %v3013_v47, %v3764_v10 }
  0xe8   : > { %6057 = vst [vmem:[#allocation54_spill] sm:$0xff] %v4169_v21  ;;  %v1309_v42 = vmul.f32 %v3106_v4, %v4046_v22  ;;  %v1310_v1 = vmul.f32 %v3106_v4, %v4048_v53  ;;  %v659_v52 = vmul.f32 %v2904_v0, %v3752_v62  ;;  %v660_v47 = vmul.f32 %v2904_v0, %v3754_v63  ;;  %v6078_v21 = vld [vmem:[#allocation43_spill] sm:$0xff] }
  0xe9   : > { %6058 = vst [vmem:[#allocation55_spill] sm:$0xff] %v4172_v19  ;;  %v4182_v37 = vadd.f32 %v941_v3, %v647_v56  ;;  %v4184_v26 = vadd.f32 %v942_v14, %v648_v46  ;;  %v4186_v25 = vadd.f32 %v943_v24, %v649_v54  ;;  %v4188_v33 = vadd.f32 %v944_v15, %v650_v32 }
  0xea   : > { %v4197_v56 = vadd.f32 %v1309_v42, %v4102_v8  ;;  %v661_v46 = vmul.f32 %v2905_v41, %v3752_v62  ;;  %v4207_v32 = vadd.f32 %v1310_v1, %v4104_v48  ;;  %v1283_v8 = vmul.f32 %v3075_v11, %v4046_v22 }
  0xeb   : > { %v1307_v4 = vmul.f32 %v3105_v35, %v4046_v22  ;;  %v1308_v3 = vmul.f32 %v3105_v35, %v4048_v53  ;;  %v1284_v15 = vmul.f32 %v3075_v11, %v4048_v53 }
  0xec   : > { %v3026_v16 = vpop.permute.xlu2 %3025  ;;  %6059 = vst [vmem:[#allocation56_spill] sm:$0xff] %v4197_v56 }
  0xed   : > { %3186 = vperm.xlu2 %3157, %v3583_v20   ;;  %v3028_v27 = vunpack.i.h.bf16 %v3026_v16  ;;  %v3027_v54 = vunpack.i.l.bf16 %v3026_v16  ;;  %v4200_v49 = vpop.permute.xlu1 %2975  ;;  %3181 = vperm.xlu1 %3169, %v3574_v13   ;;  %v4204_v30 = vpop.permute.xlu0 %3118  ;;  %6060 = vst [vmem:[#allocation57_spill] sm:$0xff] %v4207_v32  ;;  %v662_v20 = vmul.f32 %v2905_v41, %v3754_v63  ;;  %v4227_v35 = vadd.f32 %v1307_v4, %v4098_v51 }
  0xee   : > { %3292 = vperm.xlu0 %3270, %v3703_v31   ;;  %v4230_v1 = vadd.f32 %v1308_v3, %v4100_v59  ;;  %v4234_v16 = vadd.f32 %v1283_v8, %v4009_v7  ;;  %v4237_v11 = vadd.f32 %v1284_v15, %v4012_v50 }
  0xef   : > { %v953_v14 = vmul.f32 %v3027_v54, %v3762_v9  ;;  %v954_v24 = vmul.f32 %v3027_v54, %v3764_v10  ;;  %v955_v13 = vmul.f32 %v3028_v27, %v3762_v9  ;;  %v956_v31 = vmul.f32 %v3028_v27, %v3764_v10  ;;  %6061 = vst [vmem:[#allocation58_spill] sm:$0xff] %v4227_v35 }
  0xf0   : > { %6062 = vst [vmem:[#allocation59_spill] sm:$0xff] %v4230_v1 }
  0xf1   : > { %v4218_v48 = vadd.f32 %v953_v14, %v659_v52  ;;  %v4220_v0 = vadd.f32 %v954_v24, %v660_v47  ;;  %v4222_v41 = vadd.f32 %v955_v13, %v661_v46  ;;  %v4224_v42 = vadd.f32 %v956_v31, %v662_v20  ;;  %6063 = vst [vmem:[#allocation60_spill] sm:$0xff] %v4234_v16  ;;  %v6065_v47 = vld [vmem:[#allocation5_spill] sm:$0xff]  ;;  %v6070_v14 = vld [vmem:[#allocation38_spill] sm:$0xff]  ;;  %v6072_v31 = vld [vmem:[#allocation7_spill] sm:$0xff] }
  0xf2   : > { %6064 = vst [vmem:[#allocation61_spill] sm:$0xff] %v4237_v11 }
  0xf5   : > { %3201 = vperm.xlu2 %3157, %v3596_v28   ;;  %v4239_v52 = vpop.permute.xlu1 %2990  ;;  %3196 = vperm.xlu1 %3169, %v6065_v47   ;;  %v4243_v46 = vpop.permute.xlu0 %3133  ;;  %v6066_v28 = vld [vmem:[#allocation6_spill] sm:$0xff] }
  0xf6   : > { %3297 = vperm.xlu0 %3270, %v3712_v38   ;;  %v4245_v51 = vpop.permute.xlu2 %3042 }
  0xfd   : > { %3216 = vperm.xlu2 %3157, %v3609_v36   ;;  %v4248_v59 = vpop.permute.xlu1 %3005  ;;  %3211 = vperm.xlu1 %3169, %v6066_v28   ;;  %v3149_v7 = vpop.permute.xlu0 %3148 }
  0xfe   : > { %3302 = vperm.xlu0 %3270, %v3723_v43   ;;  %v3059_v50 = vpop.permute.xlu2 %3058 }
  0xff   : > { %v3061_v27 = vunpack.i.h.bf16 %v3059_v50  ;;  %v3060_v54 = vunpack.i.l.bf16 %v3059_v50 }
 0x101   : > { %v1271_v20 = vmul.f32 %v3060_v54, %v4046_v22  ;;  %v1272_v38 = vmul.f32 %v3060_v54, %v4048_v53  ;;  %v1273_v8 = vmul.f32 %v3061_v27, %v4046_v22  ;;  %v1274_v4 = vmul.f32 %v3061_v27, %v4048_v53 }
 0x102   : > { %v3120_v27 = vunpack.i.l.bf16 %v4204_v30  ;;  %v3121_v54 = vunpack.i.h.bf16 %v4204_v30 }
 0x103   : > { %v4258_v36 = vadd.f32 %v1273_v8, %v3971_v2  ;;  %v4261_v3 = vadd.f32 %v1274_v4, %v3974_v61  ;;  %v4264_v43 = vadd.f32 %v1271_v20, %v3965_v17  ;;  %v4267_v24 = vadd.f32 %v1272_v38, %v6070_v14  ;;  %v1837_v61 = vld [vmem:[%s5949_s2] sm:$0xff]  ;;  %v6073_v2 = vld [vmem:[#allocation8_spill] sm:$0xff]  ;;  %v6074_v17 = vld [vmem:[#allocation9_spill] sm:$0xff] }
 0x104   : > { %v6075_v20 = vld [vmem:[#allocation10_spill] sm:$0xff]  ;;  %v3151_v38 = vunpack.i.h.bf16 %v3149_v7  ;;  %v3150_v8 = vunpack.i.l.bf16 %v3149_v7  ;;  %v6076_v4 = vld [vmem:[#allocation11_spill] sm:$0xff]  ;;  %v1321_v30 = vmul.f32 %v3121_v54, %v4046_v22  ;;  %v1320_v29 = vmul.f32 %v3120_v27, %v4048_v53 }
 0x105   : > { %3231 = vperm.xlu2 %3157, %v3622_v44   ;;  %6067 = vst [vmem:[#allocation5_spill] sm:$0xff] %v4258_v36  ;;  %v4269_v13 = vpop.permute.xlu1 %3020  ;;  %3226 = vperm.xlu1 %3169, %v6072_v31  }
 0x106   : > { %6068 = vst [vmem:[#allocation6_spill] sm:$0xff] %v4261_v3  ;;  %3307 = vperm.xlu0 %3270, %v3747_v57   ;;  %v4273_v15 = vpop.permute.xlu2 %3068  ;;  %v4275_v44 = vpop.permute.xlu0 %3165  ;;  %v1854_v57 = vld [vmem:[%s5949_s2 + $0x88] sm:$0xff]  ;;  %v1343_v7 = vmul.f32 %v3150_v8, %v4046_v22  ;;  %v1346_v1 = vmul.f32 %v3151_v38, %v4048_v53 }
 0x107   : > { %6069 = vst [vmem:[#allocation62_spill] sm:$0xff] %v4264_v43  ;;  %v6080_v43 = vld [vmem:[#allocation12_spill] sm:$0xff] }
 0x108   : > { %6071 = vst [vmem:[#allocation38_spill] sm:$0xff] %v4267_v24 }
 0x10d   : > { %3246 = vperm.xlu2 %3157, %v6073_v2   ;;  %3241 = vperm.xlu1 %3169, %v6074_v17   ;;  %v1319_v17 = vmul.f32 %v3120_v27, %v4046_v22 }
 0x10e   : > { %1887 = vperm.xlu0 %3270, %v1837_v61   ;;  %v4282_v47 = vpop.permute.xlu2 %3083  ;;  %v4284_v28 = vpop.permute.xlu1 %3036  ;;  %v6077_v61 = vld [vmem:[#allocation13_spill] sm:$0xff] }
 0x10f   : > { %v4286_v50 = vpop.permute.xlu0 %3191  ;;  %v2916_v2 = vunpack.i.h.bf16 %v6077_v61  ;;  %v2915_v5 = vunpack.i.l.bf16 %v6077_v61  ;;  %v3135_v61 = vunpack.i.l.bf16 %v4243_v46 }
 0x115   : > { %3261 = vperm.xlu2 %3157, %v6075_v20   ;;  %3256 = vperm.xlu1 %3169, %v6076_v4   ;;  %v1322_v20 = vmul.f32 %v3121_v54, %v4048_v53  ;;  %v1344_v4 = vmul.f32 %v3150_v8, %v4048_v53  ;;  %v1841_v54 = vld [vmem:[%s5949_s2 + $0x20] sm:$0xff]  ;;  %v2921_v8 = vunpack.i.l.bf16 %v6078_v21 }
 0x116   : > { %1972 = vperm.xlu0 %3270, %v1854_v57   ;;  %v4295_v14 = vpop.permute.xlu2 %3098  ;;  %v3054_v31 = vpop.permute.xlu1 %3053  ;;  %v1345_v57 = vmul.f32 %v3151_v38, %v4046_v22  ;;  %v3136_v38 = vunpack.i.h.bf16 %v4243_v46 }
 0x117   : > { %v3056_v11 = vunpack.i.h.bf16 %v3054_v31  ;;  %v3055_v16 = vunpack.i.l.bf16 %v3054_v31  ;;  %v4299_v19 = vpop.permute.xlu0 %3206 }
 0x118   : > { %v4334_v27 = vadd.f32 %v1345_v57, %v4222_v41  ;;  %v4356_v41 = vadd.f32 %v1319_v17, %v4136_v55  ;;  %v4373_v55 = vmul.f32 %v2916_v2, %v3764_v10  ;;  %v1331_v17 = vmul.f32 %v3135_v61, %v4046_v22 }
 0x119   : > { %v1267_v35 = vmul.f32 %v3055_v16, %v4046_v22  ;;  %v1268_v32 = vmul.f32 %v3055_v16, %v4048_v53  ;;  %v1269_v31 = vmul.f32 %v3056_v11, %v4046_v22  ;;  %v1270_v56 = vmul.f32 %v3056_v11, %v4048_v53 }
 0x11a   : > { %6081 = vst [vmem:[#allocation7_spill] sm:$0xff] %v4334_v27 }
 0x11b   : > { %v4320_v16 = vadd.f32 %v1269_v31, %v4113_v60  ;;  %v4323_v23 = vadd.f32 %v1270_v56, %v4116_v12  ;;  %v4326_v11 = vadd.f32 %v1267_v35, %v4107_v58  ;;  %v4329_v24 = vadd.f32 %v1268_v32, %v6079_v40  ;;  %6088 = vst [vmem:[#allocation48_spill] sm:$0xff] %v4356_v41  ;;  %v6089_v35 = vld [vmem:[#allocation49_spill] sm:$0xff]  ;;  %v6093_v41 = vld [vmem:[#allocation15_spill] sm:$0xff] }
 0x11c   : > { %v4340_v12 = vadd.f32 %v1343_v7, %v4218_v48  ;;  %v4347_v40 = vadd.f32 %v1344_v4, %v4220_v0  ;;  %v4350_v56 = vadd.f32 %v1321_v30, %v4140_v39  ;;  %v4353_v32 = vadd.f32 %v1322_v20, %v4142_v34 }
 0x11d   : > { %3317 = vperm.xlu2 %3157, %v3661_v6   ;;  %3312 = vperm.xlu1 %3169, %v6080_v43   ;;  %v4337_v6 = vadd.f32 %v1346_v1, %v4224_v42  ;;  %v4359_v42 = vmul.f32 %v2915_v5, %v3762_v9  ;;  %v2922_v48 = vunpack.i.h.bf16 %v6078_v21  ;;  %v2947_v1 = vunpack.i.l.bf16 %v6089_v35 }
 0x11e   : > { %1907 = vperm.xlu0 %3270, %v1841_v54   ;;  %6083 = vst [vmem:[#allocation9_spill] sm:$0xff] %v4340_v12  ;;  %v4342_v60 = vpop.permute.xlu2 %3113  ;;  %v4344_v58 = vpop.permute.xlu1 %3063  ;;  %v4367_v39 = vmul.f32 %v2915_v5, %v3764_v10  ;;  %v4370_v34 = vmul.f32 %v2916_v2, %v3762_v9  ;;  %v4376_v43 = vadd.f32 %v1320_v29, %v4138_v18  ;;  %v2948_v5 = vunpack.i.h.bf16 %v6089_v35  ;;  %v1858_v18 = vld [vmem:[%s5949_s2 + $0xa8] sm:$0xff] }
 0x11f   : > { %6082 = vst [vmem:[#allocation8_spill] sm:$0xff] %v4337_v6  ;;  %v3065_v46 = vunpack.i.l.bf16 %v4344_v58  ;;  %v4364_v0 = vpop.permute.xlu0 %3221  ;;  %v4379_v21 = vmul.f32 %v2921_v8, %v3762_v9  ;;  %v1333_v30 = vmul.f32 %v3136_v38, %v4046_v22  ;;  %v1334_v20 = vmul.f32 %v3136_v38, %v4048_v53  ;;  %v1839_v38 = vld [vmem:[%s5949_s2 + $0x10] sm:$0xff] }
 0x120   : > { %6084 = vst [vmem:[#allocation10_spill] sm:$0xff] %v4342_v60  ;;  %v1332_v7 = vmul.f32 %v3135_v61, %v4048_v53  ;;  %v4392_v29 = vmul.f32 %v2921_v8, %v3764_v10  ;;  %v4395_v57 = vmul.f32 %v2922_v48, %v3762_v9  ;;  %v4398_v31 = vmul.f32 %v2922_v48, %v3764_v10  ;;  %v1838_v61 = vld [vmem:[%s5949_s2 + $0x8] sm:$0xff]  ;;  %v6105_v6 = vld [vmem:[#allocation20_spill] sm:$0xff] }
 0x121   : > { %6085 = vst [vmem:[#allocation11_spill] sm:$0xff] %v4347_v40  ;;  %v1275_v4 = vmul.f32 %v3065_v46, %v4046_v22  ;;  %v1276_v2 = vmul.f32 %v3065_v46, %v4048_v53  ;;  %v4401_v54 = vmul.f32 %v2947_v1, %v3762_v9  ;;  %v2963_v8 = vunpack.i.h.bf16 %v4164_v45 }
 0x122   : > { %6086 = vst [vmem:[#allocation13_spill] sm:$0xff] %v4350_v56  ;;  %v2962_v35 = vunpack.i.l.bf16 %v4164_v45  ;;  %v6091_v46 = vmov 0   ;;  %v4420_v56 = vadd.f32 %v1333_v30, %v4186_v25  ;;  %v4423_v40 = vadd.f32 %v1334_v20, %v4188_v33  ;;  %v3391_v30 = vld [vmem:[%s3731_s7] sm:$0xff]  ;;  %s3412_s7 = scalar_lea.hbm %s5951_s4, 16 }
 0x123   : > { %6087 = vst [vmem:[#allocation43_spill] sm:$0xff] %v4353_v32  ;;  %v4416_v32 = vadd.f32 %v1276_v2, %v6093_v41  ;;  %v4426_v45 = vadd.f32 %v1331_v17, %v4182_v37  ;;  %v4429_v12 = vmul.f32 %v2947_v1, %v3764_v10  ;;  %v4437_v25 = vadd.f32 %v1332_v7, %v4184_v26  ;;  %p3414_p2 = scmp.lt.s32.totalorder %s3412_s7, %s3408_s5 }
 0x124   : > { %6090 = vst [vmem:[#allocation12_spill] sm:$0xff] %v4376_v43  ;;  %v6092_v43 = vld [vmem:[#allocation14_spill] sm:$0xff]  ;;  %v4440_v33 = vmul.f32 %v2948_v5, %v3764_v10  ;;  %v1639_v37 = vperm.slane %v3391_v30, 3  ;;  %v4446_v2 = vmul.f32 %v2962_v35, %v3762_v9  ;;  %v4455_v26 = vmul.f32 %v2963_v8, %v3764_v10 }
 0x125   : > { %3322 = vset.pattern.permute.xlu2 %v6091_v46  ;;  %v4413_v48 = vadd.f32 %v1275_v4, %v6092_v43  ;;  %6094 = vst [vmem:[#allocation49_spill] sm:$0xff] %v4416_v32  ;;  %3321 = vset.pattern.permute.xlu1 %v6091_v46  ;;  %v4432_v43 = vmul.f32 %v2948_v5, %v3762_v9  ;;  %v2978_v5 = vunpack.i.h.bf16 %v4200_v49  ;;  %v2977_v7 = vunpack.i.l.bf16 %v4200_v49  ;;  %p3415_p3 = por %p3414_p2, %p3413_p1 }
 0x126   : > { %1992 = vperm.xlu0 %3270, %v1858_v18   ;;  %6095 = vst [vmem:[#allocation14_spill] sm:$0xff] %v4420_v56  ;;  %v4434_v41 = vpop.permute.xlu2 %3128  ;;  %1897 = vperm.xlu2 %3322, %v1839_v38   ;;  %v3079_v4 = vpop.permute.xlu1 %3078  ;;  %v4449_v18 = vmul.f32 %v2962_v35, %v3764_v10  ;;  %v4452_v38 = vmul.f32 %v2963_v8, %v3762_v9  ;;  %v1640_v46 = vperm.slane %v3391_v30, 7  ;;  %v1859_v8 = vld [vmem:[%s5949_s2 + $0xb0] sm:$0xff]  ;;  %v3044_v56 = vunpack.i.l.bf16 %v4245_v51 }
 0x127   : > { %6096 = vst [vmem:[#allocation15_spill] sm:$0xff] %v4423_v40  ;;  %1892 = vperm.xlu1 %3321, %v1838_v61   ;;  %v3081_v17 = vunpack.i.h.bf16 %v3079_v4  ;;  %v3080_v20 = vunpack.i.l.bf16 %v3079_v4  ;;  %v4443_v1 = vpop.permute.xlu0 %3236  ;;  %v2992_v61 = vunpack.i.l.bf16 %v4239_v52  ;;  %v2993_v40 = vunpack.i.h.bf16 %v4239_v52  ;;  %v6107_v52 = vld [vmem:[#allocation18_spill] sm:$0xff]  ;;  %p3416_p5 = pnand %p3415_p3, %p3411_p0 }
 0x128   : > { %6097 = vst [vmem:[#allocation63_spill] sm:$0xff] %v4426_v45  ;;  %v4469_v49 = vperm.slane %v1639_v37, 3  ;;  %v3066_v30 = vunpack.i.h.bf16 %v4344_v58  ;;  %v6108_v37 = vld [vmem:[#allocation19_spill] sm:$0xff]  ;;  %v4491_v58 = vmul.f32 %v2977_v7, %v3762_v9 }
 0x129   : > { %6098 = vst [vmem:[#allocation64_spill] sm:$0xff] %v4434_v41  ;;  %v1287_v4 = vmul.f32 %v3080_v20, %v4046_v22  ;;  %v1289_v35 = vmul.f32 %v3081_v17, %v4046_v22  ;;  %v1290_v45 = vmul.f32 %v3081_v17, %v4048_v53  ;;  %v1840_v17 = vld [vmem:[%s5949_s2 + $0x18] sm:$0xff] }
 0x12a   : > { %6099 = vst [vmem:[#allocation65_spill] sm:$0xff] %v4437_v25  ;;  %v1288_v25 = vmul.f32 %v3080_v20, %v4048_v53  ;;  %v1853_v20 = vld [vmem:[%s5949_s2 + $0x80] sm:$0xff]  ;;  %v6106_v41 = vld [vmem:[#allocation21_spill] sm:$0xff] }
 0x12b   : > { %6100 = vst [vmem:[#allocation66_spill] sm:$0xff] %v4443_v1  ;;  %v4479_v27 = vadd.f32 %v1289_v35, %v6105_v6  ;;  %v4482_v3 = vadd.f32 %v1290_v45, %v6106_v41  ;;  %v4485_v36 = vadd.f32 %v1287_v4, %v6107_v52  ;;  %v3045_v6 = vunpack.i.h.bf16 %v4245_v51  ;;  %v6128_v1 = vld [vmem:[#allocation17_spill] sm:$0xff] }
 0x12c   : > { %6101 = vst [vmem:[#allocation67_spill] sm:$0xff] %v4446_v2  ;;  %v4501_v45 = vmul.f32 %v2978_v5, %v3764_v10  ;;  %v4504_v41 = vmul.f32 %v2992_v61, %v3762_v9  ;;  %v4507_v4 = vperm.slane %v1640_v46, 3  ;;  %v4512_v52 = vmul.f32 %v2992_v61, %v3764_v10 }
 0x12d   : > { %6102 = vst [vmem:[#allocation68_spill] sm:$0xff] %v4449_v18  ;;  %v4497_v18 = vmul.f32 %v2978_v5, %v3762_v9  ;;  %v4515_v51 = vmul.f32 %v2993_v40, %v3762_v9  ;;  %v4518_v5 = vmul.f32 %v2993_v40, %v3764_v10  ;;  %v4523_v46 = vmul.f32 %v3044_v56, %v4046_v22 }
 0x12e   : > { %6103 = vst [vmem:[#allocation69_spill] sm:$0xff] %v4452_v38  ;;  %v4494_v38 = vmul.f32 %v2977_v7, %v3764_v10  ;;  %1997 = vperm.xlu0 %3270, %v1859_v8   ;;  %v4509_v35 = vpop.permute.xlu2 %3143  ;;  %1967 = vperm.xlu2 %3322, %v1853_v20   ;;  %v3094_v7 = vpop.permute.xlu1 %3093  ;;  %v1277_v20 = vmul.f32 %v3066_v30, %v4046_v22  ;;  %v3008_v40 = vunpack.i.h.bf16 %v4248_v59 }
 0x12f   : > { %6104 = vst [vmem:[#allocation70_spill] sm:$0xff] %v4455_v26  ;;  %v4488_v26 = vadd.f32 %v1288_v25, %v6108_v37  ;;  %v3007_v25 = vunpack.i.l.bf16 %v4248_v59  ;;  %1902 = vperm.xlu1 %3321, %v1840_v17   ;;  %v3095_v8 = vunpack.i.l.bf16 %v3094_v7  ;;  %v4520_v37 = vpop.permute.xlu0 %3251  ;;  %v1278_v61 = vmul.f32 %v3066_v30, %v4048_v53  ;;  %v1846_v30 = vld [vmem:[%s5949_s2 + $0x48] sm:$0xff] }
 0x130   : > { %6109 = vst [vmem:[#allocation20_spill] sm:$0xff] %v4491_v58  ;;  %v4531_v17 = vmul.f32 %v3045_v6, %v4046_v22  ;;  %v3071_v59 = vunpack.i.h.bf16 %v4273_v15  ;;  %v6124_v58 = vld [vmem:[#allocation23_spill] sm:$0xff]  ;;  %v4574_v32 = vmul.f32 %v3008_v40, %v3764_v10 }
 0x131   : > { %6110 = vst [vmem:[#allocation21_spill] sm:$0xff] %v4494_v38 }
 0x132   : > { %6111 = vst [vmem:[#allocation18_spill] sm:$0xff] %v4497_v18  ;;  %v3096_v18 = vunpack.i.h.bf16 %v3094_v7  ;;  %v4571_v7 = vmul.f32 %v3008_v40, %v3762_v9 }
 0x133   : > { %6112 = vst [vmem:[#allocation19_spill] sm:$0xff] %v4501_v45  ;;  %v3070_v45 = vunpack.i.l.bf16 %v4273_v15  ;;  %v4568_v15 = vadd.f32 %v1278_v61, %v6128_v1 }
 0x134   : > { %6113 = vst [vmem:[#allocation71_spill] sm:$0xff] %v4504_v41  ;;  %v1300_v41 = vmul.f32 %v3095_v8, %v4048_v53 }
 0x135   : > { %6114 = vst [vmem:[#allocation72_spill] sm:$0xff] %v4509_v35  ;;  %v4526_v35 = vmul.f32 %v3044_v56, %v4048_v53  ;;  %v3023_v56 = vunpack.i.h.bf16 %v4269_v13  ;;  %v4595_v40 = vmul.f32 %v3070_v45, %v4046_v22 }
 0x136   : > { %6115 = vst [vmem:[#allocation73_spill] sm:$0xff] %v4512_v52  ;;  %v1299_v52 = vmul.f32 %v3095_v8, %v4046_v22  ;;  %v1855_v8 = vld [vmem:[%s5949_s2 + $0x90] sm:$0xff]  ;;  %v4562_v2 = vadd.f32 %v1300_v41, %v6124_v58  ;;  %1932 = vperm.xlu0 %3270, %v1846_v30  }
 0x137   : > { %6116 = vst [vmem:[#allocation74_spill] sm:$0xff] %v4515_v51  ;;  %v4534_v51 = vmul.f32 %v3045_v6, %v4048_v53  ;;  %v4548_v6 = vmul.f32 %v3007_v25, %v3764_v10  ;;  %v4584_v41 = vmul.f32 %v3023_v56, %v3762_v9  ;;  %v4587_v1 = vmul.f32 %v3023_v56, %v3764_v10  ;;  %v4592_v61 = vpop.permute.xlu2 %3159 }
 0x138   : > { %6117 = vst [vmem:[#allocation75_spill] sm:$0xff] %v4518_v5  ;;  %v4539_v5 = vmul.f32 %v3007_v25, %v3762_v9  ;;  %v6126_v25 = vld [vmem:[#allocation16_spill] sm:$0xff]  ;;  %1977 = vperm.xlu1 %3321, %v1855_v8   ;;  %v4608_v56 = vmul.f32 %v3071_v59, %v4048_v53  ;;  %v1302_v8 = vmul.f32 %v3096_v18, %v4048_v53 }
 0x139   : > { %6118 = vst [vmem:[#allocation76_spill] sm:$0xff] %v4520_v37  ;;  %v3022_v37 = vunpack.i.l.bf16 %v4269_v13  ;;  %v1856_v13 = vld [vmem:[%s5949_s2 + $0x98] sm:$0xff] }
 0x13a   : > { %6119 = vst [vmem:[#allocation77_spill] sm:$0xff] %v4534_v51  ;;  %1982 = vperm.xlu2 %3322, %v1856_v13   ;;  %v1301_v13 = vmul.f32 %v3096_v18, %v4046_v22 }
 0x13b   : > { %6120 = vst [vmem:[#allocation78_spill] sm:$0xff] %v4539_v5  ;;  %v6122_v5 = vld [vmem:[#allocation22_spill] sm:$0xff]  ;;  %v4577_v51 = vmul.f32 %v3022_v37, %v3762_v9  ;;  %v4581_v58 = vmul.f32 %v3022_v37, %v3764_v10  ;;  %v4598_v37 = vmul.f32 %v3070_v45, %v4048_v53  ;;  %v3085_v9 = vunpack.i.l.bf16 %v4282_v47  ;;  %v4602_v10 = vpop.permute.xlu0 %3266 }
 0x13c   : > { %6121 = vst [vmem:[#allocation79_spill] sm:$0xff] %v4548_v6  ;;  %v4559_v38 = vadd.f32 %v1299_v52, %v6122_v5  ;;  %v4565_v6 = vadd.f32 %v1277_v20, %v6126_v25  ;;  %v3168_v52 = vunpack.i.h.bf16 %v4275_v44  ;;  %v3167_v5 = vunpack.i.l.bf16 %v4275_v44  ;;  %v4590_v20 = vpop.permute.xlu1 %3108 }
 0x13d   : > { %6125 = vst [vmem:[#allocation23_spill] sm:$0xff] %v4562_v2  ;;  %v3110_v30 = vunpack.i.l.bf16 %v4590_v20  ;;  %v4605_v44 = vmul.f32 %v3071_v59, %v4046_v22  ;;  %v3086_v25 = vunpack.i.h.bf16 %v4282_v47  ;;  %v3038_v45 = vunpack.i.l.bf16 %v4284_v28  ;;  %v1847_v47 = vld [vmem:[%s5949_s2 + $0x50] sm:$0xff] }
 0x13e   : > { %6123 = vst [vmem:[#allocation22_spill] sm:$0xff] %v4559_v38  ;;  %v4623_v59 = vmul.f32 %v3168_v52, %v4469_v49  ;;  %v4630_v18 = vmul.f32 %v3168_v52, %v4507_v4  ;;  %v6147_v52 = vld [vmem:[#allocation27_spill] sm:$0xff]  ;;  %1937 = vperm.xlu0 %3270, %v1847_v47  }
 0x13f   : > { %6127 = vst [vmem:[#allocation16_spill] sm:$0xff] %v4565_v6  ;;  %v3039_v6 = vunpack.i.h.bf16 %v4284_v28  ;;  %v1842_v28 = vld [vmem:[%s5949_s2 + $0x28] sm:$0xff] }
 0x140   : > { %6129 = vst [vmem:[#allocation17_spill] sm:$0xff] %v4568_v15  ;;  %v4620_v15 = vmul.f32 %v3167_v5, %v4507_v4  ;;  %1912 = vperm.xlu1 %3321, %v1842_v28   ;;  %v3100_v28 = vunpack.i.l.bf16 %v4295_v14 }
 0x141   : > { %6130 = vst [vmem:[#allocation80_spill] sm:$0xff] %v4571_v7 }
 0x142   : > { %6131 = vst [vmem:[#allocation81_spill] sm:$0xff] %v4574_v32  ;;  %v6149_v32 = vld [vmem:[#allocation24_spill] sm:$0xff] }
 0x143   : > { %6132 = vst [vmem:[#allocation82_spill] sm:$0xff] %v4577_v51  ;;  %v4650_v7 = vadd.f32 %v1301_v13, %v6149_v32  ;;  %v4667_v32 = vmul.f32 %v3039_v6, %v4046_v22 }
 0x144   : > { %6133 = vst [vmem:[#allocation83_spill] sm:$0xff] %v4581_v58  ;;  %v6145_v58 = vld [vmem:[#allocation26_spill] sm:$0xff] }
 0x145   : > { %6134 = vst [vmem:[#allocation84_spill] sm:$0xff] %v4584_v41  ;;  %v1857_v41 = vld [vmem:[%s5949_s2 + $0xa0] sm:$0xff] }
 0x146   : > { %6135 = vst [vmem:[#allocation85_spill] sm:$0xff] %v4587_v1  ;;  %v3194_v1 = vunpack.i.h.bf16 %v4286_v50  ;;  %1987 = vperm.xlu2 %3322, %v1857_v41  }
 0x147   : > { %6136 = vst [vmem:[#allocation86_spill] sm:$0xff] %v4590_v20  ;;  %v4659_v20 = vmul.f32 %v3086_v25, %v4046_v22 }
 0x148   : > { %6137 = vst [vmem:[#allocation87_spill] sm:$0xff] %v4595_v40  ;;  %v1312_v40 = vmul.f32 %v3110_v30, %v4048_v53 }
 0x149   : > { %6138 = vst [vmem:[#allocation88_spill] sm:$0xff] %v4598_v37  ;;  %v1311_v37 = vmul.f32 %v3110_v30, %v4046_v22  ;;  %v4633_v30 = vmul.f32 %v3085_v9, %v4046_v22 }
 0x14a   : > { %6139 = vst [vmem:[#allocation89_spill] sm:$0xff] %v4602_v10  ;;  %v4617_v10 = vmul.f32 %v3167_v5, %v4469_v49  ;;  %v3193_v5 = vunpack.i.l.bf16 %v4286_v50  ;;  %v4656_v50 = vmul.f32 %v3085_v9, %v4048_v53  ;;  %v4672_v9 = vpop.permute.xlu1 %3123 }
 0x14b   : > { %6140 = vst [vmem:[#allocation90_spill] sm:$0xff] %v4605_v44  ;;  %v4644_v51 = vadd.f32 %v1311_v37, %v6145_v58  ;;  %v6151_v44 = vld [vmem:[#allocation25_spill] sm:$0xff]  ;;  %v1255_v58 = vmul.f32 %v3038_v45, %v4046_v22  ;;  %v4670_v37 = vmul.f32 %v3039_v6, %v4048_v53  ;;  %v3101_v6 = vunpack.i.h.bf16 %v4295_v14 }
 0x14c   : > { %6141 = vst [vmem:[#allocation91_spill] sm:$0xff] %v4608_v56  ;;  %v4647_v56 = vadd.f32 %v1312_v40, %v6147_v52  ;;  %v1256_v40 = vmul.f32 %v3038_v45, %v4048_v53  ;;  %v4675_v13 = vmul.f32 %v3193_v5, %v4469_v49  ;;  %v3273_v45 = vpop.permute.xlu0 %3272  ;;  %v4681_v52 = vmul.f32 %v3194_v1, %v4469_v49 }
 0x14d   : > { %6142 = vst [vmem:[#allocation92_spill] sm:$0xff] %v4623_v59  ;;  %v3274_v41 = vunpack.i.l.bf16 %v3273_v45 }
 0x14e   : > { %6143 = vst [vmem:[#allocation93_spill] sm:$0xff] %v4630_v18  ;;  %v4662_v18 = vmul.f32 %v3086_v25, %v4048_v53 }
 0x14f   : > { %6144 = vst [vmem:[#allocation94_spill] sm:$0xff] %v4633_v30  ;;  %v4653_v30 = vadd.f32 %v1302_v8, %v6151_v44  ;;  %v3177_v44 = vpop.permute.xlu2 %3176  ;;  %v4678_v8 = vmul.f32 %v3193_v5, %v4507_v4  ;;  %v571_v14 = vmul.f32 %v3274_v41, %v3752_v62 }
 0x150   : > { %6146 = vst [vmem:[#allocation26_spill] sm:$0xff] %v4644_v51  ;;  %v3179_v25 = vunpack.i.h.bf16 %v3177_v44  ;;  %v3178_v47 = vunpack.i.l.bf16 %v3177_v44 }
 0x151   : > { %6148 = vst [vmem:[#allocation27_spill] sm:$0xff] %v4647_v56  ;;  %v3208_v56 = vunpack.i.l.bf16 %v4299_v19 }
 0x152   : > { %6150 = vst [vmem:[#allocation24_spill] sm:$0xff] %v4650_v7  ;;  %v1657_v5 = vmul.f32 %v3178_v47, %v4469_v49  ;;  %v1658_v44 = vmul.f32 %v3178_v47, %v4507_v4  ;;  %v572_v7 = vmul.f32 %v3274_v41, %v3754_v63  ;;  %v1844_v47 = vld [vmem:[%s5949_s2 + $0x38] sm:$0xff] }
 0x153   : > { %6152 = vst [vmem:[#allocation25_spill] sm:$0xff] %v4653_v30  ;;  %v3275_v30 = vunpack.i.h.bf16 %v3273_v45  ;;  %v1864_v45 = vld [vmem:[%s5949_s2 + $0xd8] sm:$0xff]  ;;  %1922 = vperm.xlu2 %3322, %v1844_v47  }
 0x154   : > { %6153 = vst [vmem:[#allocation95_spill] sm:$0xff] %v4656_v50  ;;  %v4712_v41 = vadd.f32 %v1657_v5, %v4326_v11  ;;  %v962_v59 = vadd.f32 %v4367_v39, %v572_v7  ;;  %2022 = vperm.xlu0 %3270, %v1864_v45   ;;  %v4728_v11 = vmul.f32 %v3100_v28, %v4048_v53  ;;  %v6165_v45 = vunpack.i.h.bf16 %v4299_v19 }
 0x155   : > { %6154 = vst [vmem:[#allocation96_spill] sm:$0xff] %v4659_v20  ;;  %v573_v51 = vmul.f32 %v3275_v30, %v3752_v62  ;;  %v574_v50 = vmul.f32 %v3275_v30, %v3754_v63  ;;  %v4715_v20 = vadd.f32 %v1658_v44, %v4329_v24  ;;  %v961_v30 = vadd.f32 %v4359_v42, %v571_v14  ;;  %v4731_v42 = vpop.permute.xlu1 %3138 }
 0x156   : > { %6155 = vst [vmem:[#allocation97_spill] sm:$0xff] %v4662_v18  ;;  %v3162_v24 = vunpack.i.h.bf16 %v4592_v61  ;;  %v4745_v5 = vmul.f32 %v3208_v56, %v4469_v49  ;;  %v4748_v44 = vmul.f32 %v3208_v56, %v4507_v4  ;;  %v3116_v14 = vunpack.i.h.bf16 %v4342_v60 }
 0x157   : > { %6156 = vst [vmem:[#allocation98_spill] sm:$0xff] %v4672_v9  ;;  %v963_v2 = vadd.f32 %v4370_v34, %v573_v51  ;;  %v964_v38 = vadd.f32 %v4373_v55, %v574_v50  ;;  %v4733_v39 = vpop.permute.xlu2 %3186  ;;  %v4736_v34 = vmul.f32 %v3101_v6, %v4046_v22 }
 0x158   : > { %6157 = vst [vmem:[#allocation99_spill] sm:$0xff] %v4675_v13  ;;  %v3161_v13 = vunpack.i.l.bf16 %v4592_v61  ;;  %v3188_v7 = vunpack.i.l.bf16 %v4733_v39  ;;  %v1352_v61 = vadd.f32 %v1256_v40, %v962_v59  ;;  %v1647_v47 = vmul.f32 %v3162_v24, %v4469_v49  ;;  %v1865_v40 = vld [vmem:[%s5949_s2 + $0xe0] sm:$0xff] }
 0x159   : > { %6158 = vst [vmem:[#allocation100_spill] sm:$0xff] %v4678_v8  ;;  %v1659_v8 = vmul.f32 %v3179_v25, %v4469_v49  ;;  %v1648_v59 = vmul.f32 %v3162_v24, %v4507_v4  ;;  %v1860_v24 = vld [vmem:[%s5949_s2 + $0xb8] sm:$0xff] }
 0x15a   : > { %6159 = vst [vmem:[#allocation101_spill] sm:$0xff] %v4681_v52  ;;  %v1660_v52 = vmul.f32 %v3179_v25, %v4507_v4  ;;  %v1843_v25 = vld [vmem:[%s5949_s2 + $0x30] sm:$0xff]  ;;  %v1645_v55 = vmul.f32 %v3161_v13, %v4469_v49  ;;  %v1646_v51 = vmul.f32 %v3161_v13, %v4507_v4  ;;  %v4753_v13 = vmul.f32 %v6165_v45, %v4469_v49 }
 0x15b   : > { %v4706_v9 = vadd.f32 %v1659_v8, %v4320_v16  ;;  %6162 = vst [vmem:[#allocation104_spill] sm:$0xff] %v4712_v41  ;;  %v4722_v16 = vmul.f32 %v3194_v1, %v4507_v4  ;;  %1917 = vperm.xlu1 %3321, %v1843_v25   ;;  %v3278_v1 = vpop.permute.xlu0 %3277 }
 0x15c   : > { %v4709_v18 = vadd.f32 %v1660_v52, %v4323_v23  ;;  %6163 = vst [vmem:[#allocation105_spill] sm:$0xff] %v4715_v20  ;;  %v4725_v23 = vmul.f32 %v3100_v28, %v4046_v22  ;;  %v3280_v50 = vunpack.i.h.bf16 %v3278_v1  ;;  %v3279_v8 = vunpack.i.l.bf16 %v3278_v1  ;;  %v1845_v1 = vld [vmem:[%s5949_s2 + $0x40] sm:$0xff]  ;;  %2027 = vperm.xlu0 %3270, %v1865_v40  }
 0x15d   : > { %6160 = vst [vmem:[#allocation102_spill] sm:$0xff] %v4706_v9  ;;  %v1351_v52 = vadd.f32 %v1255_v58, %v961_v30  ;;  %v4742_v28 = vmul.f32 %v3101_v6, %v4048_v53  ;;  %v1665_v58 = vmul.f32 %v3188_v7, %v4469_v49  ;;  %v1353_v9 = vadd.f32 %v4667_v32, %v963_v2 }
 0x15e   : > { %6161 = vst [vmem:[#allocation103_spill] sm:$0xff] %v4709_v18  ;;  %v575_v56 = vmul.f32 %v3279_v8, %v3752_v62  ;;  %v576_v6 = vmul.f32 %v3279_v8, %v3754_v63  ;;  %v577_v25 = vmul.f32 %v3280_v50, %v3752_v62  ;;  %v578_v30 = vmul.f32 %v3280_v50, %v3754_v63 }
 0x15f   : > { %6164 = vst [vmem:[#allocation106_spill] sm:$0xff] %v4728_v11  ;;  %v4772_v45 = vadd.f32 %v1645_v55, %v1351_v52  ;;  %v4774_v18 = vadd.f32 %v1646_v51, %v1352_v61  ;;  %v1354_v8 = vadd.f32 %v4670_v37, %v964_v38  ;;  %1927 = vperm.xlu2 %3322, %v1845_v1   ;;  %v4782_v11 = vpop.permute.xlu1 %3153  ;;  %v3202_v55 = vpop.permute.xlu2 %3201  ;;  %v1861_v1 = vld [vmem:[%s5949_s2 + $0xc0] sm:$0xff] }
 0x160   : > { %v965_v20 = vadd.f32 %v4379_v21, %v575_v56  ;;  %v966_v50 = vadd.f32 %v4392_v29, %v576_v6  ;;  %v967_v41 = vadd.f32 %v4395_v57, %v577_v25  ;;  %v968_v60 = vadd.f32 %v4398_v31, %v578_v30  ;;  %v1862_v30 = vld [vmem:[%s5949_s2 + $0xc8] sm:$0xff] }
 0x161   : > { %6166 = vst [vmem:[#allocation107_spill] sm:$0xff] %v4772_v45  ;;  %v4784_v51 = vadd.f32 %v1647_v47, %v1353_v9  ;;  %v4786_v52 = vadd.f32 %v1648_v59, %v1354_v8  ;;  %v4789_v2 = vadd.f32 %v1665_v58, %v4413_v48  ;;  %v6171_v21 = vunpack.i.h.bf16 %v4299_v19 }
 0x162   : > { %6167 = vst [vmem:[#allocation108_spill] sm:$0xff] %v4774_v18  ;;  %v5976_v57 = vunpack.i.h.bf16 %v4364_v0  ;;  %v3204_v31 = vunpack.i.h.bf16 %v3202_v55  ;;  %v3203_v38 = vunpack.i.l.bf16 %v3202_v55  ;;  %v1355_v9 = vadd.f32 %v4523_v46, %v965_v20  ;;  %v6212_v18 = vld [vmem:[#allocation18_spill] sm:$0xff] }
 0x163   : > { %2002 = vperm.xlu1 %3321, %v1860_v24   ;;  %6168 = vst [vmem:[#allocation109_spill] sm:$0xff] %v4784_v51  ;;  %v4794_v29 = vmul.f32 %v6171_v21, %v4507_v4  ;;  %v3283_v32 = vpop.permute.xlu0 %3282  ;;  %v1356_v47 = vadd.f32 %v4526_v35, %v966_v50  ;;  %v4800_v59 = vmul.f32 %v3116_v14, %v4046_v22  ;;  %v3223_v19 = vunpack.i.l.bf16 %v4364_v0  ;;  %v1852_v35 = vld [vmem:[%s5949_s2 + $0x78] sm:$0xff]  ;;  %v6189_v51 = vld [vmem:[#allocation68_spill] sm:$0xff] }
 0x164   : > { %6169 = vst [vmem:[#allocation110_spill] sm:$0xff] %v4786_v52  ;;  %v3285_v37 = vunpack.i.h.bf16 %v3283_v32  ;;  %v3284_v61 = vunpack.i.l.bf16 %v3283_v32  ;;  %v4803_v48 = vmul.f32 %v3116_v14, %v4048_v53  ;;  %v1666_v58 = vmul.f32 %v3188_v7, %v4507_v4  ;;  %1962 = vperm.xlu0 %3270, %v1852_v35  }
 0x165   : > { %6170 = vst [vmem:[#allocation111_spill] sm:$0xff] %v4789_v2  ;;  %v1677_v40 = vmul.f32 %v3203_v38, %v4469_v49  ;;  %v1678_v56 = vmul.f32 %v3203_v38, %v4507_v4  ;;  %v1679_v6 = vmul.f32 %v3204_v31, %v4469_v49  ;;  %v1680_v46 = vmul.f32 %v3204_v31, %v4507_v4 }
 0x166   : > { %v595_v20 = vmul.f32 %v3284_v61, %v3752_v62  ;;  %v596_v14 = vmul.f32 %v3284_v61, %v3754_v63  ;;  %v597_v25 = vmul.f32 %v3285_v37, %v3752_v62  ;;  %v598_v7 = vmul.f32 %v3285_v37, %v3754_v63  ;;  %v6176_v37 = vld [vmem:[#allocation77_spill] sm:$0xff] }
 0x167   : > { %v4825_v24 = vadd.f32 %v4617_v10, %v1355_v9  ;;  %v4828_v8 = vadd.f32 %v4620_v15, %v1356_v47  ;;  %v4831_v50 = vadd.f32 %v1679_v6, %v4479_v27  ;;  %v4834_v55 = vadd.f32 %v1680_v46, %v4482_v3  ;;  %2012 = vperm.xlu2 %3322, %v1862_v30   ;;  %v4848_v27 = vpop.permute.xlu2 %3216  ;;  %v6177_v9 = vld [vmem:[#allocation49_spill] sm:$0xff] }
 0x168   : > { %v4837_v21 = vadd.f32 %v4401_v54, %v595_v20  ;;  %v4840_v31 = vadd.f32 %v4429_v12, %v596_v14  ;;  %v4843_v38 = vadd.f32 %v4432_v43, %v597_v25  ;;  %v4846_v10 = vadd.f32 %v4440_v33, %v598_v7  ;;  %v4861_v33 = vpop.permute.xlu1 %3171  ;;  %v1883_v14 = vld [vmem:[%s5949_s2 + $0x170] sm:$0xff] }
 0x169   : > { %6172 = vst [vmem:[#allocation112_spill] sm:$0xff] %v4831_v50  ;;  %v4851_v3 = vadd.f32 %v1677_v40, %v4485_v36  ;;  %v4854_v54 = vadd.f32 %v1678_v56, %v4488_v26  ;;  %v1357_v12 = vadd.f32 %v4531_v17, %v967_v41  ;;  %v4858_v15 = vmul.f32 %v3223_v19, %v4469_v49  ;;  %v6190_v50 = vld [vmem:[#allocation69_spill] sm:$0xff] }
 0x16a   : > { %6173 = vst [vmem:[#allocation113_spill] sm:$0xff] %v4834_v55  ;;  %v3218_v43 = vunpack.i.l.bf16 %v4848_v27  ;;  %v1358_v61 = vadd.f32 %v6176_v37, %v968_v60  ;;  %v4865_v47 = vadd.f32 %v1666_v58, %v6177_v9  ;;  %v5975_v36 = vunpack.i.h.bf16 %v4861_v33  ;;  %v6179_v58 = vld [vmem:[#allocation66_spill] sm:$0xff]  ;;  %v6180_v37 = vld [vmem:[#allocation44_spill] sm:$0xff] }
 0x16b   : > { %2007 = vperm.xlu1 %3321, %v1861_v1   ;;  %6174 = vst [vmem:[#allocation114_spill] sm:$0xff] %v4851_v3  ;;  %v3288_v32 = vpop.permute.xlu0 %3287  ;;  %v3173_v26 = vunpack.i.l.bf16 %v4861_v33  ;;  %v4870_v17 = vmul.f32 %v3223_v19, %v4507_v4  ;;  %v4875_v41 = vmul.f32 %v5976_v57, %v4469_v49  ;;  %v3239_v46 = vunpack.i.h.bf16 %v6179_v58  ;;  %v6184_v57 = vld [vmem:[#allocation22_spill] sm:$0xff] }
 0x16c   : > { %6175 = vst [vmem:[#allocation115_spill] sm:$0xff] %v4854_v54  ;;  %v3290_v40 = vunpack.i.h.bf16 %v3288_v32  ;;  %v3289_v56 = vunpack.i.l.bf16 %v3288_v32  ;;  %v1689_v6 = vmul.f32 %v3218_v43, %v4469_v49  ;;  %v1690_v60 = vmul.f32 %v3218_v43, %v4507_v4  ;;  %v1863_v43 = vld [vmem:[%s5949_s2 + $0xd0] sm:$0xff]  ;;  %v1848_v32 = vld [vmem:[%s5949_s2 + $0x58] sm:$0xff]  ;;  %v6191_v54 = vld [vmem:[#allocation70_spill] sm:$0xff]  ;;  %2117 = vperm.xlu0 %3270, %v1883_v14  }
 0x16d   : > { %6178 = vst [vmem:[#allocation77_spill] sm:$0xff] %v4865_v47  ;;  %v1653_v35 = vmul.f32 %v3173_v26, %v4469_v49  ;;  %v1654_v20 = vmul.f32 %v3173_v26, %v4507_v4  ;;  %v1655_v19 = vmul.f32 %v5975_v36, %v4469_v49  ;;  %v6182_v26 = vld [vmem:[#allocation45_spill] sm:$0xff]  ;;  %v6186_v47 = vld [vmem:[#allocation23_spill] sm:$0xff] }
 0x16e   : > { %v607_v25 = vmul.f32 %v3289_v56, %v3752_v62  ;;  %v608_v7 = vmul.f32 %v3289_v56, %v3754_v63  ;;  %v609_v30 = vmul.f32 %v3290_v40, %v3752_v62  ;;  %v610_v1 = vmul.f32 %v3290_v40, %v3754_v63  ;;  %v6188_v40 = vld [vmem:[#allocation67_spill] sm:$0xff] }
 0x16f   : > { %v4899_v9 = vadd.f32 %v1653_v35, %v6180_v37  ;;  %v4902_v36 = vadd.f32 %v1654_v20, %v6182_v26  ;;  %v4905_v56 = vadd.f32 %v1689_v6, %v6184_v57  ;;  %v4908_v2 = vadd.f32 %v1690_v60, %v6186_v47  ;;  %2017 = vperm.xlu2 %3322, %v1863_v43   ;;  %v4914_v35 = vpop.permute.xlu2 %3231  ;;  %v6192_v20 = vld [vmem:[#allocation92_spill] sm:$0xff]  ;;  %v6194_v57 = vld [vmem:[#allocation93_spill] sm:$0xff]  ;;  %v6196_v47 = vld [vmem:[#allocation46_spill] sm:$0xff] }
 0x170   : > { %v997_v52 = vadd.f32 %v6188_v40, %v607_v25  ;;  %v998_v55 = vadd.f32 %v6189_v51, %v608_v7  ;;  %v999_v58 = vadd.f32 %v6190_v50, %v609_v30  ;;  %v1000_v3 = vadd.f32 %v6191_v54, %v610_v1  ;;  %v3182_v14 = vpop.permute.xlu1 %3181  ;;  %v6199_v7 = vld [vmem:[#allocation96_spill] sm:$0xff]  ;;  %v6202_v40 = vld [vmem:[#allocation86_spill] sm:$0xff] }
 0x171   : > { %6181 = vst [vmem:[#allocation49_spill] sm:$0xff] %v4899_v9  ;;  %v4917_v37 = vadd.f32 %v6192_v20, %v1357_v12  ;;  %v4920_v6 = vadd.f32 %v6194_v57, %v1358_v61  ;;  %v4923_v60 = vadd.f32 %v1655_v19, %v6196_v47  ;;  %v6198_v51 = vunpack.i.h.bf16 %v4364_v0  ;;  %v6200_v12 = vld [vmem:[#allocation97_spill] sm:$0xff]  ;;  %v6203_v20 = vld [vmem:[#allocation98_spill] sm:$0xff] }
 0x172   : > { %6183 = vst [vmem:[#allocation44_spill] sm:$0xff] %v4902_v36  ;;  %v4931_v54 = vmul.f32 %v3239_v46, %v4469_v49  ;;  %v1389_v30 = vadd.f32 %v6199_v7, %v999_v58  ;;  %v1390_v1 = vadd.f32 %v6200_v12, %v1000_v3  ;;  %v3184_v43 = vunpack.i.h.bf16 %v3182_v14  ;;  %v6211_v36 = vld [vmem:[#allocation21_spill] sm:$0xff] }
 0x173   : > { %6185 = vst [vmem:[#allocation45_spill] sm:$0xff] %v4905_v56  ;;  %1942 = vperm.xlu1 %3321, %v1848_v32   ;;  %v4928_v50 = vmul.f32 %v6198_v51, %v4507_v4  ;;  %v3293_v25 = vpop.permute.xlu0 %3292  ;;  %v3183_v61 = vunpack.i.l.bf16 %v3182_v14  ;;  %v4936_v19 = vmul.f32 %v3239_v46, %v4507_v4  ;;  %v3111_v0 = vunpack.i.h.bf16 %v6202_v40  ;;  %v1882_v14 = vld [vmem:[%s5949_s2 + $0x168] sm:$0xff]  ;;  %v6206_v56 = vld [vmem:[#allocation5_spill] sm:$0xff] }
 0x174   : > { %6187 = vst [vmem:[#allocation22_spill] sm:$0xff] %v4908_v2  ;;  %v3295_v32 = vunpack.i.h.bf16 %v3293_v25  ;;  %v3294_v26 = vunpack.i.l.bf16 %v3293_v25  ;;  %v3126_v57 = vunpack.i.h.bf16 %v6203_v20  ;;  %v3125_v47 = vunpack.i.l.bf16 %v6203_v20  ;;  %2112 = vperm.xlu0 %3270, %v1882_v14  }
 0x175   : > { %6193 = vst [vmem:[#allocation23_spill] sm:$0xff] %v4917_v37  ;;  %v1661_v51 = vmul.f32 %v3183_v61, %v4469_v49  ;;  %v1662_v2 = vmul.f32 %v3183_v61, %v4507_v4  ;;  %v1663_v58 = vmul.f32 %v3184_v43, %v4469_v49  ;;  %v1664_v3 = vmul.f32 %v3184_v43, %v4507_v4  ;;  %v1850_v61 = vld [vmem:[%s5949_s2 + $0x68] sm:$0xff]  ;;  %v1849_v43 = vld [vmem:[%s5949_s2 + $0x60] sm:$0xff] }
 0x176   : > { %6195 = vst [vmem:[#allocation67_spill] sm:$0xff] %v4920_v6  ;;  %v619_v46 = vmul.f32 %v3294_v26, %v3752_v62  ;;  %v620_v25 = vmul.f32 %v3294_v26, %v3754_v63  ;;  %v621_v7 = vmul.f32 %v3295_v32, %v3752_v62  ;;  %v622_v12 = vmul.f32 %v3295_v32, %v3754_v63  ;;  %v6210_v32 = vld [vmem:[#allocation20_spill] sm:$0xff] }
 0x177   : > { %6197 = vst [vmem:[#allocation68_spill] sm:$0xff] %v4923_v60  ;;  %v4959_v40 = vadd.f32 %v4753_v13, %v1389_v30  ;;  %v4962_v20 = vadd.f32 %v4794_v29, %v1390_v1  ;;  %v4965_v26 = vadd.f32 %v1663_v58, %v6206_v56  ;;  %v6208_v60 = vld [vmem:[#allocation6_spill] sm:$0xff]  ;;  %v3233_v29 = vunpack.i.l.bf16 %v4914_v35  ;;  %1952 = vperm.xlu2 %3322, %v1850_v61   ;;  %v4979_v56 = vpop.permute.xlu2 %3246 }
 0x178   : > { %6201 = vst [vmem:[#allocation69_spill] sm:$0xff] %v4936_v19  ;;  %v4968_v6 = vadd.f32 %v1664_v3, %v6208_v60  ;;  %v4971_v37 = vadd.f32 %v6210_v32, %v619_v46  ;;  %v4974_v9 = vadd.f32 %v6211_v36, %v620_v25  ;;  %v1011_v45 = vadd.f32 %v6212_v18, %v621_v7  ;;  %v6213_v19 = vld [vmem:[#allocation19_spill] sm:$0xff]  ;;  %v6215_v30 = vld [vmem:[#allocation62_spill] sm:$0xff] }
 0x179   : > { %6204 = vst [vmem:[#allocation70_spill] sm:$0xff] %v4959_v40  ;;  %v1012_v13 = vadd.f32 %v6213_v19, %v622_v12  ;;  %v4982_v60 = vadd.f32 %v1661_v51, %v6215_v30  ;;  %v6217_v1 = vld [vmem:[#allocation38_spill] sm:$0xff]  ;;  %v4989_v46 = vmul.f32 %v3111_v0, %v4046_v22  ;;  %v4992_v18 = vmul.f32 %v3111_v0, %v4048_v53  ;;  %v4994_v19 = vpop.permute.xlu1 %3196  ;;  %v6220_v25 = vld [vmem:[#allocation95_spill] sm:$0xff] }
 0x17a   : > { %6205 = vst [vmem:[#allocation92_spill] sm:$0xff] %v4962_v20  ;;  %v4985_v58 = vadd.f32 %v1662_v2, %v6217_v1  ;;  %v6219_v3 = vld [vmem:[#allocation94_spill] sm:$0xff]  ;;  %v1388_v7 = vadd.f32 %v6220_v25, %v998_v55  ;;  %v1401_v12 = vadd.f32 %v4736_v34, %v1011_v45  ;;  %v4999_v51 = vmul.f32 %v3125_v47, %v4046_v22  ;;  %v6232_v40 = vld [vmem:[#allocation75_spill] sm:$0xff] }
 0x17b   : > { %6207 = vst [vmem:[#allocation93_spill] sm:$0xff] %v4965_v26  ;;  %1947 = vperm.xlu1 %3321, %v1849_v43   ;;  %v1387_v36 = vadd.f32 %v6219_v3, %v997_v52  ;;  %v3298_v14 = vpop.permute.xlu0 %3297  ;;  %v5002_v2 = vmul.f32 %v3125_v47, %v4048_v53  ;;  %v5005_v43 = vmul.f32 %v3126_v57, %v4046_v22  ;;  %v3219_v55 = vunpack.i.h.bf16 %v4848_v27  ;;  %v1877_v3 = vld [vmem:[%s5949_s2 + $0x140] sm:$0xff] }
 0x17c   : > { %6209 = vst [vmem:[#allocation46_spill] sm:$0xff] %v4968_v6  ;;  %v3300_v52 = vunpack.i.h.bf16 %v3298_v14  ;;  %v3299_v61 = vunpack.i.l.bf16 %v3298_v14  ;;  %v5008_v0 = vmul.f32 %v3126_v57, %v4048_v53  ;;  %v6223_v34 = vunpack.i.h.bf16 %v4861_v33  ;;  %v1851_v33 = vld [vmem:[%s5949_s2 + $0x70] sm:$0xff]  ;;  %v6231_v26 = vld [vmem:[#allocation74_spill] sm:$0xff]  ;;  %2087 = vperm.xlu0 %3270, %v1877_v3  }
 0x17d   : > { %6214 = vst [vmem:[#allocation96_spill] sm:$0xff] %v4979_v56  ;;  %v1701_v30 = vmul.f32 %v3233_v29, %v4469_v49  ;;  %v1702_v47 = vmul.f32 %v3233_v29, %v4507_v4  ;;  %v1866_v29 = vld [vmem:[%s5949_s2 + $0xe8] sm:$0xff]  ;;  %v5035_v1 = vadd.f32 %v4748_v44, %v1388_v7  ;;  %v5039_v32 = vadd.f32 %v4875_v41, %v1401_v12 }
 0x17e   : > { %6216 = vst [vmem:[#allocation97_spill] sm:$0xff] %v4982_v60  ;;  %v1656_v45 = vmul.f32 %v6223_v34, %v4507_v4  ;;  %v631_v57 = vmul.f32 %v3299_v61, %v3752_v62  ;;  %v632_v14 = vmul.f32 %v3299_v61, %v3754_v63  ;;  %v633_v27 = vmul.f32 %v3300_v52, %v3752_v62  ;;  %v6229_v60 = vld [vmem:[#allocation73_spill] sm:$0xff] }
 0x17f   : > { %6218 = vst [vmem:[#allocation86_spill] sm:$0xff] %v4985_v58  ;;  %v634_v25 = vmul.f32 %v3300_v52, %v3754_v63  ;;  %v5032_v34 = vadd.f32 %v4745_v5, %v1387_v36  ;;  %v1402_v61 = vadd.f32 %v4742_v28, %v1012_v13  ;;  %v6227_v52 = vld [vmem:[#allocation71_spill] sm:$0xff]  ;;  %1957 = vperm.xlu2 %3322, %v1851_v33   ;;  %v5054_v28 = vpop.permute.xlu2 %3261  ;;  %v3155_v12 = vunpack.i.l.bf16 %v4782_v11 }
 0x180   : > { %6221 = vst [vmem:[#allocation98_spill] sm:$0xff] %v5005_v43  ;;  %v5042_v58 = vadd.f32 %v6227_v52, %v631_v57  ;;  %v5045_v6 = vadd.f32 %v6229_v60, %v632_v14  ;;  %v5048_v20 = vadd.f32 %v6231_v26, %v633_v27  ;;  %v6234_v13 = vld [vmem:[#allocation47_spill] sm:$0xff]  ;;  %v6236_v60 = vld [vmem:[#allocation26_spill] sm:$0xff]  ;;  %v1692_v52 = vmul.f32 %v3219_v55, %v4507_v4 }
 0x181   : > { %6222 = vst [vmem:[#allocation5_spill] sm:$0xff] %v5008_v0  ;;  %v5051_v5 = vadd.f32 %v6232_v40, %v634_v25  ;;  %v5057_v41 = vadd.f32 %v4928_v50, %v1402_v61  ;;  %v5060_v36 = vadd.f32 %v1656_v45, %v6234_v13  ;;  %v5063_v7 = vadd.f32 %v1701_v30, %v6236_v60  ;;  %v3212_v3 = vpop.permute.xlu1 %3211  ;;  %v6239_v14 = vld [vmem:[#allocation27_spill] sm:$0xff]  ;;  %v6241_v50 = vld [vmem:[#allocation90_spill] sm:$0xff]  ;;  %v6254_v0 = vld [vmem:[#allocation80_spill] sm:$0xff] }
 0x182   : > { %6224 = vst [vmem:[#allocation6_spill] sm:$0xff] %v5032_v34  ;;  %v6238_v40 = vunpack.i.l.bf16 %v4731_v42  ;;  %v5072_v27 = vadd.f32 %v1702_v47, %v6239_v14  ;;  %v1377_v25 = vadd.f32 %v6241_v50, %v4843_v38  ;;  %v3214_v45 = vunpack.i.h.bf16 %v3212_v3 }
 0x183   : > { %6225 = vst [vmem:[#allocation20_spill] sm:$0xff] %v5035_v1  ;;  %2032 = vperm.xlu1 %3321, %v1866_v29   ;;  %v3303_v57 = vpop.permute.xlu0 %3302  ;;  %v3213_v33 = vunpack.i.l.bf16 %v3212_v3  ;;  %v1691_v61 = vmul.f32 %v3219_v55, %v4469_v49  ;;  %v3198_v13 = vunpack.i.l.bf16 %v4994_v19  ;;  %v6242_v60 = vunpack.i.h.bf16 %v4994_v19  ;;  %v6248_v1 = vld [vmem:[#allocation54_spill] sm:$0xff] }
 0x184   : > { %6226 = vst [vmem:[#allocation21_spill] sm:$0xff] %v5039_v32  ;;  %v5068_v26 = vmul.f32 %v6238_v40, %v4046_v22  ;;  %v3305_v29 = vunpack.i.h.bf16 %v3303_v57  ;;  %v3304_v30 = vunpack.i.l.bf16 %v3303_v57  ;;  %v1687_v38 = vmul.f32 %v3214_v45, %v4469_v49  ;;  %v1876_v57 = vld [vmem:[%s5949_s2 + $0x138] sm:$0xff] }
 0x185   : > { %6228 = vst [vmem:[#allocation18_spill] sm:$0xff] %v5042_v58  ;;  %v1675_v40 = vmul.f32 %v6242_v60, %v4469_v49  ;;  %v1685_v47 = vmul.f32 %v3213_v33, %v4469_v49  ;;  %v1686_v14 = vmul.f32 %v3213_v33, %v4507_v4  ;;  %v1688_v3 = vmul.f32 %v3214_v45, %v4507_v4  ;;  %v1868_v33 = vld [vmem:[%s5949_s2 + $0xf8] sm:$0xff]  ;;  %v1867_v45 = vld [vmem:[%s5949_s2 + $0xf0] sm:$0xff]  ;;  %v6252_v58 = vld [vmem:[#allocation79_spill] sm:$0xff] }
 0x186   : > { %6230 = vst [vmem:[#allocation19_spill] sm:$0xff] %v5045_v6  ;;  %v643_v55 = vmul.f32 %v3304_v30, %v3752_v62  ;;  %v644_v50 = vmul.f32 %v3304_v30, %v3754_v63  ;;  %v645_v44 = vmul.f32 %v3305_v29, %v3752_v62  ;;  %v646_v60 = vmul.f32 %v3305_v29, %v3754_v63  ;;  %v6247_v32 = vld [vmem:[#allocation53_spill] sm:$0xff]  ;;  %v6250_v29 = vld [vmem:[#allocation78_spill] sm:$0xff] }
 0x187   : > { %6233 = vst [vmem:[#allocation62_spill] sm:$0xff] %v5057_v41  ;;  %v5106_v30 = vadd.f32 %v1685_v47, %v6247_v32  ;;  %v5109_v34 = vadd.f32 %v1686_v14, %v6248_v1  ;;  %2082 = vperm.xlu0 %3270, %v1876_v57   ;;  %2042 = vperm.xlu2 %3322, %v1868_v33   ;;  %v5124_v32 = vpop.permute.xlu2 %3317  ;;  %v6258_v1 = vld [vmem:[#allocation91_spill] sm:$0xff]  ;;  %v6259_v14 = vld [vmem:[#allocation101_spill] sm:$0xff] }
 0x188   : > { %6235 = vst [vmem:[#allocation38_spill] sm:$0xff] %v5060_v36  ;;  %v6245_v36 = vld [vmem:[#allocation52_spill] sm:$0xff]  ;;  %v5112_v6 = vadd.f32 %v6250_v29, %v643_v55  ;;  %v5115_v56 = vadd.f32 %v6252_v58, %v644_v50  ;;  %v5118_v43 = vadd.f32 %v6254_v0, %v645_v44  ;;  %v1378_v47 = vadd.f32 %v6258_v1, %v4846_v10  ;;  %v6264_v33 = vld [vmem:[#allocation25_spill] sm:$0xff]  ;;  %v6266_v29 = vld [vmem:[#allocation50_spill] sm:$0xff] }
 0x189   : > { %6237 = vst [vmem:[#allocation94_spill] sm:$0xff] %v5063_v7  ;;  %v5103_v41 = vadd.f32 %v1688_v3, %v6245_v36  ;;  %v3141_v36 = vunpack.i.h.bf16 %v4731_v42  ;;  %v5129_v3 = vadd.f32 %v6259_v14, %v1377_v25  ;;  %v6261_v58 = vld [vmem:[#allocation24_spill] sm:$0xff]  ;;  %v6263_v0 = vunpack.i.h.bf16 %v4733_v39  ;;  %v3227_v50 = vpop.permute.xlu1 %3226 }
 0x18a   : > { %6240 = vst [vmem:[#allocation95_spill] sm:$0xff] %v5072_v27  ;;  %v6243_v27 = vld [vmem:[#allocation51_spill] sm:$0xff]  ;;  %v5132_v55 = vadd.f32 %v1691_v61, %v6261_v58  ;;  %v1347_v57 = vmul.f32 %v3155_v12, %v4046_v22  ;;  %v5144_v10 = vadd.f32 %v1675_v40, %v6266_v29  ;;  %v3229_v25 = vunpack.i.h.bf16 %v3227_v50 }
 0x18b   : > { %v5100_v7 = vadd.f32 %v1687_v38, %v6243_v27  ;;  %6246 = vst [vmem:[#allocation73_spill] sm:$0xff] %v5103_v41  ;;  %v6256_v27 = vld [vmem:[#allocation81_spill] sm:$0xff]  ;;  %2037 = vperm.xlu1 %3321, %v1867_v45   ;;  %v5137_v44 = vmul.f32 %v6263_v0, %v4469_v49  ;;  %v5141_v45 = vadd.f32 %v1692_v52, %v6264_v33 }
 0x18c   : > { %6249 = vst [vmem:[#allocation74_spill] sm:$0xff] %v5109_v34  ;;  %v5121_v38 = vadd.f32 %v6256_v27, %v646_v60  ;;  %v3308_v60 = vpop.permute.xlu0 %3307  ;;  %v3228_v27 = vunpack.i.l.bf16 %v3227_v50  ;;  %v1348_v14 = vmul.f32 %v3155_v12, %v4048_v53  ;;  %v1673_v58 = vmul.f32 %v3198_v13, %v4469_v49  ;;  %v1871_v12 = vld [vmem:[%s5949_s2 + $0x110] sm:$0xff] }
 0x18d   : > { %6244 = vst [vmem:[#allocation71_spill] sm:$0xff] %v5100_v7  ;;  %v3310_v1 = vunpack.i.h.bf16 %v3308_v60  ;;  %v3309_v61 = vunpack.i.l.bf16 %v3308_v60  ;;  %v1674_v0 = vmul.f32 %v3198_v13, %v4507_v4  ;;  %v1699_v40 = vmul.f32 %v3229_v25, %v4469_v49  ;;  %v6273_v7 = vld [vmem:[#allocation58_spill] sm:$0xff] }
 0x18e   : > { %6251 = vst [vmem:[#allocation75_spill] sm:$0xff] %v5112_v6  ;;  %v1697_v52 = vmul.f32 %v3228_v27, %v4469_v49  ;;  %v1698_v33 = vmul.f32 %v3228_v27, %v4507_v4  ;;  %v1700_v50 = vmul.f32 %v3229_v25, %v4507_v4  ;;  %v1884_v25 = vld [vmem:[%s5949_s2 + $0x178] sm:$0xff]  ;;  %v6269_v27 = vld [vmem:[#allocation56_spill] sm:$0xff]  ;;  %v6277_v6 = vld [vmem:[#allocation83_spill] sm:$0xff] }
 0x18f   : > { %6253 = vst [vmem:[#allocation47_spill] sm:$0xff] %v5115_v56  ;;  %v655_v60 = vmul.f32 %v3309_v61, %v3752_v62  ;;  %v656_v13 = vmul.f32 %v3309_v61, %v3754_v63  ;;  %v657_v29 = vmul.f32 %v3310_v1, %v3752_v62  ;;  %v6274_v62 = vld [vmem:[#allocation59_spill] sm:$0xff]  ;;  %2057 = vperm.xlu0 %3270, %v1871_v12   ;;  %v6287_v12 = vld [vmem:[#allocation106_spill] sm:$0xff] }
 0x190   : > { %6255 = vst [vmem:[#allocation26_spill] sm:$0xff] %v5118_v43  ;;  %v5176_v61 = vadd.f32 %v1697_v52, %v6273_v7  ;;  %v5179_v56 = vadd.f32 %v1698_v33, %v6274_v62  ;;  %v6278_v43 = vld [vmem:[#allocation84_spill] sm:$0xff]  ;;  %v5195_v7 = vadd.f32 %v4722_v16, %v1378_v47  ;;  %v6281_v52 = vld [vmem:[#allocation55_spill] sm:$0xff] }
 0x191   : > { %6257 = vst [vmem:[#allocation27_spill] sm:$0xff] %v5121_v38  ;;  %v5185_v38 = vadd.f32 %v6277_v6, %v656_v13  ;;  %v5188_v34 = vadd.f32 %v6278_v43, %v657_v29  ;;  %v6285_v13 = vld [vmem:[#allocation61_spill] sm:$0xff]  ;;  %v6288_v16 = vld [vmem:[#allocation39_spill] sm:$0xff] }
 0x192   : > { %6260 = vst [vmem:[#allocation90_spill] sm:$0xff] %v5129_v3  ;;  %v6268_v3 = vunpack.i.h.bf16 %v4994_v19  ;;  %v658_v19 = vmul.f32 %v3310_v1, %v3754_v63  ;;  %v6276_v63 = vld [vmem:[#allocation82_spill] sm:$0xff]  ;;  %v5206_v29 = vadd.f32 %v1674_v0, %v6285_v13  ;;  %v1443_v47 = vadd.f32 %v1347_v57, %v6288_v16 }
 0x193   : > { %6262 = vst [vmem:[#allocation51_spill] sm:$0xff] %v5132_v55  ;;  %v5182_v1 = vadd.f32 %v6276_v63, %v655_v60  ;;  %2122 = vperm.xlu1 %3321, %v1884_v25   ;;  %v5203_v60 = vpop.permute.xlu1 %3241  ;;  %v1338_v25 = vmul.f32 %v3141_v36, %v4048_v53  ;;  %v6290_v0 = vunpack.i.h.bf16 %v4733_v39  ;;  %v1898_v63 = vpop.permute.xlu2 %1897  ;;  %v3234_v39 = vunpack.i.h.bf16 %v4914_v35 }
 0x194   : > { %6265 = vst [vmem:[#allocation52_spill] sm:$0xff] %v5141_v45  ;;  %v1676_v55 = vmul.f32 %v6268_v3, %v4507_v4  ;;  %v1881_v3 = vld [vmem:[%s5949_s2 + $0x160] sm:$0xff]  ;;  %v6271_v45 = vld [vmem:[#allocation57_spill] sm:$0xff]  ;;  %v1888_v43 = vpop.permute.xlu0 %1887  ;;  %v1414_v35 = vadd.f32 %v4803_v48, %v5051_v5  ;;  %v6304_v5 = vld [vmem:[#allocation35_spill] sm:$0xff] }
 0x195   : > { %6267 = vst [vmem:[#allocation53_spill] sm:$0xff] %v5144_v10  ;;  %v5170_v10 = vadd.f32 %v1699_v40, %v6269_v27  ;;  %v5173_v41 = vadd.f32 %v1700_v50, %v6271_v45  ;;  %v6279_v40 = vld [vmem:[#allocation85_spill] sm:$0xff]  ;;  %v3156_v45 = vunpack.i.h.bf16 %v4782_v11  ;;  %2107 = vperm.xlu2 %3322, %v1881_v3   ;;  %v6283_v50 = vld [vmem:[#allocation60_spill] sm:$0xff]  ;;  %v1399_v11 = vadd.f32 %v4725_v23, %v4971_v37 }
 0x196   : > { %6275 = vst [vmem:[#allocation79_spill] sm:$0xff] %v5179_v56  ;;  %v5191_v27 = vadd.f32 %v6279_v40, %v658_v19  ;;  %v5198_v33 = vadd.f32 %v1676_v55, %v6281_v52  ;;  %v5201_v6 = vadd.f32 %v1673_v58, %v6283_v50  ;;  %v1400_v19 = vadd.f32 %v6287_v12, %v4974_v9  ;;  %v6294_v50 = vld [vmem:[#allocation16_spill] sm:$0xff]  ;;  %v6302_v48 = vld [vmem:[#allocation69_spill] sm:$0xff] }
 0x197   : > { %6270 = vst [vmem:[#allocation54_spill] sm:$0xff] %v5170_v10  ;;  %v6289_v55 = vunpack.i.l.bf16 %v4731_v42  ;;  %v1337_v58 = vmul.f32 %v3141_v36, %v4046_v22  ;;  %v1668_v62 = vmul.f32 %v6290_v0, %v4507_v4  ;;  %v5222_v23 = vadd.f32 %v1898_v63, %v4825_v24  ;;  %v1870_v24 = vld [vmem:[%s5949_s2 + $0x108] sm:$0xff] }
 0x198   : > { %6272 = vst [vmem:[#allocation78_spill] sm:$0xff] %v5173_v41  ;;  %v5225_v9 = vadd.f32 %v1898_v63, %v4828_v8  ;;  %v5228_v37 = vadd.f32 %v4858_v15, %v1399_v11  ;;  %v5231_v42 = vadd.f32 %v4870_v17, %v1400_v19  ;;  %v1349_v57 = vmul.f32 %v3156_v45, %v4046_v22  ;;  %v1880_v8 = vld [vmem:[%s5949_s2 + $0x158] sm:$0xff]  ;;  %v1879_v15 = vld [vmem:[%s5949_s2 + $0x150] sm:$0xff]  ;;  %v6298_v19 = vld [vmem:[#allocation87_spill] sm:$0xff] }
 0x199   : > { %6280 = vst [vmem:[#allocation80_spill] sm:$0xff] %v5195_v7  ;;  %v1336_v3 = vmul.f32 %v6289_v55, %v4048_v53  ;;  %v1350_v36 = vmul.f32 %v3156_v45, %v4048_v53  ;;  %v3319_v40 = vunpack.i.l.bf16 %v5124_v32  ;;  %v6293_v17 = vld [vmem:[#allocation40_spill] sm:$0xff]  ;;  %v1413_v45 = vadd.f32 %v4800_v59, %v5048_v20  ;;  %v6296_v11 = vld [vmem:[#allocation17_spill] sm:$0xff]  ;;  %2052 = vperm.xlu0 %3270, %v1870_v24  }
 0x19a   : > { %6282 = vst [vmem:[#allocation81_spill] sm:$0xff] %v5198_v33  ;;  %v1444_v52 = vadd.f32 %v1348_v14, %v6293_v17  ;;  %v5253_v13 = vadd.f32 %v5137_v44, %v6294_v50  ;;  %v5256_v12 = vadd.f32 %v1668_v62, %v6296_v11  ;;  %v1375_v16 = vadd.f32 %v6298_v19, %v4837_v21  ;;  %v6299_v55 = vld [vmem:[#allocation88_spill] sm:$0xff]  ;;  %v6300_v14 = vld [vmem:[#allocation34_spill] sm:$0xff] }
 0x19b   : > { %6284 = vst [vmem:[#allocation91_spill] sm:$0xff] %v5201_v6  ;;  %v1376_v0 = vadd.f32 %v6299_v55, %v4840_v31  ;;  %v1431_v63 = vadd.f32 %v5068_v26, %v6300_v14  ;;  %v5265_v59 = vadd.f32 %v4931_v54, %v1413_v45  ;;  %v5268_v20 = vadd.f32 %v6302_v48, %v1414_v35  ;;  %v6305_v62 = vld [vmem:[#allocation28_spill] sm:$0xff]  ;;  %v6306_v31 = vld [vmem:[#allocation99_spill] sm:$0xff]  ;;  %v6310_v54 = vld [vmem:[#allocation29_spill] sm:$0xff]  ;;  %v5282_v35 = vpop.permute.xlu1 %3256 }
 0x19c   : > { %6286 = vst [vmem:[#allocation101_spill] sm:$0xff] %v5206_v29  ;;  %v1432_v44 = vadd.f32 %v1336_v3, %v6304_v5  ;;  %v1409_v17 = vadd.f32 %v4989_v46, %v6305_v62  ;;  %v3263_v21 = vunpack.i.l.bf16 %v5054_v28  ;;  %2097 = vperm.xlu1 %3321, %v1879_v15   ;;  %v5275_v50 = vadd.f32 %v6306_v31, %v1375_v16  ;;  %v6308_v26 = vld [vmem:[#allocation100_spill] sm:$0xff]  ;;  %v1973_v11 = vpop.permute.xlu0 %1972  ;;  %v6311_v3 = vld [vmem:[#allocation30_spill] sm:$0xff]  ;;  %v6312_v46 = vld [vmem:[#allocation31_spill] sm:$0xff] }
 0x19d   : > { %6291 = vst [vmem:[#allocation24_spill] sm:$0xff] %v5228_v37  ;;  %2102 = vperm.xlu2 %3322, %v1880_v8   ;;  %v5278_v24 = vadd.f32 %v6308_v26, %v1376_v0  ;;  %v1410_v45 = vadd.f32 %v4992_v18, %v6310_v54  ;;  %v5286_v19 = vadd.f32 %v4999_v51, %v6311_v3  ;;  %v6313_v15 = vld [vmem:[#allocation41_spill] sm:$0xff]  ;;  %v6314_v55 = vld [vmem:[#allocation42_spill] sm:$0xff]  ;;  %v6315_v48 = vld [vmem:[#allocation107_spill] sm:$0xff]  ;;  %v1968_v51 = vpop.permute.xlu2 %1967 }
 0x19e   : > { %6292 = vst [vmem:[#allocation25_spill] sm:$0xff] %v5231_v42  ;;  %v5290_v8 = vadd.f32 %v5002_v2, %v6312_v46  ;;  %v5293_v16 = vadd.f32 %v1349_v57, %v6313_v15  ;;  %v5296_v0 = vadd.f32 %v1350_v36, %v6314_v55  ;;  %v1737_v14 = vmul.f32 %v3319_v40, %v4469_v49  ;;  %v6316_v62 = vld [vmem:[#allocation108_spill] sm:$0xff]  ;;  %v6317_v26 = vld [vmem:[#allocation114_spill] sm:$0xff]  ;;  %v6318_v3 = vld [vmem:[#allocation115_spill] sm:$0xff] }
 0x19f   : > { %6295 = vst [vmem:[#allocation50_spill] sm:$0xff] %v5253_v13  ;;  %v1738_v18 = vmul.f32 %v3319_v40, %v4507_v4  ;;  %v2125_v5 = vadd.f32 %v1888_v43, %v6315_v48  ;;  %v2126_v31 = vadd.f32 %v1888_v43, %v6316_v62  ;;  %v2157_v54 = vadd.f32 %v1968_v51, %v6317_v26  ;;  %v6319_v46 = vld [vmem:[#allocation36_spill] sm:$0xff]  ;;  %v6320_v57 = vld [vmem:[#allocation37_spill] sm:$0xff]  ;;  %v6322_v26 = vld [vmem:[#allocation98_spill] sm:$0xff] }
 0x1a0   : > { %6297 = vst [vmem:[#allocation56_spill] sm:$0xff] %v5256_v12  ;;  %v2158_v2 = vadd.f32 %v1968_v51, %v6318_v3  ;;  %v5305_v29 = vadd.f32 %v1337_v58, %v6319_v46  ;;  %v5308_v15 = vadd.f32 %v1338_v25, %v6320_v57  ;;  %v1703_v36 = vmul.f32 %v3234_v39, %v4469_v49  ;;  %v1875_v58 = vld [vmem:[%s5949_s2 + $0x130] sm:$0xff]  ;;  %v1878_v25 = vld [vmem:[%s5949_s2 + $0x148] sm:$0xff]  ;;  %v6324_v46 = vld [vmem:[#allocation5_spill] sm:$0xff] }
 0x1a1   : > { %6301 = vst [vmem:[#allocation57_spill] sm:$0xff] %v5265_v59  ;;  %v1704_v55 = vmul.f32 %v3234_v39, %v4507_v4  ;;  %v1725_v40 = vmul.f32 %v3263_v21, %v4469_v49  ;;  %v1726_v48 = vmul.f32 %v3263_v21, %v4507_v4  ;;  %v5314_v43 = vmul.f32 %v2157_v54, %v2125_v5  ;;  %v6321_v51 = vld [vmem:[#allocation32_spill] sm:$0xff]  ;;  %v6323_v39 = vld [vmem:[#allocation33_spill] sm:$0xff]  ;;  %v6327_v5 = vld [vmem:[#allocation10_spill] sm:$0xff] }
 0x1a2   : > { %6303 = vst [vmem:[#allocation58_spill] sm:$0xff] %v5268_v20  ;;  %v5316_v62 = vmul.f32 %v2158_v2, %v2126_v31  ;;  %v1421_v3 = vadd.f32 %v6322_v26, %v6321_v51  ;;  %v1422_v57 = vadd.f32 %v6324_v46, %v6323_v39  ;;  %v5328_v6 = vadd.f32 %v1737_v14, %v1443_v47  ;;  %v6330_v7 = vld [vmem:[#allocation96_spill] sm:$0xff]  ;;  %v6339_v59 = vld [vmem:[#allocation113_spill] sm:$0xff] }
 0x1a3   : > { %6307 = vst [vmem:[#allocation59_spill] sm:$0xff] %v5275_v50  ;;  %v5330_v21 = vadd.f32 %v1738_v18, %v1444_v52  ;;  %v3115_v31 = vunpack.i.l.bf16 %v6327_v5  ;;  %v5333_v54 = vadd.f32 %v1725_v40, %v1431_v63  ;;  %v5335_v2 = vadd.f32 %v1726_v48, %v1432_v44  ;;  %v5339_v51 = vpop.permute.xlu1 %3312  ;;  %v6333_v52 = vld [vmem:[#allocation66_spill] sm:$0xff]  ;;  %v6334_v18 = vld [vmem:[#allocation72_spill] sm:$0xff]  ;;  %v6335_v63 = vld [vmem:[#allocation89_spill] sm:$0xff] }
 0x1a4   : > { %6309 = vst [vmem:[#allocation82_spill] sm:$0xff] %v5278_v24  ;;  %2092 = vperm.xlu1 %3321, %v1878_v25   ;;  %v3249_v24 = vunpack.i.h.bf16 %v6330_v7  ;;  %v3248_v50 = vunpack.i.l.bf16 %v6330_v7  ;;  %v1908_v26 = vpop.permute.xlu0 %1907  ;;  %v5341_v39 = vadd.f32 %v1703_v36, %v1409_v17  ;;  %v5343_v47 = vadd.f32 %v1704_v55, %v1410_v45  ;;  %v6336_v46 = vld [vmem:[#allocation64_spill] sm:$0xff]  ;;  %v6344_v42 = vld [vmem:[#allocation49_spill] sm:$0xff] }
 0x1a5   : > { %6325 = vst [vmem:[#allocation83_spill] sm:$0xff] %v5328_v6  ;;  %2077 = vperm.xlu2 %3322, %v1875_v58   ;;  %v3238_v14 = vunpack.i.l.bf16 %v6333_v52  ;;  %v3146_v58 = vunpack.i.h.bf16 %v6334_v18  ;;  %v5347_v25 = vpop.permute.xlu2 %1982  ;;  %v3269_v44 = vunpack.i.h.bf16 %v6335_v63  ;;  %v3264_v40 = vunpack.i.h.bf16 %v5054_v28  ;;  %v1874_v52 = vld [vmem:[%s5949_s2 + $0x128] sm:$0xff]  ;;  %v1873_v28 = vld [vmem:[%s5949_s2 + $0x120] sm:$0xff]  ;;  %v6338_v20 = vld [vmem:[#allocation112_spill] sm:$0xff] }
 0x1a6   : > { %6326 = vst [vmem:[#allocation84_spill] sm:$0xff] %v5330_v21  ;;  %v1315_v48 = vmul.f32 %v3115_v31, %v4046_v22  ;;  %v1316_v7 = vmul.f32 %v3115_v31, %v4048_v53  ;;  %v3131_v5 = vunpack.i.h.bf16 %v6336_v46  ;;  %v1713_v17 = vmul.f32 %v3248_v50, %v4469_v49  ;;  %v6345_v37 = vld [vmem:[#allocation44_spill] sm:$0xff] }
 0x1a7   : > { %6328 = vst [vmem:[#allocation85_spill] sm:$0xff] %v5333_v54  ;;  %v1714_v45 = vmul.f32 %v3248_v50, %v4507_v4  ;;  %v1715_v36 = vmul.f32 %v3249_v24, %v4469_v49  ;;  %v1716_v55 = vmul.f32 %v3249_v24, %v4507_v4  ;;  %v3130_v31 = vunpack.i.l.bf16 %v6336_v46 }
 0x1a8   : > { %6329 = vst [vmem:[#allocation55_spill] sm:$0xff] %v5335_v2  ;;  %v1705_v2 = vmul.f32 %v3238_v14, %v4469_v49  ;;  %v1706_v54 = vmul.f32 %v3238_v14, %v4507_v4  ;;  %v1341_v50 = vmul.f32 %v3146_v58, %v4046_v22  ;;  %v1342_v21 = vmul.f32 %v3146_v58, %v4048_v53 }
 0x1a9   : > { %6331 = vst [vmem:[#allocation60_spill] sm:$0xff] %v5341_v39  ;;  %v1731_v24 = vmul.f32 %v3269_v44, %v4469_v49  ;;  %v1732_v6 = vmul.f32 %v3269_v44, %v4507_v4  ;;  %v6337_v39 = vld [vmem:[#allocation76_spill] sm:$0xff]  ;;  %v1728_v13 = vmul.f32 %v3264_v40, %v4507_v4  ;;  %v2159_v46 = vadd.f32 %v1973_v11, %v6338_v20 }
 0x1aa   : > { %6332 = vst [vmem:[#allocation61_spill] sm:$0xff] %v5343_v47  ;;  %v1727_v47 = vmul.f32 %v3264_v40, %v4469_v49  ;;  %v3253_v12 = vunpack.i.l.bf16 %v6337_v39  ;;  %v2160_v33 = vadd.f32 %v1973_v11, %v6339_v59  ;;  %v5379_v58 = vadd.f32 %v1713_v17, %v5286_v19  ;;  %v6346_v17 = vld [vmem:[#allocation74_spill] sm:$0xff] }
 0x1ab   : > { %v5382_v41 = vadd.f32 %v1714_v45, %v5290_v8  ;;  %v5384_v44 = vadd.f32 %v1715_v36, %v1421_v3  ;;  %v5386_v10 = vadd.f32 %v1716_v55, %v1422_v57  ;;  %v2133_v40 = vadd.f32 %v1908_v26, %v6344_v42  ;;  %v1893_v59 = vpop.permute.xlu1 %1892  ;;  %v6347_v8 = vld [vmem:[#allocation109_spill] sm:$0xff]  ;;  %v6348_v3 = vld [vmem:[#allocation110_spill] sm:$0xff] }
 0x1ac   : > { %2067 = vperm.xlu1 %3321, %v1873_v28   ;;  %v5376_v14 = vpop.permute.xlu0 %1992  ;;  %6340 = vst [vmem:[#allocation106_spill] sm:$0xff] %v5379_v58  ;;  %v2134_v20 = vadd.f32 %v1908_v26, %v6345_v37  ;;  %v1437_v11 = vadd.f32 %v1341_v50, %v5188_v34  ;;  %v2127_v45 = vadd.f32 %v1893_v59, %v6347_v8  ;;  %v6349_v42 = vld [vmem:[#allocation18_spill] sm:$0xff]  ;;  %v6350_v26 = vld [vmem:[#allocation19_spill] sm:$0xff] }
 0x1ad   : > { %2072 = vperm.xlu2 %3322, %v1874_v52   ;;  %6341 = vst [vmem:[#allocation39_spill] sm:$0xff] %v5382_v41  ;;  %v1988_v56 = vpop.permute.xlu2 %1987  ;;  %v1438_v52 = vadd.f32 %v1342_v21, %v5191_v27  ;;  %v2128_v36 = vadd.f32 %v1893_v59, %v6348_v3  ;;  %v1411_v37 = vadd.f32 %v1315_v48, %v6349_v42  ;;  %v3254_v21 = vunpack.i.h.bf16 %v6337_v39  ;;  %v6357_v8 = vld [vmem:[#allocation26_spill] sm:$0xff]  ;;  %v6358_v3 = vld [vmem:[#allocation27_spill] sm:$0xff] }
 0x1ae   : > { %6342 = vst [vmem:[#allocation40_spill] sm:$0xff] %v5384_v44  ;;  %v2165_v19 = vadd.f32 %v1988_v56, %v5106_v30  ;;  %v2166_v28 = vadd.f32 %v1988_v56, %v6346_v17  ;;  %v5396_v57 = vadd.f32 %v1731_v24, %v1437_v11  ;;  %v1412_v41 = vadd.f32 %v1316_v7, %v6350_v26  ;;  %v1869_v56 = vld [vmem:[%s5949_s2 + $0x100] sm:$0xff]  ;;  %v6354_v17 = vld [vmem:[#allocation92_spill] sm:$0xff]  ;;  %v6359_v42 = vld [vmem:[#allocation75_spill] sm:$0xff] }
 0x1af   : > { %6343 = vst [vmem:[#allocation16_spill] sm:$0xff] %v5386_v10  ;;  %v5398_v55 = vadd.f32 %v1732_v6, %v1438_v52  ;;  %v5406_v27 = vmul.f32 %v2159_v46, %v2127_v45  ;;  %v5408_v30 = vmul.f32 %v2160_v33, %v2128_v36  ;;  %v1872_v6 = vld [vmem:[%s5949_s2 + $0x118] sm:$0xff]  ;;  %v3320_v48 = vunpack.i.h.bf16 %v5124_v32  ;;  %v6360_v26 = vld [vmem:[#allocation47_spill] sm:$0xff]  ;;  %v6417_v10 = vld [vmem:[#allocation54_spill] sm:$0xff] }
 0x1b0   : > { %v5402_v58 = vmul.f32 %v2165_v19, %v2133_v40  ;;  %v5404_v34 = vmul.f32 %v2166_v28, %v2134_v20  ;;  %v5418_v7 = vadd.f32 %v1705_v2, %v1411_v37  ;;  %v5420_v50 = vadd.f32 %v1706_v54, %v1412_v41  ;;  %v6419_v44 = vld [vmem:[#allocation53_spill] sm:$0xff] }
 0x1b1   : > { %v1327_v24 = vmul.f32 %v3130_v31, %v4046_v22  ;;  %v1328_v33 = vmul.f32 %v3130_v31, %v4048_v53  ;;  %v1329_v46 = vmul.f32 %v3131_v5, %v4046_v22  ;;  %v1330_v40 = vmul.f32 %v3131_v5, %v4048_v53 }
 0x1b2   : > { %6351 = vst [vmem:[#allocation17_spill] sm:$0xff] %v5402_v58  ;;  %v3145_v20 = vunpack.i.l.bf16 %v6334_v18  ;;  %v1717_v39 = vmul.f32 %v3253_v12, %v4469_v49  ;;  %v1718_v32 = vmul.f32 %v3253_v12, %v4507_v4  ;;  %v5432_v41 = vadd.f32 %v1727_v47, %v5305_v29  ;;  %v6353_v12 = vld [vmem:[#allocation70_spill] sm:$0xff]  ;;  %v6355_v47 = vld [vmem:[#allocation23_spill] sm:$0xff] }
 0x1b3   : > { %6352 = vst [vmem:[#allocation87_spill] sm:$0xff] %v5404_v34  ;;  %v5435_v54 = vadd.f32 %v1728_v13, %v5308_v15  ;;  %v1719_v31 = vmul.f32 %v3254_v21, %v4469_v49  ;;  %v1720_v5 = vmul.f32 %v3254_v21, %v4507_v4  ;;  %v1739_v18 = vmul.f32 %v3320_v48, %v4469_v49  ;;  %v1903_v52 = vpop.permute.xlu1 %1902  ;;  %v6356_v15 = vld [vmem:[#allocation67_spill] sm:$0xff] }
 0x1b4   : > { %2062 = vperm.xlu1 %3321, %v1872_v6   ;;  %v5429_v2 = vpop.permute.xlu0 %1997  ;;  %v1740_v59 = vmul.f32 %v3320_v48, %v4507_v4  ;;  %v2163_v19 = vadd.f32 %v5347_v25, %v6353_v12  ;;  %v2164_v29 = vadd.f32 %v5347_v25, %v6354_v17  ;;  %v2131_v13 = vadd.f32 %v1903_v52, %v6355_v47 }
 0x1b5   : > { %2047 = vperm.xlu2 %3322, %v1869_v56   ;;  %v5441_v11 = vpop.permute.xlu2 %1922  ;;  %v2132_v28 = vadd.f32 %v1903_v52, %v6356_v15  ;;  %v1425_v45 = vadd.f32 %v1329_v46, %v6357_v8  ;;  %v1426_v36 = vadd.f32 %v1330_v40, %v6358_v3  ;;  %v1423_v37 = vadd.f32 %v1327_v24, %v6359_v42 }
 0x1b6   : > { %v1424_v56 = vadd.f32 %v1328_v33, %v6360_v26  ;;  %v3315_v6 = vunpack.i.h.bf16 %v5339_v51  ;;  %v3314_v21 = vunpack.i.l.bf16 %v5339_v51  ;;  %v5455_v48 = vmul.f32 %v2163_v19, %v2131_v13 }
 0x1b7   : > { %v5457_v12 = vmul.f32 %v2164_v29, %v2132_v28  ;;  %v5459_v25 = vadd.f32 %v1719_v31, %v1425_v45  ;;  %v5461_v17 = vadd.f32 %v1720_v5, %v1426_v36  ;;  %v5463_v52 = vadd.f32 %v1717_v39, %v1423_v37  ;;  %v6367_v28 = vld [vmem:[#allocation20_spill] sm:$0xff] }
 0x1b8   : > { %6361 = vst [vmem:[#allocation88_spill] sm:$0xff] %v5455_v48  ;;  %v5465_v46 = vadd.f32 %v1718_v32, %v1424_v56  ;;  %v3268_v24 = vunpack.i.l.bf16 %v6335_v63  ;;  %v2254_v33 = vmax.f32 %v5406_v27, %v5455_v48  ;;  %v1339_v40 = vmul.f32 %v3145_v20, %v4046_v22  ;;  %v6370_v56 = vld [vmem:[#allocation7_spill] sm:$0xff] }
 0x1b9   : > { %6362 = vst [vmem:[#allocation34_spill] sm:$0xff] %v5457_v12  ;;  %v2275_v51 = vmax.f32 %v5408_v30, %v5457_v12  ;;  %v3243_v19 = vunpack.i.l.bf16 %v5203_v60  ;;  %v1340_v31 = vmul.f32 %v3145_v20, %v4048_v53  ;;  %v3244_v5 = vunpack.i.h.bf16 %v5203_v60 }
 0x1ba   : > { %6363 = vst [vmem:[#allocation69_spill] sm:$0xff] %v5461_v17  ;;  %v5477_v32 = vadd.f32 %v1739_v18, %v5293_v16  ;;  %v5480_v63 = vadd.f32 %v1740_v59, %v5296_v0  ;;  %v1733_v29 = vmul.f32 %v3314_v21, %v4469_v49  ;;  %v1734_v47 = vmul.f32 %v3314_v21, %v4507_v4  ;;  %v6366_v16 = vld [vmem:[#allocation6_spill] sm:$0xff]  ;;  %v6371_v21 = vld [vmem:[#allocation8_spill] sm:$0xff] }
 0x1bb   : > { %6364 = vst [vmem:[#allocation35_spill] sm:$0xff] %v5463_v52  ;;  %v1735_v13 = vmul.f32 %v3315_v6, %v4469_v49  ;;  %v1736_v22 = vmul.f32 %v3315_v6, %v4507_v4  ;;  %v1978_v53 = vpop.permute.xlu1 %1977  ;;  %v1729_v60 = vmul.f32 %v3268_v24, %v4469_v49  ;;  %v1730_v20 = vmul.f32 %v3268_v24, %v4507_v4 }
 0x1bc   : > { %6365 = vst [vmem:[#allocation28_spill] sm:$0xff] %v5465_v46  ;;  %v1933_v39 = vpop.permute.xlu0 %1932  ;;  %v2161_v18 = vadd.f32 %v1978_v53, %v6366_v16  ;;  %v2162_v0 = vadd.f32 %v1978_v53, %v6367_v28  ;;  %v1709_v59 = vmul.f32 %v3243_v19, %v4469_v49  ;;  %v1710_v8 = vmul.f32 %v3243_v19, %v4507_v4  ;;  %v6372_v19 = vld [vmem:[#allocation9_spill] sm:$0xff]  ;;  %v6374_v53 = vld [vmem:[#allocation71_spill] sm:$0xff]  ;;  %v6424_v46 = vld [vmem:[#allocation56_spill] sm:$0xff] }
 0x1bd   : > { %v5486_v15 = vpop.permute.xlu2 %1927  ;;  %v1435_v45 = vadd.f32 %v1339_v40, %v5182_v1  ;;  %v1436_v3 = vadd.f32 %v1340_v31, %v5185_v38  ;;  %v1711_v36 = vmul.f32 %v3244_v5, %v4469_v49  ;;  %v1712_v42 = vmul.f32 %v3244_v5, %v4507_v4  ;;  %v6373_v38 = vld [vmem:[#allocation11_spill] sm:$0xff]  ;;  %v6375_v16 = vld [vmem:[#allocation73_spill] sm:$0xff] }
 0x1be   : > { %v5499_v37 = vmul.f32 %v2161_v18, %v5222_v23  ;;  %v5502_v26 = vmul.f32 %v2162_v0, %v5225_v9  ;;  %v5505_v6 = vadd.f32 %v1735_v13, %v6370_v56  ;;  %v5508_v24 = vadd.f32 %v1736_v22, %v6371_v21  ;;  %v6379_v21 = vld [vmem:[#allocation46_spill] sm:$0xff] }
 0x1bf   : > { %v5511_v1 = vadd.f32 %v1733_v29, %v6372_v19  ;;  %v5514_v40 = vadd.f32 %v1734_v47, %v6373_v38  ;;  %v5520_v9 = vadd.f32 %v1729_v60, %v1435_v45  ;;  %v5522_v5 = vadd.f32 %v1730_v20, %v1436_v3  ;;  %v6376_v60 = vld [vmem:[#allocation13_spill] sm:$0xff]  ;;  %v6377_v45 = vld [vmem:[#allocation43_spill] sm:$0xff] }
 0x1c0   : > { %6368 = vst [vmem:[#allocation99_spill] sm:$0xff] %v5499_v37  ;;  %v2253_v31 = vmax.f32 %v5314_v43, %v5499_v37  ;;  %v2274_v23 = vmax.f32 %v5316_v62, %v5502_v26  ;;  %v3259_v13 = vunpack.i.h.bf16 %v5282_v35  ;;  %v3258_v22 = vunpack.i.l.bf16 %v5282_v35  ;;  %v6378_v35 = vld [vmem:[#allocation93_spill] sm:$0xff]  ;;  %v6383_v37 = vld [vmem:[#allocation62_spill] sm:$0xff] }
 0x1c1   : > { %6369 = vst [vmem:[#allocation100_spill] sm:$0xff] %v5502_v26  ;;  %v2167_v29 = vadd.f32 %v5376_v14, %v6374_v53  ;;  %v2168_v47 = vadd.f32 %v5376_v14, %v6375_v16  ;;  %v5537_v20 = vadd.f32 %v1711_v36, %v6376_v60  ;;  %v5540_v3 = vadd.f32 %v1712_v42, %v6377_v45  ;;  %v6380_v14 = vld [vmem:[#allocation48_spill] sm:$0xff]  ;;  %v6385_v42 = vld [vmem:[#allocation38_spill] sm:$0xff] }
 0x1c2   : > { %v5531_v28 = vmax.f32 %v2253_v31, %v5402_v58  ;;  %v5534_v0 = vmax.f32 %v2274_v23, %v5404_v34  ;;  %v2143_v56 = vadd.f32 %v1933_v39, %v6378_v35  ;;  %v2144_v19 = vadd.f32 %v1933_v39, %v6379_v21  ;;  %v6381_v31 = vld [vmem:[#allocation12_spill] sm:$0xff]  ;;  %v6382_v23 = vld [vmem:[#allocation21_spill] sm:$0xff] }
 0x1c3   : > { %v1913_v53 = vpop.permute.xlu1 %1912  ;;  %v5545_v16 = vadd.f32 %v1709_v59, %v6380_v14  ;;  %v5548_v17 = vadd.f32 %v1710_v8, %v6381_v31  ;;  %v6384_v60 = vld [vmem:[#allocation68_spill] sm:$0xff]  ;;  %v1721_v35 = vmul.f32 %v3258_v22, %v4469_v49  ;;  %v1722_v39 = vmul.f32 %v3258_v22, %v4507_v4  ;;  %v6391_v22 = vld [vmem:[#allocation15_spill] sm:$0xff] }
 0x1c4   : > { %v1938_v18 = vpop.permute.xlu0 %1937  ;;  %v2135_v34 = vadd.f32 %v1913_v53, %v6384_v60  ;;  %v2136_v45 = vadd.f32 %v1913_v53, %v6385_v42  ;;  %v1723_v21 = vmul.f32 %v3259_v13, %v4469_v49  ;;  %v1724_v59 = vmul.f32 %v3259_v13, %v4507_v4  ;;  %v6390_v60 = vld [vmem:[#allocation14_spill] sm:$0xff]  ;;  %v6392_v4 = vld [vmem:[#allocation63_spill] sm:$0xff]  ;;  %v6393_v13 = vld [vmem:[#allocation65_spill] sm:$0xff] }
 0x1c5   : > { %v2013_v38 = vpop.permute.xlu2 %2012 }
 0x1c6   : > { %v2175_v26 = vadd.f32 %v2013_v38, %v6382_v23  ;;  %v2176_v36 = vadd.f32 %v2013_v38, %v6383_v37  ;;  %v5562_v31 = vmul.f32 %v2167_v29, %v2135_v34  ;;  %v5564_v23 = vmul.f32 %v2168_v47, %v2136_v45  ;;  %v6394_v34 = vld [vmem:[#allocation45_spill] sm:$0xff]  ;;  %v6395_v47 = vld [vmem:[#allocation22_spill] sm:$0xff] }
 0x1c7   : > { %v5569_v42 = vadd.f32 %v1723_v21, %v6390_v60  ;;  %v5572_v49 = vadd.f32 %v1724_v59, %v6391_v22  ;;  %v2169_v29 = vadd.f32 %v5429_v2, %v6394_v34  ;;  %v6398_v22 = vld [vmem:[#allocation79_spill] sm:$0xff] }
 0x1c8   : > { %v5558_v14 = vmul.f32 %v2175_v26, %v2143_v56  ;;  %v5560_v8 = vmul.f32 %v2176_v36, %v2144_v19  ;;  %6388 = vst [vmem:[#allocation31_spill] sm:$0xff] %v5562_v31  ;;  %v2256_v37 = vmax.f32 %v2254_v33, %v5562_v31  ;;  %v2277_v38 = vmax.f32 %v2275_v51, %v5564_v23  ;;  %v6396_v51 = vld [vmem:[#allocation111_spill] sm:$0xff]  ;;  %v6397_v36 = vld [vmem:[#allocation77_spill] sm:$0xff] }
 0x1c9   : > { %6389 = vst [vmem:[#allocation41_spill] sm:$0xff] %v5564_v23  ;;  %v5575_v26 = vadd.f32 %v1721_v35, %v6392_v4  ;;  %v5578_v56 = vadd.f32 %v1722_v39, %v6393_v13  ;;  %v2170_v33 = vadd.f32 %v5429_v2, %v6395_v47  ;;  %v2145_v19 = vadd.f32 %v1938_v18, %v6396_v51  ;;  %v6399_v4 = vld [vmem:[#allocation104_spill] sm:$0xff]  ;;  %v6400_v39 = vld [vmem:[#allocation105_spill] sm:$0xff] }
 0x1ca   : > { %6386 = vst [vmem:[#allocation29_spill] sm:$0xff] %v5558_v14  ;;  %v2146_v45 = vadd.f32 %v1938_v18, %v6397_v36 }
 0x1cb   : > { %6387 = vst [vmem:[#allocation30_spill] sm:$0xff] %v5560_v8 }
 0x1cc   : > { %v2023_v53 = vpop.permute.xlu0 %2022 }
 0x1cd   : > { %v2018_v21 = vpop.permute.xlu2 %2017  ;;  %v1918_v60 = vpop.permute.xlu1 %1917 }
 0x1ce   : > { %v2177_v59 = vadd.f32 %v2018_v21, %v5176_v61  ;;  %v2178_v35 = vadd.f32 %v2018_v21, %v6398_v22  ;;  %v2137_v23 = vadd.f32 %v1918_v60, %v6399_v4  ;;  %v2138_v13 = vadd.f32 %v1918_v60, %v6400_v39  ;;  %v6405_v21 = vld [vmem:[#allocation102_spill] sm:$0xff] }
 0x1cf   : > { %v2139_v60 = vadd.f32 %v5441_v11, %v6405_v21 }
 0x1d0   : > { %v5590_v31 = vmul.f32 %v2177_v59, %v2145_v19  ;;  %v5592_v34 = vmul.f32 %v2178_v35, %v2146_v45  ;;  %v5594_v58 = vmul.f32 %v2169_v29, %v2137_v23  ;;  %v5596_v2 = vmul.f32 %v2170_v33, %v2138_v13  ;;  %v6406_v19 = vld [vmem:[#allocation103_spill] sm:$0xff]  ;;  %v6408_v29 = vld [vmem:[#allocation52_spill] sm:$0xff] }
 0x1d1   : > { %v2140_v45 = vadd.f32 %v5441_v11, %v6406_v19  ;;  %v6407_v59 = vld [vmem:[#allocation51_spill] sm:$0xff]  ;;  %v6411_v11 = vld [vmem:[#allocation97_spill] sm:$0xff] }
 0x1d2   : > { %6401 = vst [vmem:[#allocation42_spill] sm:$0xff] %v5590_v31  ;;  %v2257_v18 = vmax.f32 %v5531_v28, %v5594_v58  ;;  %v2278_v61 = vmax.f32 %v5534_v0, %v5596_v2  ;;  %v2141_v19 = vadd.f32 %v5486_v15, %v6411_v11 }
 0x1d3   : > { %6402 = vst [vmem:[#allocation107_spill] sm:$0xff] %v5592_v34 }
 0x1d4   : > { %6403 = vst [vmem:[#allocation108_spill] sm:$0xff] %v5594_v58  ;;  %v2028_v47 = vpop.permute.xlu0 %2027  ;;  %v6423_v58 = vld [vmem:[#allocation50_spill] sm:$0xff] }
 0x1d5   : > { %6404 = vst [vmem:[#allocation114_spill] sm:$0xff] %v5596_v2  ;;  %v1953_v51 = vpop.permute.xlu2 %1952  ;;  %v2003_v36 = vpop.permute.xlu1 %2002 }
 0x1d6   : > { %v2171_v23 = vadd.f32 %v2003_v36, %v6407_v59  ;;  %v2172_v33 = vadd.f32 %v2003_v36, %v6408_v29  ;;  %v6412_v59 = vld [vmem:[#allocation86_spill] sm:$0xff] }
 0x1d7   : > { %v2142_v36 = vadd.f32 %v5486_v15, %v6412_v59  ;;  %v2179_v15 = vadd.f32 %v2023_v53, %v6417_v10  ;;  %v6418_v59 = vld [vmem:[#allocation78_spill] sm:$0xff] }
 0x1d8   : > { %v5608_v22 = vmul.f32 %v2171_v23, %v2139_v60  ;;  %v5610_v35 = vmul.f32 %v2172_v33, %v2140_v45  ;;  %v6413_v60 = vld [vmem:[#allocation24_spill] sm:$0xff]  ;;  %v6414_v23 = vld [vmem:[#allocation25_spill] sm:$0xff] }
 0x1da   : > { %6409 = vst [vmem:[#allocation115_spill] sm:$0xff] %v5608_v22  ;;  %v2258_v28 = vmax.f32 %v2256_v37, %v5608_v22  ;;  %v2279_v0 = vmax.f32 %v2277_v38, %v5610_v35  ;;  %v6422_v22 = vld [vmem:[#allocation58_spill] sm:$0xff] }
 0x1db   : > { %6410 = vst [vmem:[#allocation36_spill] sm:$0xff] %v5610_v35 }
 0x1dc   : > { %v1963_v4 = vpop.permute.xlu0 %1962  ;;  %v2260_v39 = vmax.f32 %v2258_v28, %v5558_v14  ;;  %v2281_v13 = vmax.f32 %v2279_v0, %v5560_v8 }
 0x1dd   : > { %v1958_v21 = vpop.permute.xlu2 %1957  ;;  %v2008_v2 = vpop.permute.xlu1 %2007 }
 0x1de   : > { %v2173_v45 = vadd.f32 %v2008_v2, %v6413_v60  ;;  %v2174_v29 = vadd.f32 %v2008_v2, %v6414_v23  ;;  %v2180_v60 = vadd.f32 %v2023_v53, %v6418_v59  ;;  %v2155_v2 = vadd.f32 %v1963_v4, %v6419_v44 }
 0x1e0   : > { %v5622_v37 = vmul.f32 %v2173_v45, %v2141_v19  ;;  %v5624_v38 = vmul.f32 %v2174_v29, %v2142_v36  ;;  %v6420_v19 = vld [vmem:[#allocation81_spill] sm:$0xff] }
 0x1e1   : > { %v2156_v45 = vadd.f32 %v1963_v4, %v6420_v19  ;;  %v6421_v29 = vld [vmem:[#allocation57_spill] sm:$0xff] }
 0x1e2   : > { %6415 = vst [vmem:[#allocation37_spill] sm:$0xff] %v5622_v37  ;;  %v2259_v33 = vmax.f32 %v2257_v18, %v5622_v37  ;;  %v2280_v28 = vmax.f32 %v2278_v61, %v5624_v38 }
 0x1e3   : > { %6416 = vst [vmem:[#allocation32_spill] sm:$0xff] %v5624_v38 }
 0x1e4   : > { %v5628_v0 = vpop.permute.xlu0 %2117  ;;  %v2261_v35 = vmax.f32 %v2259_v33, %v5590_v31  ;;  %v2282_v11 = vmax.f32 %v2280_v28, %v5592_v34 }
 0x1e5   : > { %v2043_v36 = vpop.permute.xlu2 %2042  ;;  %v1943_v23 = vpop.permute.xlu1 %1942 }
 0x1e6   : > { %v2187_v18 = vadd.f32 %v2043_v36, %v6421_v29  ;;  %v2188_v61 = vadd.f32 %v2043_v36, %v6422_v22  ;;  %v2147_v8 = vadd.f32 %v1943_v23, %v6423_v58  ;;  %v2148_v33 = vadd.f32 %v1943_v23, %v6424_v46  ;;  %v6427_v22 = vld [vmem:[#allocation94_spill] sm:$0xff]  ;;  %v6428_v58 = vld [vmem:[#allocation95_spill] sm:$0xff] }
 0x1e7   : > { %v2181_v36 = vadd.f32 %v2028_v47, %v6427_v22  ;;  %v2182_v38 = vadd.f32 %v2028_v47, %v6428_v58  ;;  %v6429_v46 = vld [vmem:[#allocation59_spill] sm:$0xff]  ;;  %v6430_v23 = vld [vmem:[#allocation82_spill] sm:$0xff]  ;;  %v6432_v22 = vld [vmem:[#allocation80_spill] sm:$0xff] }
 0x1e8   : > { %v5640_v52 = vmul.f32 %v2187_v18, %v2155_v2  ;;  %v5642_v28 = vmul.f32 %v2188_v61, %v2156_v45  ;;  %v5644_v10 = vmul.f32 %v2179_v15, %v2147_v8  ;;  %v5646_v53 = vmul.f32 %v2180_v60, %v2148_v33  ;;  %v6431_v33 = vld [vmem:[#allocation90_spill] sm:$0xff]  ;;  %v6433_v47 = vld [vmem:[#allocation60_spill] sm:$0xff] }
 0x1e9   : > { %v2151_v14 = vadd.f32 %v1953_v51, %v6431_v33  ;;  %v2152_v37 = vadd.f32 %v1953_v51, %v6432_v22  ;;  %v6435_v51 = vld [vmem:[#allocation91_spill] sm:$0xff] }
 0x1ea   : > { %6425 = vst [vmem:[#allocation98_spill] sm:$0xff] %v5644_v10  ;;  %v2262_v44 = vmax.f32 %v2260_v39, %v5644_v10  ;;  %v2283_v4 = vmax.f32 %v2281_v13, %v5646_v53  ;;  %v2153_v22 = vadd.f32 %v1958_v21, %v6435_v51 }
 0x1eb   : > { %6426 = vst [vmem:[#allocation33_spill] sm:$0xff] %v5646_v53 }
 0x1ec   : > { %v2113_v59 = vpop.permute.xlu0 %2112 }
 0x1ed   : > { %v1948_v29 = vpop.permute.xlu1 %1947 }
 0x1ee   : > { %v2149_v2 = vadd.f32 %v1948_v29, %v6429_v46  ;;  %v2150_v45 = vadd.f32 %v1948_v29, %v6430_v23  ;;  %v6434_v46 = vld [vmem:[#allocation61_spill] sm:$0xff] }
 0x1ef   : > { %v2108_v19 = vpop.permute.xlu2 %2107 }
 0x1f0   : > { %v5654_v18 = vmul.f32 %v2181_v36, %v2149_v2  ;;  %v5656_v8 = vmul.f32 %v2182_v38, %v2150_v45 }
 0x1f2   : > { %v2263_v15 = vmax.f32 %v2261_v35, %v5654_v18  ;;  %v2284_v39 = vmax.f32 %v2282_v11, %v5656_v8 }
 0x1f4   : > { %v2088_v13 = vpop.permute.xlu0 %2087 }
 0x1f5   : > { %v2033_v61 = vpop.permute.xlu1 %2032 }
 0x1f6   : > { %v2183_v58 = vadd.f32 %v2033_v61, %v6433_v47  ;;  %v2184_v53 = vadd.f32 %v2033_v61, %v6434_v46  ;;  %v6436_v47 = vld [vmem:[#allocation101_spill] sm:$0xff] }
 0x1f7   : > { %v2103_v60 = vpop.permute.xlu2 %2102  ;;  %v2154_v34 = vadd.f32 %v1958_v21, %v6436_v47  ;;  %v6437_v21 = vld [vmem:[#allocation83_spill] sm:$0xff] }
 0x1f8   : > { %v5664_v29 = vmul.f32 %v2183_v58, %v2151_v14  ;;  %v5666_v36 = vmul.f32 %v2184_v53, %v2152_v37 }
 0x1fa   : > { %v2264_v38 = vmax.f32 %v2262_v44, %v5664_v29  ;;  %v2285_v35 = vmax.f32 %v2283_v4, %v5666_v36 }
 0x1fc   : > { %v2266_v11 = vmax.f32 %v2264_v38, %v5640_v52  ;;  %v2287_v2 = vmax.f32 %v2285_v35, %v5642_v28  ;;  %v2083_v23 = vpop.permute.xlu0 %2082 }
 0x1fd   : > { %v2038_v33 = vpop.permute.xlu1 %2037 }
 0x1fe   : > { %v2185_v14 = vadd.f32 %v2038_v33, %v5418_v7  ;;  %v2186_v37 = vadd.f32 %v2038_v33, %v5420_v50  ;;  %v5682_v7 = vadd.f32 %v5628_v0, %v6437_v21 }
 0x1ff   : > { %v2078_v45 = vpop.permute.xlu2 %2077 }
 0x200   : > { %v2249_v53 = vmul.f32 %v2185_v14, %v2153_v22  ;;  %v2250_v61 = vmul.f32 %v2186_v37, %v2154_v34  ;;  %v6438_v34 = vld [vmem:[#allocation84_spill] sm:$0xff]  ;;  %v6440_v37 = vld [vmem:[#allocation55_spill] sm:$0xff] }
 0x202   : > { %v2265_v44 = vmax.f32 %v2263_v15, %v2249_v53  ;;  %v2286_v58 = vmax.f32 %v2284_v39, %v2250_v61  ;;  %v5686_v15 = vadd.f32 %v5628_v0, %v6438_v34  ;;  %v5689_v39 = vadd.f32 %v2113_v59, %v5505_v6 }
 0x203   : > { %v5704_v0 = vadd.f32 %v2088_v13, %v6440_v37  ;;  %v5707_v6 = vadd.f32 %v2103_v60, %v5396_v57  ;;  %v5722_v57 = vadd.f32 %v2078_v45, %v5578_v56  ;;  %v6443_v37 = vld [vmem:[#allocation42_spill] sm:$0xff] }
 0x204   : > { %v2267_v4 = vmax.f32 %v2265_v44, %v2266_v11  ;;  %v2288_v46 = vmax.f32 %v2286_v58, %v2287_v2  ;;  %v5676_v38 = vpop.permute.xlu0 %2057  ;;  %v5692_v11 = vadd.f32 %v2113_v59, %v5508_v24  ;;  %v5695_v2 = vadd.f32 %v2108_v19, %v5511_v1 }
 0x205   : > { %v2123_v10 = vpop.permute.xlu1 %2122  ;;  %v5710_v24 = vadd.f32 %v2103_v60, %v5398_v55  ;;  %v5713_v1 = vadd.f32 %v2083_v23, %v5569_v42  ;;  %v5719_v44 = vadd.f32 %v2078_v45, %v5575_v26 }
 0x206   : > { %v2268_v31 = vrot.slane %v2267_v4, 4  ;;  %v2289_v12 = vrot.slane %v2288_v46, 4  ;;  %v5729_v42 = vadd.f32 %v2123_v10, %v5477_v32  ;;  %v5732_v60 = vadd.f32 %v2123_v10, %v5480_v63 }
 0x207   : > { %v5678_v35 = vpop.permute.xlu2 %2072 }
 0x208   : > { %v2269_v51 = vmax.f32 %v2267_v4, %v2268_v31  ;;  %v2290_v48 = vmax.f32 %v2288_v46, %v2289_v12  ;;  %v5698_v12 = vadd.f32 %v2108_v19, %v5514_v40  ;;  %v6439_v31 = vld [vmem:[#allocation85_spill] sm:$0xff]  ;;  %v5716_v19 = vadd.f32 %v2083_v23, %v5572_v49 }
 0x209   : > { %v5701_v22 = vadd.f32 %v2088_v13, %v6439_v31  ;;  %v5726_v55 = vadd.f32 %v5678_v35, %v5459_v25 }
 0x20a   : > { %v2270_v50 = vrot.slane %v2269_v51, 2  ;;  %v2291_v33 = vrot.slane %v2290_v48, 2 }
 0x20c   : > { %v2271_v47 = vmax.f32 %v2269_v51, %v2270_v50  ;;  %v2292_v14 = vmax.f32 %v2290_v48, %v2291_v33  ;;  %v2053_v59 = vpop.permute.xlu0 %2052 }
 0x20d   : > { %v5739_v23 = vadd.f32 %v2053_v59, %v5537_v20  ;;  %v5742_v56 = vadd.f32 %v2053_v59, %v5540_v3 }
 0x20e   : > { %v2098_v40 = vpop.permute.xlu1 %2097  ;;  %v2272_v48 = vrot.slane %v2271_v47, 1  ;;  %v2293_v13 = vrot.slane %v2292_v14, 1 }
 0x20f   : > { %v2048_v58 = vpop.permute.xlu2 %2047  ;;  %v5751_v32 = vadd.f32 %v2098_v40, %v5520_v9  ;;  %v5754_v63 = vadd.f32 %v2098_v40, %v5522_v5  ;;  %v6444_v40 = vld [vmem:[#allocation98_spill] sm:$0xff] }
 0x210   : > { %v5734_v49 = vmax.f32 %v2271_v47, %v2272_v48  ;;  %v5736_v26 = vmax.f32 %v2292_v14, %v2293_v13  ;;  %v5745_v45 = vadd.f32 %v2048_v58, %v5545_v16  ;;  %v5748_v25 = vadd.f32 %v2048_v58, %v5548_v17 }
 0x212   : > { %v2323_v10 = vsub.f32 %v2249_v53, %v5734_v49  ;;  %v2324_v20 = vsub.f32 %v2250_v61, %v5736_v26  ;;  %v2297_v3 = vsub.f32 %v5406_v27, %v5734_v49  ;;  %v2298_v16 = vsub.f32 %v5408_v30, %v5736_v26 }
 0x213   : > { %v2295_v17 = vsub.f32 %v5314_v43, %v5734_v49  ;;  %v2296_v9 = vsub.f32 %v5316_v62, %v5736_v26  ;;  %v2325_v5 = vsub.f32 %v5640_v52, %v5734_v49  ;;  %v2326_v53 = vsub.f32 %v5642_v28, %v5736_v26 }
 0x214   : > { %v2383_v4 = vmul.f32 1.442695, %v2323_v10  ;;  %v2385_v61 = vmul.f32 1.442695, %v2324_v20  ;;  %v2331_v46 = vmul.f32 1.442695, %v2297_v3  ;;  %v2319_v27 = vsub.f32 %v5654_v18, %v5734_v49 }
 0x215   : > { %v2333_v51 = vmul.f32 1.442695, %v2298_v16  ;;  %v2327_v30 = vmul.f32 1.442695, %v2295_v17  ;;  %v2329_v21 = vmul.f32 1.442695, %v2296_v9  ;;  %v2321_v43 = vsub.f32 %v5664_v29, %v5734_v49 }
 0x216   : > { %v2093_v50 = vpop.permute.xlu1 %2092  ;;  %3323 = vpow2.f32 %v2383_v4  ;;  %v2387_v28 = vmul.f32 1.442695, %v2325_v5  ;;  %v2389_v33 = vmul.f32 1.442695, %v2326_v53  ;;  %v2375_v34 = vmul.f32 1.442695, %v2319_v27 }
 0x217   : > { %v5775_v62 = vadd.f32 %v2093_v50, %v5432_v41  ;;  %v5778_v52 = vadd.f32 %v2093_v50, %v5435_v54  ;;  %3325 = vpow2.f32 %v2385_v61  ;;  %v2379_v31 = vmul.f32 1.442695, %v2321_v43  ;;  %v6441_v29 = vld [vmem:[#allocation88_spill] sm:$0xff]  ;;  %v6442_v41 = vld [vmem:[#allocation34_spill] sm:$0xff]  ;;  %v6445_v16 = vld [vmem:[#allocation107_spill] sm:$0xff] }
 0x218   : > { %3327 = vpow2.f32 %v2331_v46  ;;  %v2320_v18 = vsub.f32 %v5656_v8, %v5736_v26  ;;  %v2322_v47 = vsub.f32 %v5666_v36, %v5736_v26  ;;  %v2301_v14 = vsub.f32 %v6441_v29, %v5734_v49  ;;  %v6446_v9 = vld [vmem:[#allocation33_spill] sm:$0xff] }
 0x219   : > { %3329 = vpow2.f32 %v2333_v51  ;;  %v2302_v54 = vsub.f32 %v6442_v41, %v5736_v26  ;;  %v2315_v59 = vsub.f32 %v6443_v37, %v5734_v49  ;;  %v2317_v48 = vsub.f32 %v6444_v40, %v5734_v49  ;;  %v6447_v53 = vld [vmem:[#allocation37_spill] sm:$0xff] }
 0x21a   : > { %3331 = vpow2.f32 %v2327_v30  ;;  %v2377_v13 = vmul.f32 1.442695, %v2320_v18  ;;  %v2381_v58 = vmul.f32 1.442695, %v2322_v47  ;;  %v2339_v8 = vmul.f32 1.442695, %v2301_v14 }
 0x21b   : > { %3333 = vpow2.f32 %v2329_v21  ;;  %v2341_v10 = vmul.f32 1.442695, %v2302_v54  ;;  %v2367_v36 = vmul.f32 1.442695, %v2315_v59  ;;  %v2371_v20 = vmul.f32 1.442695, %v2317_v48 }
 0x21c   : > { %v3324_v3 = vpop.eup %3323  ;;  %3335 = vpow2.f32 %v2387_v28  ;;  %v2316_v17 = vsub.f32 %v6445_v16, %v5736_v26  ;;  %v2318_v5 = vsub.f32 %v6446_v9, %v5736_v26  ;;  %v2311_v4 = vsub.f32 %v6447_v53, %v5734_v49  ;;  %v6448_v51 = vld [vmem:[#allocation29_spill] sm:$0xff]  ;;  %v6449_v21 = vld [vmem:[#allocation32_spill] sm:$0xff]  ;;  %v6450_v28 = vld [vmem:[#allocation35_spill] sm:$0xff] }
 0x21d   : > { %v3326_v61 = vpop.eup %3325  ;;  %3337 = vpow2.f32 %v2389_v33  ;;  %v2419_v27 = vmul.f32 %v3324_v3, %v5682_v7  ;;  %v2313_v30 = vsub.f32 %v6448_v51, %v5734_v49  ;;  %v2312_v50 = vsub.f32 %v6449_v21, %v5736_v26  ;;  %v6451_v47 = vld [vmem:[#allocation28_spill] sm:$0xff] }
 0x21e   : > { %v2068_v46 = vpop.permute.xlu1 %2067  ;;  %v5803_v43 = vpop.eup %3327  ;;  %v2420_v14 = vmul.f32 %v3326_v61, %v5686_v15  ;;  %3339 = vpow2.f32 %v2375_v34  ;;  %v2369_v41 = vmul.f32 1.442695, %v2316_v17  ;;  %v2373_v54 = vmul.f32 1.442695, %v2318_v5  ;;  %v6454_v5 = vld [vmem:[#allocation115_spill] sm:$0xff] }
 0x21f   : > { %v5806_v18 = vadd.f32 %v2068_v46, %v6450_v28  ;;  %v5809_v29 = vadd.f32 %v2068_v46, %v6451_v47  ;;  %v5812_v33 = vpop.eup %3329  ;;  %v5816_v7 = vmul.f32 %v5803_v43, %v5739_v23  ;;  %3341 = vpow2.f32 %v2379_v31  ;;  %v6452_v23 = vld [vmem:[#allocation30_spill] sm:$0xff] }
 0x220   : > { %v5818_v37 = vpop.eup %3331  ;;  %v5822_v59 = vmul.f32 %v5812_v33, %v5742_v56  ;;  %3343 = vpow2.f32 %v2377_v13  ;;  %v2359_v40 = vmul.f32 1.442695, %v2311_v4  ;;  %v2363_v48 = vmul.f32 1.442695, %v2313_v30  ;;  %v6453_v56 = vld [vmem:[#allocation108_spill] sm:$0xff] }
 0x221   : > { %v5824_v15 = vpop.eup %3333  ;;  %v5828_v34 = vmul.f32 %v5818_v37, %v5745_v45  ;;  %3345 = vpow2.f32 %v2381_v58  ;;  %v2314_v31 = vsub.f32 %v6452_v23, %v5736_v26  ;;  %v2361_v16 = vmul.f32 1.442695, %v2312_v50 }
 0x222   : > { %v3336_v17 = vpop.eup %3335  ;;  %v5834_v9 = vmul.f32 %v5824_v15, %v5748_v25  ;;  %3347 = vpow2.f32 %v2339_v8  ;;  %v2307_v13 = vsub.f32 %v6453_v56, %v5734_v49  ;;  %v2309_v53 = vsub.f32 %v6454_v5, %v5734_v49 }
 0x223   : > { %v3338_v4 = vpop.eup %3337  ;;  %v2438_v45 = vpack.c.bf16 %v3336_v17, %v3324_v3  ;;  %v2421_v58 = vmul.f32 %v3336_v17, %v5729_v42  ;;  %3349 = vpow2.f32 %v2341_v10  ;;  %v2365_v46 = vmul.f32 1.442695, %v2314_v31  ;;  %v6455_v10 = vld [vmem:[#allocation40_spill] sm:$0xff] }
 0x224   : > { %v3340_v51 = vpop.eup %3339  ;;  %v2439_v30 = vpack.c.bf16 %v3338_v4, %v3326_v61  ;;  %v2422_v21 = vmul.f32 %v3338_v4, %v5732_v60  ;;  %3351 = vpow2.f32 %v2367_v36  ;;  %v2351_v25 = vmul.f32 1.442695, %v2307_v13  ;;  %v6456_v17 = vld [vmem:[#allocation16_spill] sm:$0xff] }
 0x225   : > { %v3342_v50 = vpop.eup %3341  ;;  %2463 = vmatpush.bf16.msra.mxu0 %v2438_v45  ;;  %v2454_v8 = vpack.c.bf16 %v2421_v58, %v2419_v27  ;;  %v2415_v47 = vmul.f32 %v3340_v51, %v5695_v2  ;;  %3353 = vpow2.f32 %v2371_v20  ;;  %v2355_v23 = vmul.f32 1.442695, %v2309_v53  ;;  %v6457_v27 = vld [vmem:[#allocation114_spill] sm:$0xff]  ;;  %v6458_v53 = vld [vmem:[#allocation36_spill] sm:$0xff] }
 0x226   : > { %v2063_v28 = vpop.permute.xlu1 %2062  ;;  %v3344_v56 = vpop.eup %3343  ;;  %2489 = vmatpush.bf16.msra.mxu2 %v2439_v30  ;;  %v2455_v3 = vpack.c.bf16 %v2422_v21, %v2420_v14  ;;  %v2436_v42 = vpack.c.bf16 %v3342_v50, %v3340_v51  ;;  %v2417_v60 = vmul.f32 %v3342_v50, %v5689_v39  ;;  %3355 = vpow2.f32 %v2369_v41  ;;  %v6459_v50 = vld [vmem:[#allocation17_spill] sm:$0xff] }
 0x227   : > { %v2195_v31 = vadd.f32 %v2063_v28, %v6455_v10  ;;  %v2196_v61 = vadd.f32 %v2063_v28, %v6456_v17  ;;  %v3346_v5 = vpop.eup %3345  ;;  %2476 = vmatpush.bf16.msra.mxu1 %v2454_v8  ;;  %v2416_v36 = vmul.f32 %v3344_v56, %v5698_v12  ;;  %v2308_v2 = vsub.f32 %v6457_v27, %v5736_v26  ;;  %v6460_v28 = vld [vmem:[#allocation31_spill] sm:$0xff] }
 0x228   : > { %v5849_v20 = vpop.eup %3347  ;;  %2502 = vmatpush.bf16.msra.mxu3 %v2455_v3  ;;  %v2437_v13 = vpack.c.bf16 %v3346_v5, %v3344_v56  ;;  %v2418_v14 = vmul.f32 %v3346_v5, %v5692_v11  ;;  %3357 = vpow2.f32 %v2373_v54  ;;  %v2310_v4 = vsub.f32 %v6458_v53, %v5736_v26  ;;  %v6461_v3 = vld [vmem:[#allocation87_spill] sm:$0xff]  ;;  %v6464_v53 = vld [vmem:[#allocation100_spill] sm:$0xff] }
 0x229   : > { %v5854_v45 = vpop.eup %3349  ;;  %2464 = vmatpush.bf16.msra.mxu0 %v2436_v42  ;;  %v5857_v39 = vmul.f32 %v5849_v20, %v2195_v31  ;;  %v2452_v12 = vpack.c.bf16 %v2417_v60, %v2415_v47  ;;  %3359 = vpow2.f32 %v2359_v40  ;;  %v2353_v41 = vmul.f32 1.442695, %v2308_v2 }
 0x22a   : > { %v3352_v58 = vpop.eup %3351  ;;  %2490 = vmatpush.bf16.msra.mxu2 %v2437_v13  ;;  %v5860_v51 = vmul.f32 %v5854_v45, %v2196_v61  ;;  %v2453_v30 = vpack.c.bf16 %v2418_v14, %v2416_v36  ;;  %3361 = vpow2.f32 %v2363_v48  ;;  %v2357_v11 = vmul.f32 1.442695, %v2310_v4  ;;  %v6463_v13 = vld [vmem:[#allocation99_spill] sm:$0xff] }
 0x22b   : > { %v3354_v54 = vpop.eup %3353  ;;  %2477 = vmatpush.bf16.msra.mxu1 %v2452_v12  ;;  %v2411_v21 = vmul.f32 %v3352_v58, %v5751_v32  ;;  %3363 = vpow2.f32 %v2361_v16  ;;  %v2303_v8 = vsub.f32 %v6459_v50, %v5734_v49  ;;  %v2305_v40 = vsub.f32 %v6460_v28, %v5734_v49  ;;  %v6462_v32 = vld [vmem:[#allocation41_spill] sm:$0xff] }
 0x22c   : > { %2503 = vmatpush.bf16.msra.mxu3 %v2453_v30  ;;  %v2434_v47 = vpack.c.bf16 %v3354_v54, %v3352_v58  ;;  %v2413_v56 = vmul.f32 %v3354_v54, %v5707_v6  ;;  %3365 = vpow2.f32 %v2365_v46  ;;  %v2304_v48 = vsub.f32 %v6461_v3, %v5736_v26  ;;  %v3356_v42 = vpop.eup %3355 }
 0x22d   : > { %3367 = vpow2.f32 %v2351_v25  ;;  %v2343_v10 = vmul.f32 1.442695, %v2303_v8  ;;  %v2347_v31 = vmul.f32 1.442695, %v2305_v40  ;;  %v2306_v16 = vsub.f32 %v6462_v32, %v5736_v26 }
 0x22e   : > { %v3358_v17 = vpop.eup %3357  ;;  %2465 = vmatpush.bf16.msra.mxu0 %v2434_v47  ;;  %v2450_v61 = vpack.c.bf16 %v2413_v56, %v2411_v21  ;;  %v2412_v5 = vmul.f32 %v3356_v42, %v5754_v63  ;;  %3369 = vpow2.f32 %v2355_v23  ;;  %v2345_v60 = vmul.f32 1.442695, %v2304_v48 }
 0x22f   : > { %v3360_v36 = vpop.eup %3359  ;;  %v2435_v6 = vpack.c.bf16 %v3358_v17, %v3356_v42  ;;  %v2414_v46 = vmul.f32 %v3358_v17, %v5710_v24  ;;  %3371 = vpow2.f32 %v2353_v41  ;;  %v2349_v27 = vmul.f32 1.442695, %v2306_v16  ;;  %v6467_v16 = vld [vmem:[#allocation39_spill] sm:$0xff] }
 0x230   : > { %v3362_v2 = vpop.eup %3361  ;;  %2478 = vmatpush.bf16.msra.mxu1 %v2450_v61  ;;  %v2407_v25 = vmul.f32 %v3360_v36, %v5701_v22  ;;  %3373 = vpow2.f32 %v2357_v11  ;;  %v2299_v14 = vsub.f32 %v6463_v13, %v5734_v49  ;;  %v2300_v4 = vsub.f32 %v6464_v53, %v5736_v26 }
 0x231   : > { %v3364_v63 = vpop.eup %3363  ;;  %2491 = vmatpush.bf16.msra.mxu2 %v2435_v6  ;;  %v2451_v23 = vpack.c.bf16 %v2414_v46, %v2412_v5  ;;  %v2432_v12 = vpack.c.bf16 %v3362_v2, %v3360_v36  ;;  %v2409_v58 = vmul.f32 %v3362_v2, %v5775_v62  ;;  %3375 = vpow2.f32 %v2343_v10 }
 0x232   : > { %v3366_v24 = vpop.eup %3365  ;;  %v2408_v41 = vmul.f32 %v3364_v63, %v5704_v0  ;;  %3377 = vpow2.f32 %v2347_v31  ;;  %v2335_v30 = vmul.f32 1.442695, %v2299_v14  ;;  %v2337_v22 = vmul.f32 1.442695, %v2300_v4  ;;  %v6466_v31 = vld [vmem:[#allocation106_spill] sm:$0xff] }
 0x233   : > { %v3368_v11 = vpop.eup %3367  ;;  %2504 = vmatpush.bf16.msra.mxu3 %v2451_v23  ;;  %2466 = vmatpush.bf16.msra.mxu0 %v2432_v12  ;;  %v2433_v49 = vpack.c.bf16 %v3366_v24, %v3364_v63  ;;  %v2448_v54 = vpack.c.bf16 %v2409_v58, %v2407_v25  ;;  %v2410_v26 = vmul.f32 %v3366_v24, %v5778_v52  ;;  %3379 = vpow2.f32 %v2345_v60  ;;  %v2423_v60 = vld [vmem:[%s5950_s3] sm:$0xff] }
 0x234   : > { %v3370_v21 = vpop.eup %3369  ;;  %v2403_v50 = vmul.f32 %v3368_v11, %v5719_v44  ;;  %3381 = vpow2.f32 %v2349_v27  ;;  %v2424_v62 = vpack.c.bf16 %v5803_v43, %v5818_v37  ;;  %v2425_v0 = vpack.c.bf16 %v5812_v33, %v5824_v15 }
 0x235   : > { %v3372_v8 = vpop.eup %3371  ;;  %2492 = vmatpush.bf16.msra.mxu2 %v2433_v49  ;;  %2479 = vmatpush.bf16.msra.mxu1 %v2448_v54  ;;  %v2449_v28 = vpack.c.bf16 %v2410_v26, %v2408_v41  ;;  %v2430_v40 = vpack.c.bf16 %v3370_v21, %v3368_v11  ;;  %v2405_v47 = vmul.f32 %v3370_v21, %v5713_v1  ;;  %3383 = vpow2.f32 %v2335_v30  ;;  %v6465_v1 = vld [vmem:[#allocation69_spill] sm:$0xff] }
 0x236   : > { %v3374_v52 = vpop.eup %3373  ;;  %v2404_v56 = vmul.f32 %v3372_v8, %v5722_v57  ;;  %3385 = vpow2.f32 %v2337_v22  ;;  %v2440_v44 = vpack.c.bf16 %v5816_v7, %v5828_v34  ;;  %v2441_v43 = vpack.c.bf16 %v5822_v59, %v5834_v9 }
 0x237   : > { %v3376_v37 = vpop.eup %3375  ;;  %2505 = vmatpush.bf16.msra.mxu3 %v2449_v28  ;;  %2467 = vmatpush.bf16.msra.mxu0 %v2430_v40  ;;  %v2431_v33 = vpack.c.bf16 %v3374_v52, %v3372_v8  ;;  %v2446_v15 = vpack.c.bf16 %v2405_v47, %v2403_v50  ;;  %v2406_v3 = vmul.f32 %v3374_v52, %v5716_v19  ;;  %v2457_v2 = vunpack.c.l.b16 %v2423_v60 }
 0x238   : > { %v3378_v48 = vpop.eup %3377  ;;  %v2200_v42 = vadd.f32 %v5678_v35, %v6465_v1  ;;  %v2399_v57 = vmul.f32 %v3376_v37, %v5806_v18  ;;  %v2193_v32 = vadd.f32 %v5676_v38, %v6466_v31  ;;  %v2194_v19 = vadd.f32 %v5676_v38, %v6467_v16 }
 0x239   : > { %v3380_v10 = vpop.eup %3379  ;;  %2493 = vmatpush.bf16.msra.mxu2 %v2431_v33  ;;  %2480 = vmatpush.bf16.msra.mxu1 %v2446_v15  ;;  %v2447_v7 = vpack.c.bf16 %v2406_v3, %v2404_v56  ;;  %v2428_v34 = vpack.c.bf16 %v3378_v48, %v3376_v37  ;;  %v2401_v59 = vmul.f32 %v3378_v48, %v5726_v55  ;;  %v2458_v13 = vunpack.c.h.b16 %v2423_v60 }
 0x23a   : > { %v3382_v9 = vpop.eup %3381  ;;  %v2400_v17 = vmul.f32 %v3380_v10, %v5809_v29  ;;  %v2459_v14 = vpack.c.b16 %v2457_v2, %v2457_v2 }
 0x23b   : > { %v3384_v61 = vpop.eup %3383  ;;  %2506 = vmatpush.bf16.msra.mxu3 %v2447_v7  ;;  %2468 = vmatpush.bf16.msra.mxu0 %v2428_v34  ;;  %v2429_v35 = vpack.c.bf16 %v3382_v9, %v3380_v10  ;;  %v2444_v18 = vpack.c.bf16 %v2401_v59, %v2399_v57  ;;  %v2402_v5 = vmul.f32 %v3382_v9, %v2200_v42 }
 0x23c   : > { %v3386_v55 = vpop.eup %3385  ;;  %v2426_v36 = vpack.c.bf16 %v5849_v20, %v3384_v61  ;;  %v2395_v6 = vmul.f32 %v3384_v61, %v2193_v32  ;;  %v2460_v20 = vpack.c.b16 %v2458_v13, %v2458_v13 }
 0x23d   : > { %2494 = vmatpush.bf16.msra.mxu2 %v2429_v35  ;;  %2481 = vmatpush.bf16.msra.mxu1 %v2444_v18  ;;  %v2445_v46 = vpack.c.bf16 %v2402_v5, %v2400_v17  ;;  %v2427_v38 = vpack.c.bf16 %v5854_v45, %v3386_v55  ;;  %v2396_v29 = vmul.f32 %v3386_v55, %v2194_v19 }
 0x23e   : > { %v2442_v27 = vpack.c.bf16 %v5857_v39, %v2395_v6 }
 0x23f   : > { %2507 = vmatpush.bf16.msra.mxu3 %v2445_v46  ;;  %2469 = vmatpush.bf16.msra.mxu0 %v2426_v36  ;;  %v2443_v25 = vpack.c.bf16 %v5860_v51, %v2396_v29 }
 0x241   : > { %2495 = vmatpush.bf16.msra.mxu2 %v2427_v38  ;;  %2482 = vmatpush.bf16.msra.mxu1 %v2442_v27 }
 0x243   : > { %2508 = vmatpush.bf16.msra.mxu3 %v2443_v25  ;;  %2470 = vmatpush.bf16.msra.mxu0 %v2424_v62 }
 0x245   : > { %2496 = vmatpush.bf16.msra.mxu2 %v2425_v0  ;;  %2483 = vmatpush.bf16.msra.mxu1 %v2440_v44 }
 0x246   : > { %2471 = vmatmul.bf16.vlgmr.msra.gmra.mxu0 %v2459_v14 }
 0x247   : > { %2509 = vmatpush.bf16.msra.mxu3 %v2441_v43 }
 0x248   : > { %2497 = vmatmul.bf16.vlgmr.msra.gmra.mxu2 %v2459_v14  ;;  %2484 = vmatmul.bf16.vlgmr.msra.gmra.mxu1 %v2460_v20 }
 0x24a   : > { %2510 = vmatmul.bf16.vlgmr.msra.gmra.mxu3 %v2460_v20 }
 0x2c3   : > { %v2472_v45 = vpop.f32.mrf.mxu0 }
 0x2c5   : > { %v2485_v39 = vpop.f32.mrf.mxu1 }
 0x2c6   : > { %v2486_v53 = vadd.f32 %v2485_v39, %v2472_v45 }
 0x2c8   : > { %v2515_v4 = vmax.f32 %v2486_v53, 1e-30 }
 0x2ca   : > { %3387 = vrcp.f32 %v2515_v4 }
 0x2cb   : > { %v2498_v51 = vpop.f32.mrf.mxu2  ;;  %v2474_v63 = vpop.f32.mrf.mxu0 }
 0x2cd   : > { %v2511_v23 = vpop.f32.mrf.mxu3  ;;  %v2487_v12 = vpop.f32.mrf.mxu1 }
 0x2ce   : > { %v2512_v58 = vadd.f32 %v2511_v23, %v2498_v51 }
 0x2d0   : > { %v3388_v24 = vpop.eup %3387  ;;  %v2516_v41 = vmax.f32 %v2512_v58, 1e-30 }
 0x2d1   : > { %v2519_v30 = vmul.f32 %v3388_v24, %v2515_v4 }
 0x2d2   : > { %3389 = vrcp.f32 %v2516_v41 }
 0x2d3   : > { %v2521_v22 = vsub.f32 2.0, %v2519_v30  ;;  %v2500_v11 = vpop.f32.mrf.mxu2 }
 0x2d5   : > { %v2523_v49 = vmul.f32 %v3388_v24, %v2521_v22  ;;  %v2513_v54 = vpop.f32.mrf.mxu3 }
 0x2d7   : > { %v2527_v26 = vrot.slane %v2523_v49, 4 }
 0x2d8   : > { %v3390_v21 = vpop.eup %3389 }
 0x2d9   : > { %v2531_v50 = vmul.f32 %v2527_v26, %v2486_v53  ;;  %v2520_v62 = vmul.f32 %v3390_v21, %v2516_v41 }
 0x2db   : > { %2535 = vst.sshfl [vmem:[#allocation1] sm:$0xff pattern:$0x75316420] %v2531_v50  ;;  %v2522_v0 = vsub.f32 2.0, %v2520_v62 }
 0x2dd   : > { %v2524_v8 = vmul.f32 %v3390_v21, %v2522_v0 }
 0x2df   : > { %v2528_v28 = vrot.slane %v2524_v8, 4 }
 0x2e1   : > { %v2532_v40 = vmul.f32 %v2528_v28, %v2512_v58 }
 0x2e3   : > { %2536 = vst.sshfl [vmem:[#allocation1 + $0x8] sm:$0xff pattern:$0x75316420] %v2532_v40 }
 0x2ea   : > { %v2538_v47 = vld [vmem:[#allocation1 + $0x1] ss:$2 sm:$0xff] }
 0x2eb   : > { %2540 = vst [vmem:[%s215_s22] sm:$0xff] %v2538_v47 }
 0x2ec   : > { %3419 = shalt.err (!%p3416_p5)
}
 0x2ed   : > { %2770 = dma.vmem_to_hbm [thread:$0]  (%p3541_p4), %s2558_s24, 128, %s2560_s26, %s2542_s29  }
 0x2ee PF: > { %p2776_p6 = scmp.ge.s32.totalorder %s3470_s20, 2  ;;  %s2571_s10 = sand.u32 1, %s3450_s15  }
 0x2ef   : > { %s2572_s11 = scalar_lea.sflag [#allocation3], %s2571_s10 }
 0x2f0   : > { %p2773_p7 = pnand %p2776_p6, %p3548_p8 }
 0x2f2   : > { %p2774_p9 = pneg %p2773_p7 }
 0x2f4   : > { %3445 = dma.done.wait (%p2774_p9), %s2572_s11, 128  }
 0x2f5   : > { %3447 = vsyncadd (%p2774_p9), %s2572_s11, 4294967168  ;;  %s17_s20 = sadd.s32 1, %s3470_s20   ;;  %s6468_s15 = smov %s3454_s16 }
 0x2f6   : > { %p14_p10 = scmp.ge.s32.totalorder %s17_s20, 4   ;;  %s6469_s16 = smov %s3458_s17 }
 0x2f7   : > { %s6470_s17 = smov %s3554_s28  ;;  %s6471_s18 = smov %s3466_s19 }
 0x2f8   : > { %s6472_s19 = smov %s6474_s23  ;;  %16 = sbr.rel (!%p14_p10) target bundleno = 4 (0x4), region = 72 }
 0x2fd   :  { %2578 = vsyncpa [#allocation3], 1 }
 0x2fe   :  { %2580 = vsyncpa [#allocation3 + $0x1], 1 }

</bundles_post_ra>
